<compile_context>
chip_gen: v5e
topology: v5e:2x2
jax: 0.10.0
libtpu: 0.0.40
codegen_flags: <defaults>
</compile_context>

<pallas_src>
import jax
import jax.numpy as jnp
from jax.experimental import pallas as pl
from jax.experimental.pallas import tpu as pltpu


def classifier_kernel(a_ref, h_ref, w1_ref, b1_ref, w2_ref, b2_ref,
                      wc_ref, bc_ref, pool_ref, out_ref):
    """One grid step = tb graphs, presented as one block-diagonal system."""
    a = a_ref[...]          # (tb*N, tb*N) bf16  block-diag D^-1/2 A D^-1/2
    h = h_ref[...]          # (tb*N, Fin)  bf16  flattened node features

    # --- GraphConv 1: A_blk @ (H @ W1) + b1, ReLU --------------------------
    hw1 = jnp.dot(h, w1_ref[...], preferred_element_type=jnp.float32)
    h1 = jnp.dot(a, hw1.astype(jnp.bfloat16),
                 preferred_element_type=jnp.float32) + b1_ref[...]
    h1 = jnp.maximum(h1, 0.0).astype(jnp.bfloat16)            # (tb*N, Hd)

    # --- GraphConv 2 --------------------------------------------------------
    hw2 = jnp.dot(h1, w2_ref[...], preferred_element_type=jnp.float32)
    h2 = jnp.dot(a, hw2.astype(jnp.bfloat16),
                 preferred_element_type=jnp.float32) + b2_ref[...]
    h2 = jnp.maximum(h2, 0.0)                                  # (tb*N, Hd) f32

    # --- mean readout (pooling matmul) + classifier, kept in f32 -----------
    # pool[t, t*N + n] = 1/N  ->  hg[t] = mean_n h2[graph t]
    # TODO(synk): dgl.readout_nodes over a ragged batch divides by each
    # graph's own node count; this kernel assumes every graph has exactly N
    # nodes (per-graph counts would come in via scalar prefetch into pool).
    hg = jnp.dot(pool_ref[...], h2, preferred_element_type=jnp.float32)   # (tb, Hd)
    out_ref[...] = jnp.dot(hg, wc_ref[...],
                           preferred_element_type=jnp.float32) + bc_ref[...]


def _pick_tb(batch):
    """Single grid step on 1-TC chips (v5e/v6e); two parallel steps on v7x."""
    try:
        kind = jax.devices()[0].device_kind.lower()
    except Exception:
        kind = ""
    dual_tc = ("v7" in kind) or ("7x" in kind)
    if dual_tc and batch % 2 == 0:
        return batch // 2
    return batch


def classifier_forward(a_hat, h, w1, b1, w2, b2, wc, bc, *, tb=None):
    B, N, _ = a_hat.shape
    Fin = h.shape[-1]
    Hd = w1.shape[-1]
    C = wc.shape[-1]
    if tb is None:
        tb = _pick_tb(B)
    assert B % tb == 0, "batch must be a multiple of the per-step graph tile"
    G = B // tb
    tbN = tb * N

    # ---- wrapper-side layout plumbing (free relative to the kernel) --------
    # Block-diagonal normalized adjacency, one (tb*N, tb*N) block per step.
    a_grouped = a_hat.reshape(G, tb, N, N)
    a_blk = jnp.einsum('gtij,tu->gtiuj', a_grouped,
                       jnp.eye(tb, dtype=a_hat.dtype)).reshape(G, tbN, tbN)
    a_blk = a_blk.astype(jnp.bfloat16)

    # Flattened node features (B*N, Fin) — lane-friendly contiguous DMA lines.
    h_flat = h.reshape(B * N, Fin).astype(jnp.bfloat16)

    # Pooling matrix for the mean readout: (tb, tb*N), entries 1/N.
    pool = jnp.kron(jnp.eye(tb, dtype=jnp.float32),
                    jnp.full((1, N), 1.0 / N, jnp.float32))

    # MXU-facing weights in bf16; classifier path and biases stay f32.
    w1 = w1.astype(jnp.bfloat16)
    w2 = w2.astype(jnp.bfloat16)
    wc = wc.astype(jnp.float32)

    # Advisory cost estimate so XLA can schedule around this tiny call.
    flops_per_step = 2 * (tbN * Fin * Hd + tbN * tbN * Hd      # layer 1
                          + tbN * Hd * Hd + tbN * tbN * Hd     # layer 2
                          + tb * tbN * Hd + tb * Hd * C)       # readout + head
    bytes_accessed = (a_blk.size * 2 + h_flat.size * 2
                      + w1.size * 2 + w2.size * 2 + wc.size * 4
                      + b1.size * 4 + b2.size * 4 + bc.size * 4
                      + pool.size * 4 + B * C * 4)

    return pl.pallas_call(
        classifier_kernel,
        out_shape=jax.ShapeDtypeStruct((B, C), jnp.float32),
        grid_spec=pltpu.PrefetchScalarGridSpec(
            num_scalar_prefetch=0,
            grid=(G,),
            in_specs=[
                pl.BlockSpec((None, tbN, tbN), lambda i: (i, 0, 0)),  # A block-diag
                pl.BlockSpec((tbN, Fin),       lambda i: (i, 0)),     # H (flattened)
                pl.BlockSpec((Fin, Hd),        lambda i: (0, 0)),     # W1
                pl.BlockSpec((1, Hd),          lambda i: (0, 0)),     # b1
                pl.BlockSpec((Hd, Hd),         lambda i: (0, 0)),     # W2
                pl.BlockSpec((1, Hd),          lambda i: (0, 0)),     # b2
                pl.BlockSpec((Hd, C),          lambda i: (0, 0)),     # Wc
                pl.BlockSpec((1, C),           lambda i: (0, 0)),     # bc
                pl.BlockSpec((tb, tbN),        lambda i: (0, 0)),     # mean pool
            ],
            out_specs=pl.BlockSpec((tb, C), lambda i: (i, 0)),
        ),
        compiler_params=pltpu.CompilerParams(
            dimension_semantics=("parallel",)),
        cost_estimate=pl.CostEstimate(
            flops=flops_per_step * G,
            transcendentals=0,
            bytes_accessed=bytes_accessed),
    )(a_blk, h_flat, w1, b1, w2, b2, wc, bc, pool)


def xavier_uniform(key, shape):
    fan_in, fan_out = shape
    limit = jnp.sqrt(6.0 / (fan_in + fan_out))
    return jax.random.uniform(key, shape, jnp.float32, -limit, limit)


if __name__ == "__main__":
    # Deterministic small example: B=32 graphs, N=16 nodes each,
    # in_dim=8, hidden_dim=32, n_classes=4.
    B, N, IN_DIM, HIDDEN, N_CLASSES = 32, 16, 8, 32, 4
    key = jax.random.PRNGKey(0)
    k_adj, k_h, k_w1, k_w2, k_wc = jax.random.split(key, 5)

    # --- deterministic batched graph (dense, symmetric, self-loops) --------
    raw = jax.random.bernoulli(k_adj, p=0.3, shape=(B, N, N)).astype(jnp.float32)
    adj = jnp.maximum(raw, jnp.transpose(raw, (0, 2, 1)))            # symmetrize
    adj = jnp.maximum(adj, jnp.eye(N, dtype=jnp.float32)[None])      # self-loops
    deg = adj.sum(axis=-1)                                           # (B, N)
    d_inv_sqrt = 1.0 / jnp.sqrt(deg)
    a_hat = adj * d_inv_sqrt[:, :, None] * d_inv_sqrt[:, None, :]    # D^-1/2 A D^-1/2

    # --- node features ---
    h = jax.random.normal(k_h, (B, N, IN_DIM), jnp.float32)

    # --- deterministic parameter init (GraphConv: Xavier W, zero bias;
    #     Linear: Xavier W, zero bias — synthetic, no checkpoint) ---
    w1 = xavier_uniform(k_w1, (IN_DIM, HIDDEN))
    b1 = jnp.zeros((1, HIDDEN), jnp.float32)
    w2 = xavier_uniform(k_w2, (HIDDEN, HIDDEN))
    b2 = jnp.zeros((1, HIDDEN), jnp.float32)
    wc = xavier_uniform(k_wc, (HIDDEN, N_CLASSES))
    bc = jnp.zeros((1, N_CLASSES), jnp.float32)

    logits = classifier_forward(a_hat, h, w1, b1, w2, b2, wc, bc)
    jax.block_until_ready(logits)

    # Pure-f32 reference of the original DGL math; kernel uses bf16 operands
    # with f32 accumulation, so compare at bf16-level tolerance.
    def ref(a_hat, h):
        h1 = jnp.maximum(jnp.einsum('bnm,bmf->bnf', a_hat, h @ w1) + b1[None], 0.0)
        h2 = jnp.maximum(jnp.einsum('bnm,bmf->bnf', a_hat, h1 @ w2) + b2[None], 0.0)
        hg = h2.mean(axis=1)
        return hg @ wc + bc

    ref_out = ref(a_hat, h)
    assert logits.shape == ref_out.shape
    max_err = float(jnp.max(jnp.abs(logits - ref_out)))
    assert jnp.allclose(logits, ref_out, atol=5e-2, rtol=5e-2), (max_err, logits, ref_out)

    print("KERNEL_OK")
</pallas_src>

<mosaic_0001>
module attributes {stable_mosaic.version = 11 : i64} {
  func.func @classifier_kernel(%arg0: i32, %arg1: memref<1x512x512xbf16, #tpu.memory_space<vmem>>, %arg2: memref<512x8xbf16, #tpu.memory_space<vmem>>, %arg3: memref<8x32xbf16, #tpu.memory_space<vmem>>, %arg4: memref<1x32xf32, #tpu.memory_space<vmem>>, %arg5: memref<32x32xbf16, #tpu.memory_space<vmem>>, %arg6: memref<1x32xf32, #tpu.memory_space<vmem>>, %arg7: memref<32x4xf32, #tpu.memory_space<vmem>>, %arg8: memref<1x4xf32, #tpu.memory_space<vmem>>, %arg9: memref<32x512xf32, #tpu.memory_space<vmem>>, %arg10: memref<32x4xf32, #tpu.memory_space<vmem>>) attributes {dimension_semantics = [#tpu.dimension_semantics<parallel>], iteration_bounds = array<i64: 1>, scalar_prefetch = 0 : i64, scratch_operands = 0 : i64, tpu.core_type = #tpu.core_type<tc>, window_params = [{transform_indices = @transform_0, window_bounds = array<i64: 1, 512, 512>}, {transform_indices = @transform_1, window_bounds = array<i64: 512, 8>}, {pipeline_mode = #tpu.pipeline_mode<synchronous>, transform_indices = @transform_2, window_bounds = array<i64: 8, 32>}, {pipeline_mode = #tpu.pipeline_mode<synchronous>, transform_indices = @transform_3, window_bounds = array<i64: 1, 32>}, {pipeline_mode = #tpu.pipeline_mode<synchronous>, transform_indices = @transform_4, window_bounds = array<i64: 32, 32>}, {pipeline_mode = #tpu.pipeline_mode<synchronous>, transform_indices = @transform_5, window_bounds = array<i64: 1, 32>}, {pipeline_mode = #tpu.pipeline_mode<synchronous>, transform_indices = @transform_6, window_bounds = array<i64: 32, 4>}, {pipeline_mode = #tpu.pipeline_mode<synchronous>, transform_indices = @transform_7, window_bounds = array<i64: 1, 4>}, {pipeline_mode = #tpu.pipeline_mode<synchronous>, transform_indices = @transform_8, window_bounds = array<i64: 32, 512>}, {transform_indices = @transform_9, window_bounds = array<i64: 32, 4>}]} {
    %c0 = arith.constant 0 : index
    %c0_0 = arith.constant 0 : index
    %c0_1 = arith.constant 0 : index
    %0 = vector.load %arg1[%c0, %c0_0, %c0_1] : memref<1x512x512xbf16, #tpu.memory_space<vmem>>, vector<1x512x512xbf16>
    %1 = vector.shape_cast %0 : vector<1x512x512xbf16> to vector<512x512xbf16>
    %c0_2 = arith.constant 0 : index
    %c0_3 = arith.constant 0 : index
    %2 = vector.load %arg2[%c0_2, %c0_3] : memref<512x8xbf16, #tpu.memory_space<vmem>>, vector<512x8xbf16>
    %c0_4 = arith.constant 0 : index
    %c0_5 = arith.constant 0 : index
    %3 = vector.load %arg3[%c0_4, %c0_5] : memref<8x32xbf16, #tpu.memory_space<vmem>>, vector<8x32xbf16>
    %cst = arith.constant dense<0.000000e+00> : vector<512x32xf32>
    %4 = tpu.matmul %2, %3, %cst {dimension_numbers = #tpu.dot_dimension_numbers<[1], [0], [0], [1], [0, 0, 1, 1], [], []>} : vector<512x8xbf16>, vector<8x32xbf16>, vector<512x32xf32> -> vector<512x32xf32>
    %5 = arith.truncf %4 : vector<512x32xf32> to vector<512x32xbf16>
    %cst_6 = arith.constant dense<0.000000e+00> : vector<512x32xf32>
    %6 = tpu.matmul %1, %5, %cst_6 {dimension_numbers = #tpu.dot_dimension_numbers<[1], [0], [0], [1], [0, 0, 1, 1], [], []>} : vector<512x512xbf16>, vector<512x32xbf16>, vector<512x32xf32> -> vector<512x32xf32>
    %c0_7 = arith.constant 0 : index
    %c0_8 = arith.constant 0 : index
    %7 = vector.load %arg4[%c0_7, %c0_8] : memref<1x32xf32, #tpu.memory_space<vmem>>, vector<1x32xf32>
    %8 = vector.broadcast %7 : vector<1x32xf32> to vector<512x32xf32>
    %9 = arith.addf %6, %8 : vector<512x32xf32>
    %cst_9 = arith.constant 0.000000e+00 : f32
    %10 = vector.broadcast %cst_9 : f32 to vector<512x32xf32>
    %11 = arith.maximumf %9, %10 : vector<512x32xf32>
    %12 = arith.truncf %11 : vector<512x32xf32> to vector<512x32xbf16>
    %c0_10 = arith.constant 0 : index
    %c0_11 = arith.constant 0 : index
    %13 = vector.load %arg5[%c0_10, %c0_11] : memref<32x32xbf16, #tpu.memory_space<vmem>>, vector<32x32xbf16>
    %cst_12 = arith.constant dense<0.000000e+00> : vector<512x32xf32>
    %14 = tpu.matmul %12, %13, %cst_12 {dimension_numbers = #tpu.dot_dimension_numbers<[1], [0], [0], [1], [0, 0, 1, 1], [], []>} : vector<512x32xbf16>, vector<32x32xbf16>, vector<512x32xf32> -> vector<512x32xf32>
    %15 = arith.truncf %14 : vector<512x32xf32> to vector<512x32xbf16>
    %cst_13 = arith.constant dense<0.000000e+00> : vector<512x32xf32>
    %16 = tpu.matmul %1, %15, %cst_13 {dimension_numbers = #tpu.dot_dimension_numbers<[1], [0], [0], [1], [0, 0, 1, 1], [], []>} : vector<512x512xbf16>, vector<512x32xbf16>, vector<512x32xf32> -> vector<512x32xf32>
    %c0_14 = arith.constant 0 : index
    %c0_15 = arith.constant 0 : index
    %17 = vector.load %arg6[%c0_14, %c0_15] : memref<1x32xf32, #tpu.memory_space<vmem>>, vector<1x32xf32>
    %18 = vector.broadcast %17 : vector<1x32xf32> to vector<512x32xf32>
    %19 = arith.addf %16, %18 : vector<512x32xf32>
    %cst_16 = arith.constant 0.000000e+00 : f32
    %20 = vector.broadcast %cst_16 : f32 to vector<512x32xf32>
    %21 = arith.maximumf %19, %20 : vector<512x32xf32>
    %c0_17 = arith.constant 0 : index
    %c0_18 = arith.constant 0 : index
    %22 = vector.load %arg9[%c0_17, %c0_18] : memref<32x512xf32, #tpu.memory_space<vmem>>, vector<32x512xf32>
    %cst_19 = arith.constant dense<0.000000e+00> : vector<32x32xf32>
    %23 = tpu.matmul %22, %21, %cst_19 {dimension_numbers = #tpu.dot_dimension_numbers<[1], [0], [0], [1], [0, 0, 1, 1], [], []>} : vector<32x512xf32>, vector<512x32xf32>, vector<32x32xf32> -> vector<32x32xf32>
    %c0_20 = arith.constant 0 : index
    %c0_21 = arith.constant 0 : index
    %24 = vector.load %arg7[%c0_20, %c0_21] : memref<32x4xf32, #tpu.memory_space<vmem>>, vector<32x4xf32>
    %cst_22 = arith.constant dense<0.000000e+00> : vector<32x4xf32>
    %25 = tpu.matmul %23, %24, %cst_22 {dimension_numbers = #tpu.dot_dimension_numbers<[1], [0], [0], [1], [0, 0, 1, 1], [], []>} : vector<32x32xf32>, vector<32x4xf32>, vector<32x4xf32> -> vector<32x4xf32>
    %c0_23 = arith.constant 0 : index
    %c0_24 = arith.constant 0 : index
    %26 = vector.load %arg8[%c0_23, %c0_24] : memref<1x4xf32, #tpu.memory_space<vmem>>, vector<1x4xf32>
    %27 = vector.broadcast %26 : vector<1x4xf32> to vector<32x4xf32>
    %28 = arith.addf %25, %27 : vector<32x4xf32>
    %c0_25 = arith.constant 0 : index
    %c0_26 = arith.constant 0 : index
    %29 = vector.load %arg10[%c0_25, %c0_26] : memref<32x4xf32, #tpu.memory_space<vmem>>, vector<32x4xf32>
    tpu.vector_store %arg10[%c0_25, %c0_26], %28 {strides = array<i32>} : memref<32x4xf32, #tpu.memory_space<vmem>>, vector<32x4xf32>,
    return
  }
  func.func @transform_0(%arg0: i32) -> (i32, i32, i32) {
    %c0_i32 = arith.constant 0 : i32
    %c0_i32_0 = arith.constant 0 : i32
    %c0_i32_1 = arith.constant 0 : i32
    return %arg0, %c0_i32, %c0_i32_0 : i32, i32, i32
  }
  func.func @transform_1(%arg0: i32) -> (i32, i32) {
    %c0_i32 = arith.constant 0 : i32
    %c0_i32_0 = arith.constant 0 : i32
    return %arg0, %c0_i32 : i32, i32
  }
  func.func @transform_2(%arg0: i32) -> (i32, i32) {
    %c0_i32 = arith.constant 0 : i32
    %c0_i32_0 = arith.constant 0 : i32
    %c0_i32_1 = arith.constant 0 : i32
    return %c0_i32, %c0_i32_0 : i32, i32
  }
  func.func @transform_3(%arg0: i32) -> (i32, i32) {
    %c0_i32 = arith.constant 0 : i32
    %c0_i32_0 = arith.constant 0 : i32
    %c0_i32_1 = arith.constant 0 : i32
    return %c0_i32, %c0_i32_0 : i32, i32
  }
  func.func @transform_4(%arg0: i32) -> (i32, i32) {
    %c0_i32 = arith.constant 0 : i32
    %c0_i32_0 = arith.constant 0 : i32
    %c0_i32_1 = arith.constant 0 : i32
    return %c0_i32, %c0_i32_0 : i32, i32
  }
  func.func @transform_5(%arg0: i32) -> (i32, i32) {
    %c0_i32 = arith.constant 0 : i32
    %c0_i32_0 = arith.constant 0 : i32
    %c0_i32_1 = arith.constant 0 : i32
    return %c0_i32, %c0_i32_0 : i32, i32
  }
  func.func @transform_6(%arg0: i32) -> (i32, i32) {
    %c0_i32 = arith.constant 0 : i32
    %c0_i32_0 = arith.constant 0 : i32
    %c0_i32_1 = arith.constant 0 : i32
    return %c0_i32, %c0_i32_0 : i32, i32
  }
  func.func @transform_7(%arg0: i32) -> (i32, i32) {
    %c0_i32 = arith.constant 0 : i32
    %c0_i32_0 = arith.constant 0 : i32
    %c0_i32_1 = arith.constant 0 : i32
    return %c0_i32, %c0_i32_0 : i32, i32
  }
  func.func @transform_8(%arg0: i32) -> (i32, i32) {
    %c0_i32 = arith.constant 0 : i32
    %c0_i32_0 = arith.constant 0 : i32
    %c0_i32_1 = arith.constant 0 : i32
    return %c0_i32, %c0_i32_0 : i32, i32
  }
  func.func @transform_9(%arg0: i32) -> (i32, i32) {
    %c0_i32 = arith.constant 0 : i32
    %c0_i32_0 = arith.constant 0 : i32
    return %arg0, %c0_i32 : i32, i32
  }
}

</mosaic_0001>

<bundles_post_ra>
// kernel: tpu_custom_call.1
= control target key start
LH: loop header
LB: loop body
LE: loop exit
PB: predicated region body
PF: predicated region fallthrough
CT: control target
= control target key end

     0   :  { %14 = vsyncpa [#allocation3], 0  ;;  %s4290_s12 = smov [#allocation2]   ;;  %s4291_s14 = smov 256   ;;  %s6249_s0 = inlined_call_operand.hbm [shape: bf16[1,512,512], index: 0, kind: input, shape index: {}]   ;;  %s6250_s1 = inlined_call_operand.vmem [shape: bf16[512,8], index: 1, kind: input, shape index: {}]   ;;  %s6251_s2 = inlined_call_operand.vmem [shape: bf16[8,32], index: 2, kind: input, shape index: {}]   ;;  %s6252_s3 = inlined_call_operand.vmem [shape: f32[1,32], index: 3, kind: input, shape index: {}]   ;;  %s6253_s4 = inlined_call_operand.vmem [shape: bf16[32,32], index: 4, kind: input, shape index: {}]   ;;  %s6254_s5 = inlined_call_operand.vmem [shape: f32[1,32], index: 5, kind: input, shape index: {}]   ;;  %s6255_s6 = inlined_call_operand.vmem [shape: f32[32,4], index: 6, kind: input, shape index: {}]   ;;  %s6256_s7 = inlined_call_operand.vmem [shape: f32[1,4], index: 7, kind: input, shape index: {}]   ;;  %s6257_s8 = inlined_call_operand.vmem [shape: f32[32,512], index: 8, kind: input, shape index: {}]   ;;  %s6258_s9 = inlined_call_operand.vmem [shape: f32[32,4], index: 9, kind: output, shape index: {}]  }
   0x1   :  { %s19_s11 = sshll.u32 %s6249_s0, 4  ;;  %s21_s13 = sshll.u32 %s4290_s12, 4  ;;  %s20_s11 = int_to_ptr.hbm [resolvable:$true] %s19_s11  ;;  %s22_s13 = int_to_ptr.vmem [resolvable:$true] %s21_s13 }
   0x2   :  { %s4292_s15 = smov 16  }
   0x3   :  { %27 = dma.hbm_to_vmem [thread:$0]  %s20_s11, 16384, %s22_s13, [#allocation3], %s4291_s14, %s4291_s14, %s4292_s15  }
   0x4   :  { %4288 = dma.done.wait [#allocation3], 16384  }
   0x5   :  { %4289 = vsyncadd [#allocation3], 4294950912  ;;  %vm499_vm0 = vcmask 1043456   ;;  %v241_v0 = vld [vmem:[%s6251_s2] sm:$0xf]  ;;  %vm402_vm1 = vcmask 64512  }
   0x6   :  { %v501_v1 = vsel %vm499_vm0, %v241_v0, 0  ;;  %v4213_v2 = vld [vmem:[%s6250_s1] sm:$0xff]  ;;  %v4214_v4 = vld [vmem:[%s6250_s1 + $0x8] sm:$0xff]  ;;  %v4215_v6 = vld [vmem:[%s6250_s1 + $0x10] sm:$0xff]  ;;  %vm2136_vm2 = vcmask 261120   ;;  %vm3359_vm3 = vcmask 31744  }
   0x7   :  { %v4233_v3 = vld [vmem:[%s6250_s1 + $0xa0] sm:$0xff]  ;;  %510 = vmatpush.bf16.msra.mxu0 %v501_v1  ;;  %4247 = vmatpush.bf16.msra.mxu2 %v501_v1  ;;  %v4234_v5 = vld [vmem:[%s6250_s1 + $0xa8] sm:$0xff]  ;;  %v4235_v7 = vld [vmem:[%s6250_s1 + $0xb0] sm:$0xff] }
   0x8   :  { %v4216_v8 = vld [vmem:[%s6250_s1 + $0x18] sm:$0xff]  ;;  %v4217_v10 = vld [vmem:[%s6250_s1 + $0x20] sm:$0xff]  ;;  %v4218_v12 = vld [vmem:[%s6250_s1 + $0x28] sm:$0xff] }
   0x9   :  { %v4236_v9 = vld [vmem:[%s6250_s1 + $0xb8] sm:$0xff]  ;;  %v4237_v11 = vld [vmem:[%s6250_s1 + $0xc0] sm:$0xff]  ;;  %v4238_v13 = vld [vmem:[%s6250_s1 + $0xc8] sm:$0xff] }
   0xa   :  { %3497 = vmatmul.msk.bf16.vlgmr.msra.gmra.mxu0 %vm402_vm1, %v4213_v2  ;;  %3517 = vmatmul.msk.bf16.vlgmr.msra.gmra.mxu2 %vm402_vm1, %v4233_v3  ;;  %v4219_v14 = vld [vmem:[%s6250_s1 + $0x30] sm:$0xff]  ;;  %v4220_v16 = vld [vmem:[%s6250_s1 + $0x38] sm:$0xff]  ;;  %v4221_v18 = vld [vmem:[%s6250_s1 + $0x40] sm:$0xff] }
   0xb   :  { %v4239_v15 = vld [vmem:[%s6250_s1 + $0xd0] sm:$0xff]  ;;  %v4240_v17 = vld [vmem:[%s6250_s1 + $0xd8] sm:$0xff]  ;;  %v4241_v19 = vld [vmem:[%s6250_s1 + $0xe0] sm:$0xff] }
   0xc   :  { %v4222_v25 = vld [vmem:[%s6250_s1 + $0x48] sm:$0xff]  ;;  %v4223_v32 = vld [vmem:[%s6250_s1 + $0x50] sm:$0xff]  ;;  %v4224_v39 = vld [vmem:[%s6250_s1 + $0x58] sm:$0xff] }
   0xd   :  { %v4242_v26 = vld [vmem:[%s6250_s1 + $0xe8] sm:$0xff]  ;;  %v4243_v33 = vld [vmem:[%s6250_s1 + $0xf0] sm:$0xff]  ;;  %v4244_v40 = vld [vmem:[%s6250_s1 + $0xf8] sm:$0xff] }
   0xe   :  { %v4225_v46 = vld [vmem:[%s6250_s1 + $0x60] sm:$0xff]  ;;  %v4226_v51 = vld [vmem:[%s6250_s1 + $0x68] sm:$0xff]  ;;  %v4227_v56 = vld [vmem:[%s6250_s1 + $0x70] sm:$0xff] }
   0xf   :  { %v4228_v61 = vld [vmem:[%s6250_s1 + $0x78] sm:$0xff] }
  0x1a   :  { %3498 = vmatmul.msk.bf16.gmra.mxu0 %vm402_vm1, %v4214_v4  ;;  %3518 = vmatmul.msk.bf16.gmra.mxu2 %vm402_vm1, %v4234_v5  ;;  %v4229_v4 = vld [vmem:[%s6250_s1 + $0x80] sm:$0xff] }
  0x2a   :  { %3499 = vmatmul.msk.bf16.gmra.mxu0 %vm402_vm1, %v4215_v6  ;;  %3519 = vmatmul.msk.bf16.gmra.mxu2 %vm402_vm1, %v4235_v7 }
  0x3a   :  { %3500 = vmatmul.msk.bf16.gmra.mxu0 %vm402_vm1, %v4216_v8  ;;  %3520 = vmatmul.msk.bf16.gmra.mxu2 %vm402_vm1, %v4236_v9 }
  0x4a   :  { %3501 = vmatmul.msk.bf16.gmra.mxu0 %vm402_vm1, %v4217_v10  ;;  %3521 = vmatmul.msk.bf16.gmra.mxu2 %vm402_vm1, %v4237_v11  ;;  %v4230_v11 = vld [vmem:[%s6250_s1 + $0x88] sm:$0xff] }
  0x5a   :  { %3502 = vmatmul.msk.bf16.gmra.mxu0 %vm402_vm1, %v4218_v12  ;;  %3522 = vmatmul.msk.bf16.gmra.mxu2 %vm402_vm1, %v4238_v13  ;;  %v3835_v13 = vld [vmem:[#allocation2 + $0x260] sm:$0xf] }
  0x6a   :  { %3503 = vmatmul.msk.bf16.gmra.mxu0 %vm402_vm1, %v4219_v14  ;;  %3523 = vmatmul.msk.bf16.gmra.mxu2 %vm402_vm1, %v4239_v15  ;;  %v4163_v14 = vld [vmem:[#allocation2 + $0x26c] sm:$0xf0] }
  0x7a   :  { %3504 = vmatmul.msk.bf16.gmra.mxu0 %vm402_vm1, %v4220_v16  ;;  %3524 = vmatmul.msk.bf16.gmra.mxu2 %vm402_vm1, %v4240_v17  ;;  %v4517_v17 = vor.u32 %v4163_v14, %v3835_v13  ;;  %v4179_v13 = vld [vmem:[#allocation2 + $0x2ec] sm:$0xf0] }
  0x7b   :  { %v4103_v14 = vld [vmem:[#allocation2 + $0x8c] sm:$0xf0] }
  0x7c   :  { %6367 = vst [vmem:[#allocation5_spill] sm:$0xff] %v4517_v17 }
  0x87   :  { %v512_v20 = vpop.f32.mrf.mxu0 }
  0x8a   :  { %3505 = vmatmul.msk.bf16.gmra.mxu0 %vm402_vm1, %v4221_v18  ;;  %3525 = vmatmul.msk.bf16.gmra.mxu2 %vm402_vm1, %v4241_v19 }
  0x8d   :  { %v4421_v21 = vpop.f32.mrf.mxu2 }
  0x8f   :  { %v514_v22 = vpop.f32.mrf.mxu0 }
  0x90   :  { %v4423_v23 = vpack.c.bf16 %v514_v22, %v512_v20 }
  0x95   :  { %v4425_v24 = vpop.f32.mrf.mxu2 }
  0x97   :  { %v517_v27 = vpop.f32.mrf.mxu0 }
  0x9a   :  { %3506 = vmatmul.msk.bf16.gmra.mxu0 %vm402_vm1, %v4222_v25  ;;  %3526 = vmatmul.msk.bf16.gmra.mxu2 %vm402_vm1, %v4242_v26  ;;  %v4231_v25 = vld [vmem:[%s6250_s1 + $0x90] sm:$0xff] }
  0x9d   :  { %v4435_v28 = vpop.f32.mrf.mxu2 }
  0x9f   :  { %v519_v29 = vpop.f32.mrf.mxu0 }
  0xa0   :  { %v4437_v30 = vpack.c.bf16 %v519_v29, %v517_v27  ;;  %v3851_v27 = vld [vmem:[#allocation2 + $0x280] sm:$0xf]  ;;  %v4167_v29 = vld [vmem:[#allocation2 + $0x28c] sm:$0xf0] }
  0xa5   :  { %v4439_v31 = vpop.f32.mrf.mxu2 }
  0xa6   :  { %v693_v20 = vpack.c.bf16 %v4439_v31, %v4435_v28  ;;  %v4537_v31 = vor.u32 %v4167_v29, %v3851_v27 }
  0xa7   :  { %v522_v34 = vpop.f32.mrf.mxu0 }
  0xa8   :  { %6368 = vst [vmem:[#allocation6_spill] sm:$0xff] %v4537_v31 }
  0xaa   :  { %3507 = vmatmul.msk.bf16.gmra.mxu0 %vm402_vm1, %v4223_v32  ;;  %3527 = vmatmul.msk.bf16.gmra.mxu2 %vm402_vm1, %v4243_v33  ;;  %v4087_v32 = vld [vmem:[#allocation2 + $0xc] sm:$0xf0] }
  0xad   :  { %v4449_v35 = vpop.f32.mrf.mxu2 }
  0xaf   :  { %v524_v36 = vpop.f32.mrf.mxu0 }
  0xb0   :  { %v674_v37 = vpack.c.bf16 %v524_v36, %v522_v34  ;;  %v3867_v36 = vld [vmem:[#allocation2 + $0x2a0] sm:$0xf] }
  0xb5   :  { %v4451_v38 = vpop.f32.mrf.mxu2 }
  0xb6   :  { %v694_v19 = vpack.c.bf16 %v4451_v38, %v4449_v35  ;;  %v3547_v38 = vld [vmem:[#allocation2 + $0x20] sm:$0xf] }
  0xb7   :  { %v527_v41 = vpop.f32.mrf.mxu0 }
  0xba   :  { %3508 = vmatmul.msk.bf16.gmra.mxu0 %vm402_vm1, %v4224_v39  ;;  %3528 = vmatmul.msk.bf16.gmra.mxu2 %vm402_vm1, %v4244_v40  ;;  %v4091_v39 = vld [vmem:[#allocation2 + $0x2c] sm:$0xf0] }
  0xbb   :  { %v4549_v40 = vor.u32 %v4091_v39, %v3547_v38  ;;  %v4111_v38 = vld [vmem:[#allocation2 + $0xcc] sm:$0xf0] }
  0xbd   :  { %v4461_v42 = vpop.f32.mrf.mxu2 }
  0xbf   :  { %v529_v43 = vpop.f32.mrf.mxu0 }
  0xc0   :  { %v675_v44 = vpack.c.bf16 %v529_v43, %v527_v41 }
  0xc5   :  { %v629_v45 = vpop.f32.mrf.mxu2 }
  0xc6   :  { %v695_v15 = vpack.c.bf16 %v629_v45, %v4461_v42 }
  0xc7   :  { %v532_v47 = vpop.f32.mrf.mxu0 }
  0xca   :  { %3509 = vmatmul.msk.bf16.gmra.mxu0 %vm402_vm1, %v4225_v46 }
  0xcd   :  { %v4467_v48 = vpop.f32.mrf.mxu2 }
  0xcf   :  { %v534_v49 = vpop.f32.mrf.mxu0 }
  0xd0   :  { %v676_v7 = vpack.c.bf16 %v534_v49, %v532_v47  ;;  %v3563_v47 = vld [vmem:[#allocation2 + $0x40] sm:$0xf]  ;;  %v4095_v49 = vld [vmem:[#allocation2 + $0x4c] sm:$0xf0] }
  0xd5   :  { %v4469_v50 = vpop.f32.mrf.mxu2 }
  0xd7   :  { %v537_v52 = vpop.f32.mrf.mxu0 }
  0xda   :  { %3510 = vmatmul.msk.bf16.gmra.mxu0 %vm402_vm1, %v4226_v51 }
  0xdd   :  { %v4475_v53 = vpop.f32.mrf.mxu2 }
  0xdf   :  { %v539_v54 = vpop.f32.mrf.mxu0 }
  0xe0   :  { %v677_v6 = vpack.c.bf16 %v539_v54, %v537_v52  ;;  %v4559_v52 = vor.u32 %v4095_v49, %v3563_v47  ;;  %v3883_v54 = vld [vmem:[#allocation2 + $0x2c0] sm:$0xf] }
  0xe2   :  { %6370 = vst [vmem:[#allocation8_spill] sm:$0xff] %v4559_v52 }
  0xe5   :  { %v4477_v55 = vpop.f32.mrf.mxu2 }
  0xe7   :  { %v542_v57 = vpop.f32.mrf.mxu0 }
  0xea   :  { %3511 = vmatmul.msk.bf16.gmra.mxu0 %vm402_vm1, %v4227_v56  ;;  %v4175_v56 = vld [vmem:[#allocation2 + $0x2cc] sm:$0xf0] }
  0xed   :  { %v4483_v58 = vpop.f32.mrf.mxu2 }
  0xef   :  { %v544_v59 = vpop.f32.mrf.mxu0 }
  0xf0   :  { %v678_v2 = vpack.c.bf16 %v544_v59, %v542_v57  ;;  %v4561_v59 = vor.u32 %v4175_v56, %v3883_v54  ;;  %v3963_v54 = vld [vmem:[#allocation2 + $0x360] sm:$0xf]  ;;  %v4085_v56 = vld [vmem:[#allocation2 + $0x4] sm:$0xf] }
  0xf2   :  { %6371 = vst [vmem:[#allocation9_spill] sm:$0xff] %v4561_v59 }
  0xf5   :  { %v4485_v60 = vpop.f32.mrf.mxu2 }
  0xf7   :  { %v547_v62 = vpop.f32.mrf.mxu0 }
  0xfa   :  { %3512 = vmatmul.msk.bf16.gmra.mxu0 %vm402_vm1, %v4228_v61 }
  0xfd   :  { %v4491_v63 = vpop.f32.mrf.mxu2 }
  0xff   :  { %v549_v0 = vpop.f32.mrf.mxu0 }
 0x100   :  { %v679_v1 = vpack.c.bf16 %v549_v0, %v547_v62 }
 0x102   :  { %1348 = vmatpush.bf16.msra.mxu1 %v679_v1  ;;  %4248 = vmatpush.bf16.msra.mxu3 %v679_v1 }
 0x105   :  { %v4493_v3 = vpop.f32.mrf.mxu2 }
 0x106   :  { %1349 = vmatpush.bf16.msra.mxu1 %v678_v2  ;;  %4249 = vmatpush.bf16.msra.mxu3 %v678_v2  ;;  %v699_v0 = vpack.c.bf16 %v4493_v3, %v4491_v63  ;;  %v3579_v2 = vld [vmem:[#allocation2 + $0x60] sm:$0xf]  ;;  %v696_v3 = vpack.c.bf16 %v4469_v50, %v4467_v48  ;;  %v4187_v48 = vld [vmem:[#allocation2 + $0x32c] sm:$0xf0] }
 0x107   :  { %v4498_v5 = vpop.f32.mrf.mxu0 }
 0x10a   :  { %3513 = vmatmul.msk.bf16.gmra.mxu0 %vm402_vm1, %v4229_v4  ;;  %1350 = vmatpush.bf16.msra.mxu1 %v677_v6  ;;  %v4099_v4 = vld [vmem:[#allocation2 + $0x6c] sm:$0xf0] }
 0x10b   :  { %4250 = vmatpush.bf16.msra.mxu3 %v677_v6  ;;  %v698_v6 = vpack.c.bf16 %v4485_v60, %v4483_v58  ;;  %v3595_v60 = vld [vmem:[#allocation2 + $0x80] sm:$0xf] }
 0x10d   :  { %v4501_v8 = vpop.f32.mrf.mxu2 }
 0x10e   :  { %1351 = vmatpush.bf16.msra.mxu1 %v676_v7 }
 0x10f   :  { %4251 = vmatpush.bf16.msra.mxu3 %v676_v7  ;;  %v4503_v9 = vpop.f32.mrf.mxu0  ;;  %v4571_v7 = vor.u32 %v4099_v4, %v3579_v2  ;;  %v3979_v2 = vld [vmem:[#allocation2 + $0x380] sm:$0xf]  ;;  %v4089_v4 = vld [vmem:[#allocation2 + $0x24] sm:$0xf] }
 0x111   :  { %6372 = vst [vmem:[#allocation10_spill] sm:$0xff] %v4571_v7 }
 0x112   :  { %1352 = vmatpush.bf16.msra.mxu1 %v675_v44 }
 0x113   :  { %4252 = vmatpush.bf16.msra.mxu3 %v675_v44 }
 0x115   :  { %v4505_v10 = vpop.f32.mrf.mxu2 }
 0x116   :  { %1353 = vmatpush.bf16.msra.mxu1 %v674_v37  ;;  %v700_v62 = vpack.c.bf16 %v4505_v10, %v4501_v8  ;;  %v697_v8 = vpack.c.bf16 %v4477_v55, %v4475_v53 }
 0x117   :  { %4253 = vmatpush.bf16.msra.mxu3 %v674_v37  ;;  %v4510_v12 = vpop.f32.mrf.mxu0  ;;  %v4171_v37 = vld [vmem:[#allocation2 + $0x2ac] sm:$0xf0] }
 0x118   :  { %v4551_v42 = vor.u32 %v4171_v37, %v3867_v36  ;;  %v4191_v36 = vld [vmem:[#allocation2 + $0x34c] sm:$0xf0]  ;;  %v3627_v37 = vld [vmem:[#allocation2 + $0xc0] sm:$0xf] }
 0x11a   :  { %3514 = vmatmul.msk.bf16.gmra.mxu0 %vm402_vm1, %v4230_v11  ;;  %1354 = vmatpush.bf16.msra.mxu1 %v4437_v30  ;;  %6369 = vst [vmem:[#allocation7_spill] sm:$0xff] %v4551_v42  ;;  %v3899_v11 = vld [vmem:[#allocation2 + $0x2e0] sm:$0xf] }
 0x11b   :  { %4254 = vmatpush.bf16.msra.mxu3 %v4437_v30  ;;  %v3531_v30 = vld [vmem:[#allocation2] sm:$0xf]  ;;  %v4575_v10 = vor.u32 %v4179_v13, %v3899_v11  ;;  %v4119_v13 = vld [vmem:[#allocation2 + $0x10c] sm:$0xf0] }
 0x11c   :  { %v4535_v33 = vor.u32 %v4087_v32, %v3531_v30  ;;  %v3659_v11 = vld [vmem:[#allocation2 + $0x100] sm:$0xf] }
 0x11d   :  { %v657_v16 = vpop.f32.mrf.mxu2  ;;  %6373 = vst [vmem:[#allocation11_spill] sm:$0xff] %v4575_v10 }
 0x11e   :  { %1355 = vmatpush.bf16.msra.mxu1 %v4423_v23 }
 0x11f   :  { %4255 = vmatpush.bf16.msra.mxu3 %v4423_v23  ;;  %v4520_v18 = vpop.f32.mrf.mxu0  ;;  %v692_v23 = vpack.c.bf16 %v4425_v24, %v4421_v21  ;;  %v4232_v21 = vld [vmem:[%s6250_s1 + $0x98] sm:$0xff] }
 0x121   :  { %1356 = vmatmul.bf16.vlgmr.msra.gmra.mxu1 %v4535_v33 }
 0x122   :  { %1451 = vmatmul.bf16.vlgmr.msra.gmra.mxu3 %v4517_v17  ;;  %v4102_v17 = vld [vmem:[#allocation2 + $0x8c] sm:$0xf] }
 0x123   :  { %1686 = vmatpush.bf16.msrb.mxu3 %v695_v15  ;;  %v3915_v15 = vld [vmem:[#allocation2 + $0x300] sm:$0xf] }
 0x125   :  { %v659_v22 = vpop.f32.mrf.mxu2 }
 0x126   :  { %v701_v57 = vpack.c.bf16 %v659_v22, %v657_v16  ;;  %v4183_v16 = vld [vmem:[#allocation2 + $0x30c] sm:$0xf0]  ;;  %v3611_v22 = vld [vmem:[#allocation2 + $0xa0] sm:$0xf] }
 0x127   :  { %1687 = vmatpush.bf16.msrb.mxu3 %v694_v19  ;;  %v4530_v26 = vpop.f32.mrf.mxu0  ;;  %v4581_v19 = vor.u32 %v4103_v14, %v3595_v60  ;;  %v4583_v53 = vor.u32 %v4183_v16, %v3915_v15 }
 0x129   :  { %6374 = vst [vmem:[#allocation12_spill] sm:$0xff] %v4581_v19 }
 0x12a   :  { %3515 = vmatmul.msk.bf16.gmra.mxu0 %vm402_vm1, %v4231_v25  ;;  %6375 = vst [vmem:[#allocation13_spill] sm:$0xff] %v4583_v53  ;;  %v4107_v25 = vld [vmem:[#allocation2 + $0xac] sm:$0xf0] }
 0x12b   :  { %1688 = vmatpush.bf16.msrb.mxu3 %v693_v20  ;;  %v4587_v50 = vor.u32 %v4107_v25, %v3611_v22  ;;  %v3565_v22 = vld [vmem:[#allocation2 + $0x50] sm:$0xf0]  ;;  %v4203_v25 = vld [vmem:[#allocation2 + $0x3ac] sm:$0xf0] }
 0x12d   :  { %v662_v28 = vpop.f32.mrf.mxu2  ;;  %6376 = vst [vmem:[#allocation14_spill] sm:$0xff] %v4587_v50 }
 0x12f   :  { %1689 = vmatpush.bf16.msrb.mxu3 %v692_v23  ;;  %v4540_v34 = vpop.f32.mrf.mxu0  ;;  %v3931_v23 = vld [vmem:[#allocation2 + $0x320] sm:$0xf] }
 0x130   :  { %v4589_v27 = vor.u32 %v4187_v48, %v3931_v23  ;;  %v682_v49 = vpack.c.bf16 %v4540_v34, %v4530_v26  ;;  %v3675_v48 = vld [vmem:[#allocation2 + $0x120] sm:$0xf] }
 0x131   :  { %1361 = vmatmul.bf16.gmra.mxu1 %v4549_v40 }
 0x132   :  { %1456 = vmatmul.bf16.gmra.mxu3 %v4537_v31  ;;  %6377 = vst [vmem:[#allocation15_spill] sm:$0xff] %v4589_v27 }
 0x135   :  { %v664_v35 = vpop.f32.mrf.mxu2 }
 0x136   :  { %v702_v51 = vpack.c.bf16 %v664_v35, %v662_v28 }
 0x137   :  { %v4546_v24 = vpop.f32.mrf.mxu0 }
 0x13a   :  { %3516 = vmatmul.msk.bf16.gmra.mxu0 %vm402_vm1, %v4232_v21  ;;  %v3947_v21 = vld [vmem:[#allocation2 + $0x340] sm:$0xf] }
 0x13d   :  { %v667_v41 = vpop.f32.mrf.mxu2 }
 0x13f   :  { %v4554_v43 = vpop.f32.mrf.mxu0 }
 0x140   :  { %v683_v47 = vpack.c.bf16 %v4554_v43, %v4546_v24  ;;  %v680_v24 = vpack.c.bf16 %v4503_v9, %v4498_v5  ;;  %v3549_v5 = vld [vmem:[#allocation2 + $0x30] sm:$0xf0]  ;;  %v4199_v9 = vld [vmem:[#allocation2 + $0x38c] sm:$0xf0] }
 0x141   :  { %1366 = vmatmul.bf16.gmra.mxu1 %v4559_v52 }
 0x142   :  { %1461 = vmatmul.bf16.gmra.mxu3 %v4551_v42 }
 0x145   :  { %v669_v44 = vpop.f32.mrf.mxu2 }
 0x146   :  { %v703_v45 = vpack.c.bf16 %v669_v44, %v667_v41  ;;  %v4596_v41 = vor.u32 %v4111_v38, %v3627_v37  ;;  %v4598_v44 = vor.u32 %v4191_v36, %v3947_v21 }
 0x147   :  { %v4557_v46 = vpop.f32.mrf.mxu0 }
 0x148   :  { %1855 = vmatpush.bf16.msrb.mxu0 %v703_v45  ;;  %6378 = vst [vmem:[#allocation16_spill] sm:$0xff] %v4596_v41 }
 0x149   :  { %6379 = vst [vmem:[#allocation17_spill] sm:$0xff] %v4598_v44 }
 0x14c   :  { %1856 = vmatpush.bf16.msrb.mxu0 %v702_v51  ;;  %v681_v51 = vpack.c.bf16 %v4520_v18, %v4510_v12 }
 0x14f   :  { %v574_v61 = vpop.f32.mrf.mxu0 }
 0x150   :  { %1857 = vmatpush.bf16.msrb.mxu0 %v701_v57  ;;  %v684_v39 = vpack.c.bf16 %v574_v61, %v4557_v46  ;;  %v3533_v57 = vld [vmem:[#allocation2 + $0x10] sm:$0xf0]  ;;  %v4195_v61 = vld [vmem:[#allocation2 + $0x36c] sm:$0xf0] }
 0x151   :  { %1371 = vmatmul.bf16.gmra.mxu1 %v4571_v7  ;;  %v4618_v26 = vor.u32 %v4195_v61, %v3963_v54  ;;  %v4097_v54 = vld [vmem:[#allocation2 + $0x64] sm:$0xf] }
 0x152   :  { %1466 = vmatmul.bf16.gmra.mxu3 %v4561_v59  ;;  %v4143_v59 = vld [vmem:[#allocation2 + $0x1cc] sm:$0xf0] }
 0x153   :  { %6382 = vst [vmem:[#allocation20_spill] sm:$0xff] %v4618_v26 }
 0x154   :  { %1858 = vmatpush.bf16.msrb.mxu0 %v700_v62  ;;  %v3643_v62 = vld [vmem:[#allocation2 + $0xe0] sm:$0xf] }
 0x157   :  { %v577_v1 = vpop.f32.mrf.mxu0 }
 0x158   :  { %1859 = vmatpush.bf16.msrb.mxu0 %v699_v0  ;;  %v4115_v0 = vld [vmem:[#allocation2 + $0xec] sm:$0xf0] }
 0x159   :  { %v4614_v43 = vor.u32 %v4115_v0, %v3643_v62  ;;  %v3691_v62 = vld [vmem:[#allocation2 + $0x140] sm:$0xf]  ;;  %v4127_v0 = vld [vmem:[#allocation2 + $0x14c] sm:$0xf0] }
 0x15b   :  { %6380 = vst [vmem:[#allocation18_spill] sm:$0xff] %v4614_v43 }
 0x15c   :  { %1860 = vmatpush.bf16.msrb.mxu0 %v698_v6 }
 0x15f   :  { %v579_v63 = vpop.f32.mrf.mxu0 }
 0x160   :  { %1861 = vmatpush.bf16.msrb.mxu0 %v697_v8  ;;  %v685_v35 = vpack.c.bf16 %v579_v63, %v577_v1  ;;  %v4616_v1 = vor.u32 %v4085_v56, %v3533_v57  ;;  %v4627_v8 = vor.u32 %v4119_v13, %v3659_v11  ;;  %v3581_v56 = vld [vmem:[#allocation2 + $0x70] sm:$0xf0]  ;;  %v4207_v57 = vld [vmem:[#allocation2 + $0x3cc] sm:$0xf0]  ;;  %v4101_v13 = vld [vmem:[#allocation2 + $0x84] sm:$0xf] }
 0x161   :  { %1376 = vmatmul.bf16.gmra.mxu1 %v4581_v19  ;;  %v4124_v19 = vld [vmem:[#allocation2 + $0x134] sm:$0xf0] }
 0x162   :  { %1471 = vmatmul.bf16.gmra.mxu3 %v4575_v10  ;;  %6381 = vst [vmem:[#allocation19_spill] sm:$0xff] %v4616_v1  ;;  %v3755_v10 = vld [vmem:[#allocation2 + $0x1c0] sm:$0xf] }
 0x163   :  { %6383 = vst [vmem:[#allocation21_spill] sm:$0xff] %v4627_v8  ;;  %v4744_v42 = vor.u32 %v4143_v59, %v3755_v10 }
 0x164   :  { %1862 = vmatpush.bf16.msrb.mxu0 %v696_v3  ;;  %v4631_v3 = vor.u32 %v4089_v4, %v3549_v5  ;;  %v4668_v4 = vor.u32 %v4097_v54, %v3581_v56  ;;  %v4105_v56 = vld [vmem:[#allocation2 + $0xa4] sm:$0xf] }
 0x165   :  { %6414 = vst [vmem:[#allocation52_spill] sm:$0xff] %v4744_v42 }
 0x166   :  { %6384 = vst [vmem:[#allocation22_spill] sm:$0xff] %v4631_v3 }
 0x167   :  { %v582_v58 = vpop.f32.mrf.mxu0  ;;  %6392 = vst [vmem:[#allocation30_spill] sm:$0xff] %v4668_v4 }
 0x16f   :  { %v584_v55 = vpop.f32.mrf.mxu0 }
 0x170   :  { %v686_v32 = vpack.c.bf16 %v584_v55, %v582_v58  ;;  %v4633_v58 = vor.u32 %v4199_v9, %v3979_v2  ;;  %v3995_v55 = vld [vmem:[#allocation2 + $0x3a0] sm:$0xf] }
 0x171   :  { %1381 = vmatmul.bf16.gmra.mxu1 %v4587_v50  ;;  %v4650_v21 = vor.u32 %v4203_v25, %v3995_v55 }
 0x172   :  { %1476 = vmatmul.bf16.gmra.mxu3 %v4583_v53  ;;  %6385 = vst [vmem:[#allocation23_spill] sm:$0xff] %v4633_v58 }
 0x173   :  { %6388 = vst [vmem:[#allocation26_spill] sm:$0xff] %v4650_v21 }
 0x177   :  { %v587_v20 = vpop.f32.mrf.mxu0 }
 0x17f   :  { %v589_v29 = vpop.f32.mrf.mxu0 }
 0x180   :  { %v687_v30 = vpack.c.bf16 %v589_v29, %v587_v20  ;;  %v4093_v20 = vld [vmem:[#allocation2 + $0x44] sm:$0xf]  ;;  %v4123_v29 = vld [vmem:[#allocation2 + $0x12c] sm:$0xf0] }
 0x181   :  { %1386 = vmatmul.bf16.gmra.mxu1 %v4596_v41 }
 0x182   :  { %1481 = vmatmul.bf16.gmra.mxu3 %v4589_v27  ;;  %1517 = vmatpush.bf16.msrb.mxu2 %v687_v30  ;;  %v4644_v30 = vor.u32 %v4123_v29, %v3675_v48 }
 0x184   :  { %6386 = vst [vmem:[#allocation24_spill] sm:$0xff] %v4644_v30 }
 0x186   :  { %1518 = vmatpush.bf16.msrb.mxu2 %v686_v32 }
 0x187   :  { %v4593_v28 = vpop.f32.mrf.mxu0 }
 0x18a   :  { %1519 = vmatpush.bf16.msrb.mxu2 %v685_v35  ;;  %v4648_v35 = vor.u32 %v4093_v20, %v3565_v22  ;;  %v3707_v20 = vld [vmem:[#allocation2 + $0x160] sm:$0xf]  ;;  %v4131_v22 = vld [vmem:[#allocation2 + $0x16c] sm:$0xf0] }
 0x18b   :  { %v4684_v25 = vor.u32 %v4131_v22, %v3707_v20  ;;  %v4094_v20 = vld [vmem:[#allocation2 + $0x4c] sm:$0xf]  ;;  %v3573_v22 = vld [vmem:[#allocation2 + $0x58] sm:$0xf0] }
 0x18c   :  { %6387 = vst [vmem:[#allocation25_spill] sm:$0xff] %v4648_v35 }
 0x18d   :  { %6396 = vst [vmem:[#allocation34_spill] sm:$0xff] %v4684_v25 }
 0x18e   :  { %1520 = vmatpush.bf16.msrb.mxu2 %v684_v39 }
 0x18f   :  { %v4601_v45 = vpop.f32.mrf.mxu0 }
 0x191   :  { %1391 = vmatmul.bf16.gmra.mxu1 %v4614_v43  ;;  %v3685_v43 = vld [vmem:[#allocation2 + $0x138] sm:$0xf0] }
 0x192   :  { %1486 = vmatmul.bf16.gmra.mxu3 %v4598_v44  ;;  %1521 = vmatpush.bf16.msrb.mxu2 %v683_v47  ;;  %v3589_v44 = vld [vmem:[#allocation2 + $0x78] sm:$0xf0] }
 0x196   :  { %1522 = vmatpush.bf16.msrb.mxu2 %v682_v49 }
 0x197   :  { %v4608_v46 = vpop.f32.mrf.mxu0 }
 0x19a   :  { %1523 = vmatpush.bf16.msrb.mxu2 %v681_v51  ;;  %v4011_v51 = vld [vmem:[#allocation2 + $0x3c0] sm:$0xf] }
 0x19b   :  { %v4670_v5 = vor.u32 %v4207_v57, %v4011_v51  ;;  %v3613_v57 = vld [vmem:[#allocation2 + $0xb0] sm:$0xf0] }
 0x19d   :  { %6393 = vst [vmem:[#allocation31_spill] sm:$0xff] %v4670_v5 }
 0x19e   :  { %1524 = vmatpush.bf16.msrb.mxu2 %v680_v24  ;;  %v4625_v6 = vpop.f32.mrf.mxu1  ;;  %v4662_v24 = vor.u32 %v4127_v0, %v3691_v62  ;;  %v3539_v62 = vld [vmem:[#allocation2 + $0x8] sm:$0xf]  ;;  %v4088_v0 = vld [vmem:[#allocation2 + $0x14] sm:$0xf0] }
 0x19f   :  { %v599_v12 = vpop.f32.mrf.mxu0 }
 0x1a0   :  { %v689_v49 = vpack.c.bf16 %v599_v12, %v4608_v46  ;;  %6390 = vst [vmem:[#allocation28_spill] sm:$0xff] %v4662_v24  ;;  %v4086_v46 = vld [vmem:[#allocation2 + $0xc] sm:$0xf]  ;;  %v3541_v12 = vld [vmem:[#allocation2 + $0x18] sm:$0xf0] }
 0x1a1   :  { %1525 = vmatmul.bf16.vlgmr.msrb.gmra.mxu2 %v4616_v1  ;;  %1396 = vmatmul.bf16.gmra.mxu1 %v4627_v8  ;;  %v4674_v9 = vor.u32 %v4086_v46, %v3541_v12  ;;  %v3723_v46 = vld [vmem:[#allocation2 + $0x180] sm:$0xf]  ;;  %v4135_v12 = vld [vmem:[#allocation2 + $0x18c] sm:$0xf0]  ;;  %v3669_v8 = vld [vmem:[#allocation2 + $0x118] sm:$0xf0] }
 0x1a2   :  { %1491 = vmatmul.bf16.gmra.mxu3 %v4618_v26  ;;  %v4098_v26 = vld [vmem:[#allocation2 + $0x6c] sm:$0xf] }
 0x1a3   :  { %6394 = vst [vmem:[#allocation32_spill] sm:$0xff] %v4674_v9  ;;  %1863 = vmatmul.bf16.vlgmr.msrb.gmra.mxu0 %v4674_v9  ;;  %v4734_v27 = vor.u32 %v4098_v26, %v3589_v44 }
 0x1a5   :  { %v4623_v18 = vpop.f32.mrf.mxu3  ;;  %6412 = vst [vmem:[#allocation50_spill] sm:$0xff] %v4734_v27 }
 0x1a6   :  { %v4638_v14 = vpop.f32.mrf.mxu1 }
 0x1a7   :  { %v602_v34 = vpop.f32.mrf.mxu0 }
 0x1ad   :  { %v4629_v63 = vpop.f32.mrf.mxu3 }
 0x1ae   :  { %v4642_v23 = vpop.f32.mrf.mxu1 }
 0x1af   :  { %v604_v60 = vpop.f32.mrf.mxu0 }
 0x1b0   :  { %v690_v38 = vpack.c.bf16 %v604_v60, %v602_v34  ;;  %v688_v34 = vpack.c.bf16 %v4601_v45, %v4593_v28  ;;  %v4027_v45 = vld [vmem:[#allocation2 + $0x3e0] sm:$0xf]  ;;  %v3597_v60 = vld [vmem:[#allocation2 + $0x90] sm:$0xf0] }
 0x1b1   :  { %1530 = vmatmul.bf16.gmra.mxu2 %v4631_v3  ;;  %1401 = vmatmul.bf16.gmra.mxu1 %v4644_v30  ;;  %v4688_v29 = vor.u32 %v4101_v13, %v3597_v60  ;;  %v4708_v60 = vor.u32 %v4105_v56, %v3613_v57  ;;  %v4109_v56 = vld [vmem:[#allocation2 + $0xc4] sm:$0xf]  ;;  %v3629_v57 = vld [vmem:[#allocation2 + $0xd0] sm:$0xf0]  ;;  %v3653_v30 = vld [vmem:[#allocation2 + $0xf8] sm:$0xf0] }
 0x1b2   :  { %1496 = vmatmul.bf16.gmra.mxu3 %v4633_v58 }
 0x1b3   :  { %6398 = vst [vmem:[#allocation36_spill] sm:$0xff] %v4688_v29 }
 0x1b4   :  { %6404 = vst [vmem:[#allocation42_spill] sm:$0xff] %v4708_v60 }
 0x1b5   :  { %v4640_v15 = vpop.f32.mrf.mxu3 }
 0x1b6   :  { %v4655_v39 = vpop.f32.mrf.mxu1 }
 0x1b7   :  { %v607_v16 = vpop.f32.mrf.mxu0 }
 0x1bd   :  { %v4646_v32 = vpop.f32.mrf.mxu3 }
 0x1be   :  { %v4660_v61 = vpop.f32.mrf.mxu1 }
 0x1bf   :  { %v609_v36 = vpop.f32.mrf.mxu0 }
 0x1c0   :  { %v691_v37 = vpack.c.bf16 %v609_v36, %v607_v16  ;;  %v4211_v16 = vld [vmem:[#allocation2 + $0x3ec] sm:$0xf0] }
 0x1c1   :  { %1535 = vmatmul.bf16.gmra.mxu2 %v4648_v35  ;;  %1406 = vmatmul.bf16.gmra.mxu1 %v4662_v24  ;;  %v4690_v36 = vor.u32 %v4211_v16, %v4027_v45  ;;  %v4704_v45 = vor.u32 %v4135_v12, %v3723_v46  ;;  %v4710_v16 = vor.u32 %v4088_v0, %v3539_v62  ;;  %v3555_v62 = vld [vmem:[#allocation2 + $0x28] sm:$0xf]  ;;  %v4092_v0 = vld [vmem:[#allocation2 + $0x34] sm:$0xf0]  ;;  %v4155_v24 = vld [vmem:[#allocation2 + $0x22c] sm:$0xf0] }
 0x1c2   :  { %1501 = vmatmul.bf16.gmra.mxu3 %v4650_v21  ;;  %v4730_v58 = vor.u32 %v4092_v0, %v3555_v62  ;;  %v3571_v62 = vld [vmem:[#allocation2 + $0x48] sm:$0xf]  ;;  %v4096_v0 = vld [vmem:[#allocation2 + $0x54] sm:$0xf0] }
 0x1c3   :  { %1690 = vmatpush.bf16.msrb.mxu3 %v691_v37  ;;  %6399 = vst [vmem:[#allocation37_spill] sm:$0xff] %v4690_v36  ;;  %v4090_v37 = vld [vmem:[#allocation2 + $0x2c] sm:$0xf]  ;;  %v4750_v31 = vor.u32 %v4096_v0, %v3571_v62  ;;  %v3587_v62 = vld [vmem:[#allocation2 + $0x68] sm:$0xf] }
 0x1c4   :  { %6402 = vst [vmem:[#allocation40_spill] sm:$0xff] %v4704_v45  ;;  %v4100_v0 = vld [vmem:[#allocation2 + $0x74] sm:$0xf0] }
 0x1c5   :  { %v4657_v47 = vpop.f32.mrf.mxu3  ;;  %6405 = vst [vmem:[#allocation43_spill] sm:$0xff] %v4710_v16  ;;  %v4770_v9 = vor.u32 %v4100_v0, %v3587_v62  ;;  %v3677_v62 = vld [vmem:[#allocation2 + $0x130] sm:$0xf0]  ;;  %v3603_v0 = vld [vmem:[#allocation2 + $0x88] sm:$0xf] }
 0x1c6   :  { %6389 = vst [vmem:[#allocation27_spill] sm:$0xff] %v4657_v47  ;;  %v4678_v11 = vpop.f32.mrf.mxu1 }
 0x1c7   :  { %1691 = vmatpush.bf16.msrb.mxu3 %v690_v38  ;;  %v3557_v38 = vld [vmem:[#allocation2 + $0x38] sm:$0xf0]  ;;  %6411 = vst [vmem:[#allocation49_spill] sm:$0xff] %v4730_v58 }
 0x1c8   :  { %6417 = vst [vmem:[#allocation55_spill] sm:$0xff] %v4750_v31 }
 0x1c9   :  { %6423 = vst [vmem:[#allocation61_spill] sm:$0xff] %v4770_v9 }
 0x1cb   :  { %1692 = vmatpush.bf16.msrb.mxu3 %v689_v49  ;;  %v4694_v49 = vor.u32 %v4090_v37, %v3557_v38  ;;  %v4714_v37 = vor.u32 %v4094_v20, %v3573_v22  ;;  %v4728_v22 = vor.u32 %v4109_v56, %v3629_v57  ;;  %v4113_v56 = vld [vmem:[#allocation2 + $0xe4] sm:$0xf]  ;;  %v3645_v57 = vld [vmem:[#allocation2 + $0xf0] sm:$0xf0] }
 0x1cc   :  { %v4748_v26 = vor.u32 %v4113_v56, %v3645_v57  ;;  %v4117_v56 = vld [vmem:[#allocation2 + $0x104] sm:$0xf]  ;;  %v3661_v57 = vld [vmem:[#allocation2 + $0x110] sm:$0xf0] }
 0x1cd   :  { %v4664_v2 = vpop.f32.mrf.mxu3  ;;  %6400 = vst [vmem:[#allocation38_spill] sm:$0xff] %v4694_v49  ;;  %1868 = vmatmul.bf16.gmra.mxu0 %v4694_v49 }
 0x1ce   :  { %6391 = vst [vmem:[#allocation29_spill] sm:$0xff] %v4664_v2  ;;  %v4682_v55 = vpop.f32.mrf.mxu1 }
 0x1cf   :  { %1693 = vmatpush.bf16.msrb.mxu3 %v688_v34  ;;  %6406 = vst [vmem:[#allocation44_spill] sm:$0xff] %v4714_v37 }
 0x1d0   :  { %6410 = vst [vmem:[#allocation48_spill] sm:$0xff] %v4728_v22 }
 0x1d1   :  { %1540 = vmatmul.bf16.gmra.mxu2 %v4668_v4  ;;  %1411 = vmatmul.bf16.gmra.mxu1 %v4684_v25  ;;  %6416 = vst [vmem:[#allocation54_spill] sm:$0xff] %v4748_v26  ;;  %v3803_v4 = vld [vmem:[#allocation2 + $0x220] sm:$0xf] }
 0x1d2   :  { %1506 = vmatmul.bf16.gmra.mxu3 %v4670_v5  ;;  %v4139_v5 = vld [vmem:[#allocation2 + $0x1ac] sm:$0xf0] }
 0x1d5   :  { %v4680_v28 = vpop.f32.mrf.mxu3 }
 0x1d6   :  { %6395 = vst [vmem:[#allocation33_spill] sm:$0xff] %v4680_v28  ;;  %v4698_v51 = vpop.f32.mrf.mxu1 }
 0x1dd   :  { %v4686_v48 = vpop.f32.mrf.mxu3  ;;  %1873 = vmatmul.bf16.gmra.mxu0 %v4714_v37  ;;  %v4147_v37 = vld [vmem:[#allocation2 + $0x1ec] sm:$0xf0] }
 0x1de   :  { %6397 = vst [vmem:[#allocation35_spill] sm:$0xff] %v4686_v48  ;;  %v4702_v34 = vpop.f32.mrf.mxu1 }
 0x1e1   :  { %1545 = vmatmul.bf16.gmra.mxu2 %v4688_v29  ;;  %1416 = vmatmul.bf16.gmra.mxu1 %v4704_v45  ;;  %v3637_v29 = vld [vmem:[#allocation2 + $0xd8] sm:$0xf0] }
 0x1e2   :  { %1511 = vmatmul.bf16.gmra.mxu3 %v4690_v36  ;;  %v3739_v36 = vld [vmem:[#allocation2 + $0x1a0] sm:$0xf] }
 0x1e3   :  { %v4724_v21 = vor.u32 %v4139_v5, %v3739_v36 }
 0x1e5   :  { %v4700_v54 = vpop.f32.mrf.mxu3  ;;  %6408 = vst [vmem:[#allocation46_spill] sm:$0xff] %v4724_v21 }
 0x1e6   :  { %6401 = vst [vmem:[#allocation39_spill] sm:$0xff] %v4700_v54  ;;  %v4718_v38 = vpop.f32.mrf.mxu1  ;;  %v3683_v54 = vld [vmem:[#allocation2 + $0x128] sm:$0xf] }
 0x1e7   :  { %v4926_v2 = vor.u32 %v4124_v19, %v3683_v54 }
 0x1ed   :  { %v4706_v13 = vpop.f32.mrf.mxu3  ;;  %1878 = vmatmul.bf16.gmra.mxu0 %v4734_v27 }
 0x1ee   :  { %6403 = vst [vmem:[#allocation41_spill] sm:$0xff] %v4706_v13  ;;  %v4722_v12 = vpop.f32.mrf.mxu1  ;;  %v3757_v13 = vld [vmem:[#allocation2 + $0x1d0] sm:$0xf0] }
 0x1f1   :  { %1550 = vmatmul.bf16.gmra.mxu2 %v4708_v60  ;;  %1421 = vmatmul.bf16.gmra.mxu1 %v4724_v21  ;;  %v3605_v21 = vld [vmem:[#allocation2 + $0x98] sm:$0xf0]  ;;  %v4110_v60 = vld [vmem:[#allocation2 + $0xcc] sm:$0xf] }
 0x1f2   :  { %1694 = vmatmul.bf16.vlgmr.msrb.gmra.mxu3 %v4710_v16  ;;  %v4754_v45 = vor.u32 %v4102_v17, %v3605_v21  ;;  %v4768_v21 = vor.u32 %v4117_v56, %v3661_v57  ;;  %v4121_v57 = vld [vmem:[#allocation2 + $0x124] sm:$0xf]  ;;  %v4798_v25 = vor.u32 %v4110_v60, %v3637_v29  ;;  %v4810_v29 = vor.u32 %v4155_v24, %v3803_v4 }
 0x1f4   :  { %6418 = vst [vmem:[#allocation56_spill] sm:$0xff] %v4754_v45 }
 0x1f5   :  { %v4720_v46 = vpop.f32.mrf.mxu3  ;;  %6422 = vst [vmem:[#allocation60_spill] sm:$0xff] %v4768_v21 }
 0x1f6   :  { %6407 = vst [vmem:[#allocation45_spill] sm:$0xff] %v4720_v46  ;;  %v4738_v5 = vpop.f32.mrf.mxu1  ;;  %v3701_v46 = vld [vmem:[#allocation2 + $0x158] sm:$0xf0] }
 0x1f7   :  { %6430 = vst [vmem:[#allocation68_spill] sm:$0xff] %v4798_v25 }
 0x1f8   :  { %6432 = vst [vmem:[#allocation70_spill] sm:$0xff] %v4810_v29 }
 0x1fd   :  { %v4726_v20 = vpop.f32.mrf.mxu3  ;;  %1883 = vmatmul.bf16.gmra.mxu0 %v4754_v45  ;;  %v4106_v45 = vld [vmem:[#allocation2 + $0xac] sm:$0xf] }
 0x1fe   :  { %6409 = vst [vmem:[#allocation47_spill] sm:$0xff] %v4726_v20  ;;  %v4742_v53 = vpop.f32.mrf.mxu1 }
 0x201   :  { %1555 = vmatmul.bf16.gmra.mxu2 %v4728_v22  ;;  %1426 = vmatmul.bf16.gmra.mxu1 %v4744_v42  ;;  %v3771_v42 = vld [vmem:[#allocation2 + $0x1e0] sm:$0xf] }
 0x202   :  { %1699 = vmatmul.bf16.gmra.mxu3 %v4730_v58  ;;  %v4764_v49 = vor.u32 %v4147_v37, %v3771_v42 }
 0x204   :  { %6420 = vst [vmem:[#allocation58_spill] sm:$0xff] %v4764_v49 }
 0x205   :  { %v4740_v36 = vpop.f32.mrf.mxu3 }
 0x206   :  { %6413 = vst [vmem:[#allocation51_spill] sm:$0xff] %v4740_v36  ;;  %v4758_v59 = vpop.f32.mrf.mxu1 }
 0x20d   :  { %v4746_v44 = vpop.f32.mrf.mxu3 }
 0x20e   :  { %6415 = vst [vmem:[#allocation53_spill] sm:$0xff] %v4746_v44  ;;  %v4762_v27 = vpop.f32.mrf.mxu1 }
 0x211   :  { %1560 = vmatmul.bf16.gmra.mxu2 %v4748_v26  ;;  %1431 = vmatmul.bf16.gmra.mxu1 %v4764_v49  ;;  %v4104_v49 = vld [vmem:[#allocation2 + $0x94] sm:$0xf0]  ;;  %v3787_v26 = vld [vmem:[#allocation2 + $0x200] sm:$0xf] }
 0x212   :  { %1704 = vmatmul.bf16.gmra.mxu3 %v4750_v31  ;;  %v3621_v31 = vld [vmem:[#allocation2 + $0xb8] sm:$0xf0]  ;;  %v4794_v22 = vor.u32 %v4104_v49, %v3603_v0  ;;  %v4125_v49 = vld [vmem:[#allocation2 + $0x144] sm:$0xf]  ;;  %v3619_v0 = vld [vmem:[#allocation2 + $0xa8] sm:$0xf] }
 0x213   :  { %v4774_v58 = vor.u32 %v4106_v45, %v3621_v31 }
 0x214   :  { %6429 = vst [vmem:[#allocation67_spill] sm:$0xff] %v4794_v22 }
 0x215   :  { %v4760_v10 = vpop.f32.mrf.mxu3  ;;  %6424 = vst [vmem:[#allocation62_spill] sm:$0xff] %v4774_v58  ;;  %1888 = vmatmul.bf16.gmra.mxu0 %v4774_v58  ;;  %v4792_v58 = vor.u32 %v4121_v57, %v3677_v62  ;;  %v3693_v62 = vld [vmem:[#allocation2 + $0x150] sm:$0xf0] }
 0x216   :  { %6419 = vst [vmem:[#allocation57_spill] sm:$0xff] %v4760_v10  ;;  %v4778_v42 = vpop.f32.mrf.mxu1 }
 0x217   :  { %6428 = vst [vmem:[#allocation66_spill] sm:$0xff] %v4792_v58 }
 0x21d   :  { %v4766_v17 = vpop.f32.mrf.mxu3 }
 0x21e   :  { %6421 = vst [vmem:[#allocation59_spill] sm:$0xff] %v4766_v17  ;;  %v4784_v16 = vpop.f32.mrf.mxu1 }
 0x221   :  { %1565 = vmatmul.bf16.gmra.mxu2 %v4768_v21  ;;  %v4151_v21 = vld [vmem:[#allocation2 + $0x20c] sm:$0xf0] }
 0x222   :  { %1709 = vmatmul.bf16.gmra.mxu3 %v4770_v9  ;;  %v4788_v45 = vor.u32 %v4151_v21, %v3787_v26 }
 0x224   :  { %v4780_v37 = vpop.f32.mrf.mxu2  ;;  %6426 = vst [vmem:[#allocation64_spill] sm:$0xff] %v4788_v45  ;;  %1436 = vmatmul.bf16.gmra.mxu1 %v4788_v45  ;;  %v4108_v45 = vld [vmem:[#allocation2 + $0xb4] sm:$0xf0] }
 0x225   :  { %v4782_v56 = vpop.f32.mrf.mxu3  ;;  %1893 = vmatmul.bf16.gmra.mxu0 %v4798_v25 }
 0x226   :  { %6425 = vst [vmem:[#allocation63_spill] sm:$0xff] %v4782_v56  ;;  %v4802_v26 = vpop.f32.mrf.mxu1 }
 0x22c   :  { %v4786_v31 = vpop.f32.mrf.mxu2 }
 0x22d   :  { %v4790_v9 = vpop.f32.mrf.mxu3 }
 0x22e   :  { %6427 = vst [vmem:[#allocation65_spill] sm:$0xff] %v4790_v9  ;;  %v4816_v25 = vpop.f32.mrf.mxu1  ;;  %v4159_v9 = vld [vmem:[#allocation2 + $0x24c] sm:$0xf0] }
 0x231   :  { %1570 = vmatmul.bf16.gmra.mxu2 %v4792_v58  ;;  %v4818_v58 = vor.u32 %v4108_v45, %v3619_v0  ;;  %v4129_v45 = vld [vmem:[#allocation2 + $0x164] sm:$0xf]  ;;  %v3635_v0 = vld [vmem:[#allocation2 + $0xc8] sm:$0xf] }
 0x232   :  { %1714 = vmatmul.bf16.gmra.mxu3 %v4794_v22  ;;  %v4814_v22 = vor.u32 %v4125_v49, %v3693_v62  ;;  %v3709_v62 = vld [vmem:[#allocation2 + $0x170] sm:$0xf0] }
 0x233   :  { %6435 = vst [vmem:[#allocation73_spill] sm:$0xff] %v4818_v58 }
 0x234   :  { %v4804_v21 = vpop.f32.mrf.mxu2  ;;  %6434 = vst [vmem:[#allocation72_spill] sm:$0xff] %v4814_v22  ;;  %1441 = vmatmul.bf16.gmra.mxu1 %v4810_v29  ;;  %v4112_v29 = vld [vmem:[#allocation2 + $0xd4] sm:$0xf0] }
 0x235   :  { %v4806_v57 = vpop.f32.mrf.mxu3 }
 0x236   :  { %6431 = vst [vmem:[#allocation69_spill] sm:$0xff] %v4806_v57  ;;  %v4114_v57 = vld [vmem:[#allocation2 + $0xec] sm:$0xf]  ;;  %v4830_v49 = vpop.f32.mrf.mxu1 }
 0x237   :  { %v4822_v3 = vor.u32 %v4114_v57, %v3653_v30 }
 0x239   :  { %6436 = vst [vmem:[#allocation74_spill] sm:$0xff] %v4822_v3  ;;  %1898 = vmatmul.bf16.gmra.mxu0 %v4822_v3  ;;  %v4840_v3 = vor.u32 %v4112_v29, %v3635_v0  ;;  %v3651_v0 = vld [vmem:[#allocation2 + $0xe8] sm:$0xf] }
 0x23b   :  { %6441 = vst [vmem:[#allocation79_spill] sm:$0xff] %v4840_v3 }
 0x23c   :  { %v4808_v35 = vpop.f32.mrf.mxu2 }
 0x23d   :  { %v4812_v60 = vpop.f32.mrf.mxu3 }
 0x23e   :  { %6433 = vst [vmem:[#allocation71_spill] sm:$0xff] %v4812_v60  ;;  %v3819_v60 = vld [vmem:[#allocation2 + $0x240] sm:$0xf]  ;;  %v4846_v1 = vpop.f32.mrf.mxu1 }
 0x23f   :  { %v4834_v30 = vor.u32 %v4159_v9, %v3819_v60 }
 0x241   :  { %1575 = vmatmul.bf16.gmra.mxu2 %v4814_v22  ;;  %6438 = vst [vmem:[#allocation76_spill] sm:$0xff] %v4834_v30  ;;  %v4118_v22 = vld [vmem:[#allocation2 + $0x10c] sm:$0xf] }
 0x242   :  { %1719 = vmatmul.bf16.gmra.mxu3 %v4818_v58  ;;  %v4838_v58 = vor.u32 %v4129_v45, %v3709_v62  ;;  %v4848_v17 = vor.u32 %v4118_v22, %v3669_v8  ;;  %v4133_v45 = vld [vmem:[#allocation2 + $0x184] sm:$0xf]  ;;  %v3725_v62 = vld [vmem:[#allocation2 + $0x190] sm:$0xf0]  ;;  %v4246_v22 = vld [vmem:[%s6253_s4 + $0x8] sm:$0xff] }
 0x243   :  { %v4862_v8 = vor.u32 %v4133_v45, %v3725_v62  ;;  %2239 = vmatpush.bf16.msrb.mxu1 %v4246_v22  ;;  %v4245_v45 = vld [vmem:[%s6253_s4] sm:$0xff] }
 0x244   :  { %v4826_v24 = vpop.f32.mrf.mxu2  ;;  %6440 = vst [vmem:[#allocation78_spill] sm:$0xff] %v4838_v58  ;;  %1446 = vmatmul.bf16.gmra.mxu1 %v4834_v30  ;;  %v4116_v30 = vld [vmem:[#allocation2 + $0xf4] sm:$0xf0] }
 0x245   :  { %v4828_v4 = vpop.f32.mrf.mxu3  ;;  %6442 = vst [vmem:[#allocation80_spill] sm:$0xff] %v4848_v17 }
 0x246   :  { %6437 = vst [vmem:[#allocation75_spill] sm:$0xff] %v4828_v4  ;;  %v4843_v4 = vpop.f32.mrf.mxu0 }
 0x247   :  { %6445 = vst [vmem:[#allocation83_spill] sm:$0xff] %v4862_v8  ;;  %2240 = vmatpush.bf16.msrb.mxu1 %v4245_v45 }
 0x249   :  { %1903 = vmatmul.bf16.gmra.mxu0 %v4848_v17  ;;  %v4867_v17 = vor.u32 %v4116_v30, %v3651_v0 }
 0x24b   :  { %6446 = vst [vmem:[#allocation84_spill] sm:$0xff] %v4867_v17 }
 0x24c   :  { %v4832_v56 = vpop.f32.mrf.mxu2 }
 0x24d   :  { %v4836_v57 = vpop.f32.mrf.mxu3 }
 0x24e   :  { %6439 = vst [vmem:[#allocation77_spill] sm:$0xff] %v4836_v57  ;;  %v1866_v60 = vpop.f32.mrf.mxu0  ;;  %v4856_v57 = vpop.f32.mrf.mxu1 }
 0x251   :  { %1580 = vmatmul.bf16.gmra.mxu2 %v4838_v58 }
 0x252   :  { %1724 = vmatmul.bf16.gmra.mxu3 %v4840_v3 }
 0x254   :  { %v4852_v9 = vpop.f32.mrf.mxu2 }
 0x255   :  { %v4854_v29 = vpop.f32.mrf.mxu3 }
 0x256   :  { %6443 = vst [vmem:[#allocation81_spill] sm:$0xff] %v4854_v29  ;;  %v4869_v3 = vpop.f32.mrf.mxu0  ;;  %v4122_v29 = vld [vmem:[#allocation2 + $0x12c] sm:$0xf]  ;;  %v4883_v0 = vpop.f32.mrf.mxu1 }
 0x257   :  { %v4872_v44 = vor.u32 %v4122_v29, %v3685_v43  ;;  %v3741_v43 = vld [vmem:[#allocation2 + $0x1b0] sm:$0xf0]  ;;  %v3667_v29 = vld [vmem:[#allocation2 + $0x108] sm:$0xf] }
 0x259   :  { %6447 = vst [vmem:[#allocation85_spill] sm:$0xff] %v4872_v44  ;;  %1908 = vmatmul.bf16.gmra.mxu0 %v4872_v44 }
 0x25c   :  { %v4858_v58 = vpop.f32.mrf.mxu2 }
 0x25d   :  { %v4860_v10 = vpop.f32.mrf.mxu3 }
 0x25e   :  { %6444 = vst [vmem:[#allocation82_spill] sm:$0xff] %v4860_v10  ;;  %v4885_v22 = vpop.f32.mrf.mxu0  ;;  %v4120_v10 = vld [vmem:[#allocation2 + $0x114] sm:$0xf0]  ;;  %v4895_v45 = vpop.f32.mrf.mxu1 }
 0x25f   :  { %v4893_v44 = vor.u32 %v4120_v10, %v3667_v29 }
 0x261   :  { %1585 = vmatmul.bf16.gmra.mxu2 %v4862_v8  ;;  %v4137_v8 = vld [vmem:[#allocation2 + $0x1a4] sm:$0xf]  ;;  %6451 = vst [vmem:[#allocation89_spill] sm:$0xff] %v4893_v44 }
 0x262   :  { %1729 = vmatmul.bf16.gmra.mxu3 %v4867_v17  ;;  %v4891_v17 = vor.u32 %v4137_v8, %v3741_v43  ;;  %v4907_v8 = vld [vmem:[%s6252_s3] ss:$0 sm:$0xff] }
 0x263   :  { %v1358_v29 = vadd.f32 %v4907_v8, %v4625_v6 }
 0x264   :  { %v4879_v30 = vpop.f32.mrf.mxu2  ;;  %6450 = vst [vmem:[#allocation88_spill] sm:$0xff] %v4891_v17 }
 0x265   :  { %v4881_v62 = vpop.f32.mrf.mxu3 }
 0x266   :  { %6448 = vst [vmem:[#allocation86_spill] sm:$0xff] %v4881_v62  ;;  %v4897_v20 = vpop.f32.mrf.mxu0  ;;  %v4126_v62 = vld [vmem:[#allocation2 + $0x14c] sm:$0xf] }
 0x267   :  { %v4900_v50 = vor.u32 %v4126_v62, %v3701_v46  ;;  %v4916_v46 = vpop.f32.mrf.mxu1  ;;  %v1360_v62 = vadd.f32 %v4907_v8, %v4638_v14  ;;  %v3717_v14 = vld [vmem:[#allocation2 + $0x178] sm:$0xf0] }
 0x269   :  { %6452 = vst [vmem:[#allocation90_spill] sm:$0xff] %v4900_v50  ;;  %1913 = vmatmul.bf16.gmra.mxu0 %v4900_v50  ;;  %v1529_v48 = vadd.f32 %v4786_v31, %v1360_v62 }
 0x26c   :  { %v4887_v36 = vpop.f32.mrf.mxu2 }
 0x26d   :  { %v4889_v41 = vpop.f32.mrf.mxu3 }
 0x26e   :  { %6449 = vst [vmem:[#allocation87_spill] sm:$0xff] %v4889_v41  ;;  %v1527_v41 = vadd.f32 %v4780_v37, %v1358_v29 }
 0x271   :  { %1590 = vmatmul.bf16.gmra.mxu2 %v4891_v17  ;;  %v4914_v17 = vpop.f32.mrf.mxu0 }
 0x272   :  { %1734 = vmatmul.bf16.gmra.mxu3 %v4893_v44  ;;  %v4141_v44 = vld [vmem:[#allocation2 + $0x1c4] sm:$0xf] }
 0x273   :  { %v4923_v6 = vor.u32 %v4141_v44, %v3757_v13  ;;  %v4934_v13 = vpop.f32.mrf.mxu1 }
 0x274   :  { %v4909_v10 = vpop.f32.mrf.mxu2 }
 0x275   :  { %v1695_v43 = vpop.f32.mrf.mxu3  ;;  %6453 = vst [vmem:[#allocation91_spill] sm:$0xff] %v4923_v6 }
 0x276   :  { %v1696_v50 = vadd.f32 %v1695_v43, %v1527_v41  ;;  %v4130_v41 = vld [vmem:[#allocation2 + $0x16c] sm:$0xf] }
 0x277   :  { %v4931_v43 = vor.u32 %v4130_v41, %v3717_v14  ;;  %v4128_v41 = vld [vmem:[#allocation2 + $0x154] sm:$0xf0] }
 0x278   :  { %v1865_v37 = vadd.f32 %v4843_v4, %v1696_v50 }
 0x279   :  { %v4928_v52 = vpop.f32.mrf.mxu0  ;;  %6454 = vst [vmem:[#allocation92_spill] sm:$0xff] %v4931_v43  ;;  %1918 = vmatmul.bf16.gmra.mxu0 %v4931_v43 }
 0x27a   :  { %v2024_v31 = vmax.f32 %v1865_v37, 0.0  ;;  %v3773_v37 = vld [vmem:[#allocation2 + $0x1f0] sm:$0xf0] }
 0x27c   :  { %v4921_v28 = vpop.f32.mrf.mxu2 }
 0x27d   :  { %v1697_v7 = vpop.f32.mrf.mxu3 }
 0x27e   :  { %v1698_v29 = vadd.f32 %v1697_v7, %v1529_v48  ;;  %v1363_v48 = vadd.f32 %v4907_v8, %v4642_v23 }
 0x280   :  { %v1867_v47 = vadd.f32 %v1866_v60, %v1698_v29  ;;  %v1532_v54 = vadd.f32 %v4804_v21, %v1363_v48  ;;  %v4145_v60 = vld [vmem:[#allocation2 + $0x1e4] sm:$0xf]  ;;  %v3699_v29 = vld [vmem:[#allocation2 + $0x148] sm:$0xf] }
 0x281   :  { %1595 = vmatmul.bf16.gmra.mxu2 %v4923_v6  ;;  %v4943_v44 = vpop.f32.mrf.mxu0  ;;  %v4950_v23 = vor.u32 %v4145_v60, %v3773_v37  ;;  %v4955_v43 = vor.u32 %v4128_v41, %v3699_v29  ;;  %v3733_v6 = vld [vmem:[#allocation2 + $0x198] sm:$0xf0] }
 0x282   :  { %v2025_v62 = vmax.f32 %v1867_v47, 0.0  ;;  %1739 = vmatmul.bf16.gmra.mxu3 %v4926_v2  ;;  %v1365_v47 = vadd.f32 %v4907_v8, %v4655_v39 }
 0x283   :  { %6455 = vst [vmem:[#allocation93_spill] sm:$0xff] %v4950_v23 }
 0x284   :  { %v2088_v7 = vpack.c.bf16 %v2025_v62, %v2024_v31  ;;  %v4937_v19 = vpop.f32.mrf.mxu2  ;;  %v1534_v14 = vadd.f32 %v4808_v35, %v1365_v47  ;;  %6456 = vst [vmem:[#allocation94_spill] sm:$0xff] %v4955_v43 }
 0x285   :  { %v1700_v50 = vpop.f32.mrf.mxu3 }
 0x286   :  { %4049 = vmatmul.msk.bf16.vlgmr.msrb.gmra.mxu1 %vm2136_vm2, %v2088_v7  ;;  %v1701_v4 = vadd.f32 %v1700_v50, %v1532_v54  ;;  %v4952_v7 = vpop.f32.mrf.mxu1  ;;  %v4134_v54 = vld [vmem:[#allocation2 + $0x18c] sm:$0xf] }
 0x287   :  { %v4961_v35 = vor.u32 %v4134_v54, %v3733_v6  ;;  %v4132_v54 = vld [vmem:[#allocation2 + $0x174] sm:$0xf0] }
 0x288   :  { %v1870_v21 = vadd.f32 %v4869_v3, %v1701_v4 }
 0x289   :  { %v4958_v50 = vpop.f32.mrf.mxu0  ;;  %6457 = vst [vmem:[#allocation95_spill] sm:$0xff] %v4961_v35  ;;  %1923 = vmatmul.bf16.gmra.mxu0 %v4961_v35 }
 0x28a   :  { %v2026_v47 = vmax.f32 %v1870_v21, 0.0  ;;  %v4149_v21 = vld [vmem:[#allocation2 + $0x204] sm:$0xf] }
 0x28c   :  { %v4948_v31 = vpop.f32.mrf.mxu2 }
 0x28d   :  { %v1702_v62 = vpop.f32.mrf.mxu3 }
 0x28e   :  { %v1703_v48 = vadd.f32 %v1702_v62, %v1534_v14  ;;  %v4970_v29 = vpop.f32.mrf.mxu1  ;;  %v1370_v14 = vadd.f32 %v4907_v8, %v4678_v11 }
 0x290   :  { %v1872_v39 = vadd.f32 %v4885_v22, %v1703_v48  ;;  %v1368_v22 = vadd.f32 %v4907_v8, %v4660_v61  ;;  %v3789_v48 = vld [vmem:[#allocation2 + $0x210] sm:$0xf0] }
 0x291   :  { %1600 = vmatmul.bf16.gmra.mxu2 %v4950_v23  ;;  %v4973_v41 = vpop.f32.mrf.mxu0 }
 0x292   :  { %v2027_v60 = vmax.f32 %v1872_v39, 0.0  ;;  %1744 = vmatmul.bf16.gmra.mxu3 %v4955_v43  ;;  %v1537_v6 = vadd.f32 %v4826_v24, %v1368_v22  ;;  %v3715_v39 = vld [vmem:[#allocation2 + $0x168] sm:$0xf] }
 0x293   :  { %v4983_v22 = vor.u32 %v4132_v54, %v3715_v39 }
 0x294   :  { %v2089_v3 = vpack.c.bf16 %v2027_v60, %v2026_v47  ;;  %v4965_v4 = vpop.f32.mrf.mxu2  ;;  %v1539_v47 = vadd.f32 %v4832_v56, %v1370_v14 }
 0x295   :  { %v1705_v37 = vpop.f32.mrf.mxu3  ;;  %6459 = vst [vmem:[#allocation97_spill] sm:$0xff] %v4983_v22 }
 0x296   :  { %4050 = vmatmul.msk.bf16.gmra.mxu1 %vm2136_vm2, %v2089_v3  ;;  %v1706_v62 = vadd.f32 %v1705_v37, %v1537_v6  ;;  %v4980_v3 = vor.u32 %v4149_v21, %v3789_v48  ;;  %v4138_v37 = vld [vmem:[#allocation2 + $0x1ac] sm:$0xf]  ;;  %v3749_v6 = vld [vmem:[#allocation2 + $0x1b8] sm:$0xf0]  ;;  %v4989_v43 = vpop.f32.mrf.mxu1  ;;  %v1373_v48 = vadd.f32 %v4907_v8, %v4682_v55 }
 0x297   :  { %v4991_v56 = vor.u32 %v4138_v37, %v3749_v6  ;;  %v4136_v37 = vld [vmem:[#allocation2 + $0x194] sm:$0xf0] }
 0x298   :  { %6458 = vst [vmem:[#allocation96_spill] sm:$0xff] %v4980_v3  ;;  %v1875_v35 = vadd.f32 %v4897_v20, %v1706_v62  ;;  %v1542_v39 = vadd.f32 %v4852_v9, %v1373_v48 }
 0x299   :  { %v4986_v11 = vpop.f32.mrf.mxu0  ;;  %6460 = vst [vmem:[#allocation98_spill] sm:$0xff] %v4991_v56  ;;  %1928 = vmatmul.bf16.gmra.mxu0 %v4991_v56 }
 0x29a   :  { %v2028_v14 = vmax.f32 %v1875_v35, 0.0 }
 0x29c   :  { %v4978_v60 = vpop.f32.mrf.mxu2 }
 0x29d   :  { %v1707_v61 = vpop.f32.mrf.mxu3 }
 0x29e   :  { %v1708_v24 = vadd.f32 %v1707_v61, %v1539_v47  ;;  %v4153_v47 = vld [vmem:[#allocation2 + $0x224] sm:$0xf]  ;;  %v3805_v61 = vld [vmem:[#allocation2 + $0x230] sm:$0xf0]  ;;  %v5005_v6 = vpop.f32.mrf.mxu1 }
 0x2a0   :  { %v1877_v23 = vadd.f32 %v4914_v17, %v1708_v24  ;;  %v3731_v24 = vld [vmem:[#allocation2 + $0x188] sm:$0xf] }
 0x2a1   :  { %1605 = vmatmul.bf16.gmra.mxu2 %v4980_v3  ;;  %v5001_v54 = vpop.f32.mrf.mxu0  ;;  %v5013_v56 = vor.u32 %v4136_v37, %v3731_v24  ;;  %v3765_v3 = vld [vmem:[#allocation2 + $0x1d8] sm:$0xf0]  ;;  %v1380_v37 = vadd.f32 %v4907_v8, %v4718_v38 }
 0x2a2   :  { %v2029_v21 = vmax.f32 %v1877_v23, 0.0  ;;  %1749 = vmatmul.bf16.gmra.mxu3 %v4983_v22  ;;  %v1375_v23 = vadd.f32 %v4907_v8, %v4698_v51 }
 0x2a4   :  { %v2090_v20 = vpack.c.bf16 %v2029_v21, %v2028_v14  ;;  %v4995_v62 = vpop.f32.mrf.mxu2  ;;  %v1544_v14 = vadd.f32 %v4858_v58, %v1375_v23 }
 0x2a5   :  { %v1710_v17 = vpop.f32.mrf.mxu3 }
 0x2a6   :  { %4051 = vmatmul.msk.bf16.gmra.mxu1 %vm2136_vm2, %v2090_v20  ;;  %v1711_v35 = vadd.f32 %v1710_v17, %v1542_v39  ;;  %v5010_v20 = vor.u32 %v4153_v47, %v3805_v61  ;;  %v4142_v39 = vld [vmem:[#allocation2 + $0x1cc] sm:$0xf]  ;;  %v5025_v61 = vpop.f32.mrf.mxu1 }
 0x2a7   :  { %v5019_v22 = vor.u32 %v4142_v39, %v3765_v3  ;;  %v1549_v39 = vadd.f32 %v4887_v36, %v1380_v37 }
 0x2a8   :  { %6461 = vst [vmem:[#allocation99_spill] sm:$0xff] %v5010_v20  ;;  %v1880_v9 = vadd.f32 %v4928_v52, %v1711_v35 }
 0x2a9   :  { %v5016_v17 = vpop.f32.mrf.mxu0  ;;  %6462 = vst [vmem:[#allocation100_spill] sm:$0xff] %v5019_v22  ;;  %1933 = vmatmul.bf16.gmra.mxu0 %v5019_v22 }
 0x2aa   :  { %v2030_v58 = vmax.f32 %v1880_v9, 0.0  ;;  %v3821_v9 = vld [vmem:[#allocation2 + $0x250] sm:$0xf0] }
 0x2ac   :  { %v5008_v21 = vpop.f32.mrf.mxu2 }
 0x2ad   :  { %v1712_v55 = vpop.f32.mrf.mxu3 }
 0x2ae   :  { %v1713_v48 = vadd.f32 %v1712_v55, %v1544_v14  ;;  %v4157_v55 = vld [vmem:[#allocation2 + $0x244] sm:$0xf]  ;;  %v5043_v22 = vpop.f32.mrf.mxu1 }
 0x2b0   :  { %v1882_v51 = vadd.f32 %v4943_v44, %v1713_v48  ;;  %v1378_v44 = vadd.f32 %v4907_v8, %v4702_v34  ;;  %v3747_v48 = vld [vmem:[#allocation2 + $0x1a8] sm:$0xf]  ;;  %v5038_v34 = vor.u32 %v4157_v55, %v3821_v9 }
 0x2b1   :  { %1610 = vmatmul.bf16.gmra.mxu2 %v5010_v20  ;;  %v5031_v24 = vpop.f32.mrf.mxu0  ;;  %v3781_v20 = vld [vmem:[#allocation2 + $0x1f8] sm:$0xf0] }
 0x2b2   :  { %v2031_v23 = vmax.f32 %v1882_v51, 0.0  ;;  %1754 = vmatmul.bf16.gmra.mxu3 %v5013_v56  ;;  %v1547_v3 = vadd.f32 %v4879_v30, %v1378_v44  ;;  %v4140_v51 = vld [vmem:[#allocation2 + $0x1b4] sm:$0xf0]  ;;  %6463 = vst [vmem:[#allocation101_spill] sm:$0xff] %v5038_v34 }
 0x2b3   :  { %v5041_v44 = vor.u32 %v4140_v51, %v3747_v48 }
 0x2b4   :  { %v2091_v52 = vpack.c.bf16 %v2031_v23, %v2030_v58  ;;  %v5023_v35 = vpop.f32.mrf.mxu2 }
 0x2b5   :  { %v1715_v47 = vpop.f32.mrf.mxu3  ;;  %6464 = vst [vmem:[#allocation102_spill] sm:$0xff] %v5041_v44 }
 0x2b6   :  { %4052 = vmatmul.msk.bf16.gmra.mxu1 %vm2136_vm2, %v2091_v52  ;;  %v1716_v14 = vadd.f32 %v1715_v47, %v1547_v3  ;;  %v4146_v3 = vld [vmem:[#allocation2 + $0x1ec] sm:$0xf] }
 0x2b7   :  { %v5049_v36 = vor.u32 %v4146_v3, %v3781_v20  ;;  %v5061_v20 = vpop.f32.mrf.mxu1  ;;  %v4144_v3 = vld [vmem:[#allocation2 + $0x1d4] sm:$0xf0] }
 0x2b8   :  { %v1885_v52 = vadd.f32 %v4958_v50, %v1716_v14 }
 0x2b9   :  { %v5046_v47 = vpop.f32.mrf.mxu0  ;;  %6465 = vst [vmem:[#allocation103_spill] sm:$0xff] %v5049_v36  ;;  %1938 = vmatmul.bf16.gmra.mxu0 %v5049_v36 }
 0x2ba   :  { %v2032_v37 = vmax.f32 %v1885_v52, 0.0  ;;  %v4161_v52 = vld [vmem:[#allocation2 + $0x264] sm:$0xf] }
 0x2bc   :  { %v5036_v58 = vpop.f32.mrf.mxu2 }
 0x2bd   :  { %v1717_v23 = vpop.f32.mrf.mxu3 }
 0x2be   :  { %v1718_v30 = vadd.f32 %v1717_v23, %v1549_v39  ;;  %v1385_v39 = vadd.f32 %v4907_v8, %v4738_v5 }
 0x2c0   :  { %v1887_v38 = vadd.f32 %v4973_v41, %v1718_v30  ;;  %v1383_v41 = vadd.f32 %v4907_v8, %v4722_v12  ;;  %v3837_v30 = vld [vmem:[#allocation2 + $0x270] sm:$0xf0] }
 0x2c1   :  { %1615 = vmatmul.bf16.gmra.mxu2 %v5038_v34  ;;  %v5059_v51 = vpop.f32.mrf.mxu0 }
 0x2c2   :  { %v2033_v55 = vmax.f32 %v1887_v38, 0.0  ;;  %1759 = vmatmul.bf16.gmra.mxu3 %v5041_v44  ;;  %v1552_v48 = vadd.f32 %v4909_v10, %v1383_v41  ;;  %v3763_v38 = vld [vmem:[#allocation2 + $0x1c8] sm:$0xf] }
 0x2c3   :  { %v5071_v36 = vor.u32 %v4144_v3, %v3763_v38 }
 0x2c4   :  { %v2092_v50 = vpack.c.bf16 %v2033_v55, %v2032_v37  ;;  %v5053_v14 = vpop.f32.mrf.mxu2  ;;  %v1554_v37 = vadd.f32 %v4921_v28, %v1385_v39 }
 0x2c5   :  { %v1720_v9 = vpop.f32.mrf.mxu3  ;;  %6467 = vst [vmem:[#allocation105_spill] sm:$0xff] %v5071_v36 }
 0x2c6   :  { %4053 = vmatmul.msk.bf16.gmra.mxu1 %vm2136_vm2, %v2092_v50  ;;  %v1721_v23 = vadd.f32 %v1720_v9, %v1552_v48  ;;  %v5068_v50 = vor.u32 %v4161_v52, %v3837_v30  ;;  %v4150_v9 = vld [vmem:[#allocation2 + $0x20c] sm:$0xf]  ;;  %v3797_v48 = vld [vmem:[#allocation2 + $0x218] sm:$0xf0]  ;;  %v5080_v52 = vpop.f32.mrf.mxu1  ;;  %v1388_v30 = vadd.f32 %v4907_v8, %v4742_v53 }
 0x2c7   :  { %v5077_v44 = vor.u32 %v4150_v9, %v3797_v48  ;;  %v4148_v9 = vld [vmem:[#allocation2 + $0x1f4] sm:$0xf0] }
 0x2c8   :  { %6466 = vst [vmem:[#allocation104_spill] sm:$0xff] %v5068_v50  ;;  %v1890_v10 = vadd.f32 %v4986_v11, %v1721_v23  ;;  %v1557_v38 = vadd.f32 %v4937_v19, %v1388_v30 }
 0x2c9   :  { %v5074_v5 = vpop.f32.mrf.mxu0  ;;  %6468 = vst [vmem:[#allocation106_spill] sm:$0xff] %v5077_v44  ;;  %1943 = vmatmul.bf16.gmra.mxu0 %v5077_v44 }
 0x2ca   :  { %v2034_v28 = vmax.f32 %v1890_v10, 0.0  ;;  %v3853_v10 = vld [vmem:[#allocation2 + $0x290] sm:$0xf0] }
 0x2cc   :  { %v5066_v55 = vpop.f32.mrf.mxu2 }
 0x2cd   :  { %v1722_v12 = vpop.f32.mrf.mxu3 }
 0x2ce   :  { %v1723_v41 = vadd.f32 %v1722_v12, %v1554_v37  ;;  %v4165_v12 = vld [vmem:[#allocation2 + $0x284] sm:$0xf] }
 0x2d0   :  { %v1892_v34 = vadd.f32 %v5001_v54, %v1723_v41  ;;  %v3779_v41 = vld [vmem:[#allocation2 + $0x1e8] sm:$0xf] }
 0x2d1   :  { %1620 = vmatmul.bf16.gmra.mxu2 %v5068_v50  ;;  %v5089_v3 = vpop.f32.mrf.mxu0  ;;  %v5101_v44 = vor.u32 %v4148_v9, %v3779_v41  ;;  %v3813_v50 = vld [vmem:[#allocation2 + $0x238] sm:$0xf0]  ;;  %v1395_v9 = vadd.f32 %v4907_v8, %v4778_v42 }
 0x2d2   :  { %v2035_v39 = vmax.f32 %v1892_v34, 0.0  ;;  %1764 = vmatmul.bf16.gmra.mxu3 %v5071_v36  ;;  %v1390_v34 = vadd.f32 %v4907_v8, %v4758_v59 }
 0x2d4   :  { %v2093_v11 = vpack.c.bf16 %v2035_v39, %v2034_v28  ;;  %v5083_v23 = vpop.f32.mrf.mxu2  ;;  %v1559_v48 = vadd.f32 %v4948_v31, %v1390_v34  ;;  %v5096_v39 = vpop.f32.mrf.mxu1 }
 0x2d5   :  { %v1725_v54 = vpop.f32.mrf.mxu3 }
 0x2d6   :  { %4054 = vmatmul.msk.bf16.gmra.mxu1 %vm2136_vm2, %v2093_v11  ;;  %v1726_v37 = vadd.f32 %v1725_v54, %v1557_v38  ;;  %v5098_v11 = vor.u32 %v4165_v12, %v3853_v10  ;;  %v4154_v38 = vld [vmem:[#allocation2 + $0x22c] sm:$0xf] }
 0x2d7   :  { %v5107_v31 = vor.u32 %v4154_v38, %v3813_v50 }
 0x2d8   :  { %6469 = vst [vmem:[#allocation107_spill] sm:$0xff] %v5098_v11  ;;  %v1895_v19 = vadd.f32 %v5016_v17, %v1726_v37 }
 0x2d9   :  { %v5104_v54 = vpop.f32.mrf.mxu0  ;;  %6470 = vst [vmem:[#allocation108_spill] sm:$0xff] %v5107_v31  ;;  %1948 = vmatmul.bf16.gmra.mxu0 %v5107_v31 }
 0x2da   :  { %v2036_v34 = vmax.f32 %v1895_v19, 0.0  ;;  %v3795_v19 = vld [vmem:[#allocation2 + $0x208] sm:$0xf] }
 0x2dc   :  { %v5094_v28 = vpop.f32.mrf.mxu2  ;;  %v5116_v10 = vpop.f32.mrf.mxu1 }
 0x2dd   :  { %v1727_v53 = vpop.f32.mrf.mxu3 }
 0x2de   :  { %v1728_v30 = vadd.f32 %v1727_v53, %v1559_v48  ;;  %v4169_v53 = vld [vmem:[#allocation2 + $0x2a4] sm:$0xf] }
 0x2e0   :  { %v1897_v59 = vadd.f32 %v5031_v24, %v1728_v30  ;;  %v1393_v24 = vadd.f32 %v4907_v8, %v4762_v27  ;;  %v4152_v30 = vld [vmem:[#allocation2 + $0x214] sm:$0xf0] }
 0x2e1   :  { %1625 = vmatmul.bf16.gmra.mxu2 %v5098_v11  ;;  %v5119_v41 = vpop.f32.mrf.mxu0 }
 0x2e2   :  { %v2037_v36 = vmax.f32 %v1897_v59, 0.0  ;;  %1769 = vmatmul.bf16.gmra.mxu3 %v5101_v44  ;;  %v1562_v50 = vadd.f32 %v4965_v4, %v1393_v24  ;;  %v1564_v59 = vadd.f32 %v4978_v60, %v1395_v9  ;;  %v5129_v24 = vor.u32 %v4152_v30, %v3795_v19 }
 0x2e4   :  { %v2094_v17 = vpack.c.bf16 %v2037_v36, %v2036_v34  ;;  %v5111_v37 = vpop.f32.mrf.mxu2  ;;  %v3869_v36 = vld [vmem:[#allocation2 + $0x2b0] sm:$0xf0]  ;;  %6472 = vst [vmem:[#allocation110_spill] sm:$0xff] %v5129_v24  ;;  %v5134_v11 = vpop.f32.mrf.mxu1 }
 0x2e5   :  { %v1730_v12 = vpop.f32.mrf.mxu3  ;;  %v5126_v34 = vor.u32 %v4169_v53, %v3869_v36  ;;  %v1398_v36 = vadd.f32 %v4907_v8, %v4784_v16 }
 0x2e6   :  { %4055 = vmatmul.msk.bf16.gmra.mxu1 %vm2136_vm2, %v2094_v17  ;;  %v1731_v48 = vadd.f32 %v1730_v12, %v1562_v50  ;;  %v4158_v12 = vld [vmem:[#allocation2 + $0x24c] sm:$0xf]  ;;  %v3829_v50 = vld [vmem:[#allocation2 + $0x258] sm:$0xf0] }
 0x2e7   :  { %6471 = vst [vmem:[#allocation109_spill] sm:$0xff] %v5126_v34  ;;  %v5137_v60 = vor.u32 %v4158_v12, %v3829_v50  ;;  %v1567_v19 = vadd.f32 %v4995_v62, %v1398_v36  ;;  %v3811_v12 = vld [vmem:[#allocation2 + $0x228] sm:$0xf]  ;;  %v4156_v50 = vld [vmem:[#allocation2 + $0x234] sm:$0xf0] }
 0x2e8   :  { %v1900_v17 = vadd.f32 %v5046_v47, %v1731_v48 }
 0x2e9   :  { %v5132_v42 = vpop.f32.mrf.mxu0  ;;  %6473 = vst [vmem:[#allocation111_spill] sm:$0xff] %v5137_v60  ;;  %1953 = vmatmul.bf16.gmra.mxu0 %v5137_v60  ;;  %v5159_v60 = vor.u32 %v4156_v50, %v3811_v12  ;;  %v1405_v50 = vadd.f32 %v4907_v8, %v4830_v49 }
 0x2ea   :  { %v2038_v9 = vmax.f32 %v1900_v17, 0.0  ;;  %v3885_v17 = vld [vmem:[#allocation2 + $0x2d0] sm:$0xf0] }
 0x2eb   :  { %6475 = vst [vmem:[#allocation113_spill] sm:$0xff] %v5159_v60 }
 0x2ec   :  { %v5124_v38 = vpop.f32.mrf.mxu2 }
 0x2ed   :  { %v1732_v27 = vpop.f32.mrf.mxu3 }
 0x2ee   :  { %v1733_v4 = vadd.f32 %v1732_v27, %v1564_v59  ;;  %v4173_v27 = vld [vmem:[#allocation2 + $0x2c4] sm:$0xf] }
 0x2f0   :  { %v1902_v31 = vadd.f32 %v5059_v51, %v1733_v4  ;;  %v5151_v4 = vpop.f32.mrf.mxu1 }
 0x2f1   :  { %1630 = vmatmul.bf16.gmra.mxu2 %v5126_v34  ;;  %v5147_v30 = vpop.f32.mrf.mxu0  ;;  %v3845_v34 = vld [vmem:[#allocation2 + $0x278] sm:$0xf0] }
 0x2f2   :  { %v2039_v53 = vmax.f32 %v1902_v31, 0.0  ;;  %1774 = vmatmul.bf16.gmra.mxu3 %v5129_v24  ;;  %v1400_v31 = vadd.f32 %v4907_v8, %v4802_v26 }
 0x2f4   :  { %v2095_v47 = vpack.c.bf16 %v2039_v53, %v2038_v9  ;;  %v5141_v48 = vpop.f32.mrf.mxu2  ;;  %v1569_v9 = vadd.f32 %v5008_v21, %v1400_v31 }
 0x2f5   :  { %v1735_v51 = vpop.f32.mrf.mxu3 }
 0x2f6   :  { %4056 = vmatmul.msk.bf16.gmra.mxu1 %vm2136_vm2, %v2095_v47  ;;  %v1736_v59 = vadd.f32 %v1735_v51, %v1567_v19  ;;  %v5156_v47 = vor.u32 %v4173_v27, %v3885_v17  ;;  %v4162_v19 = vld [vmem:[#allocation2 + $0x26c] sm:$0xf]  ;;  %v1403_v17 = vadd.f32 %v4907_v8, %v4816_v25 }
 0x2f7   :  { %v5165_v24 = vor.u32 %v4162_v19, %v3845_v34  ;;  %v4160_v19 = vld [vmem:[#allocation2 + $0x254] sm:$0xf0] }
 0x2f8   :  { %6474 = vst [vmem:[#allocation112_spill] sm:$0xff] %v5156_v47  ;;  %v1905_v62 = vadd.f32 %v5074_v5, %v1736_v59  ;;  %v1572_v34 = vadd.f32 %v5023_v35, %v1403_v17 }
 0x2f9   :  { %v5162_v51 = vpop.f32.mrf.mxu0  ;;  %6476 = vst [vmem:[#allocation114_spill] sm:$0xff] %v5165_v24  ;;  %1958 = vmatmul.bf16.gmra.mxu0 %v5165_v24 }
 0x2fa   :  { %v2040_v21 = vmax.f32 %v1905_v62, 0.0  ;;  %v3901_v62 = vld [vmem:[#allocation2 + $0x2f0] sm:$0xf0] }
 0x2fc   :  { %v5154_v53 = vpop.f32.mrf.mxu2 }
 0x2fd   :  { %v1737_v16 = vpop.f32.mrf.mxu3 }
 0x2fe   :  { %v1738_v36 = vadd.f32 %v1737_v16, %v1569_v9  ;;  %v4177_v16 = vld [vmem:[#allocation2 + $0x2e4] sm:$0xf] }
 0x300   :  { %v1907_v26 = vadd.f32 %v5089_v3, %v1738_v36 }
 0x301   :  { %1635 = vmatmul.bf16.gmra.mxu2 %v5156_v47  ;;  %v5177_v12 = vpop.f32.mrf.mxu0  ;;  %v4166_v47 = vld [vmem:[#allocation2 + $0x28c] sm:$0xf] }
 0x302   :  { %v2041_v31 = vmax.f32 %v1907_v26, 0.0  ;;  %1779 = vmatmul.bf16.gmra.mxu3 %v5159_v60  ;;  %v3827_v26 = vld [vmem:[#allocation2 + $0x248] sm:$0xf]  ;;  %v3861_v60 = vld [vmem:[#allocation2 + $0x298] sm:$0xf0] }
 0x303   :  { %v5168_v27 = vpop.f32.mrf.mxu1 }
 0x304   :  { %v2096_v5 = vpack.c.bf16 %v2041_v31, %v2040_v21  ;;  %v5171_v59 = vpop.f32.mrf.mxu2  ;;  %v1574_v21 = vadd.f32 %v5036_v58, %v1405_v50  ;;  %v5197_v58 = vor.u32 %v4166_v47, %v3861_v60 }
 0x305   :  { %v1740_v3 = vpop.f32.mrf.mxu3 }
 0x306   :  { %4057 = vmatmul.msk.bf16.gmra.mxu1 %vm2136_vm2, %v2096_v5  ;;  %v1741_v9 = vadd.f32 %v1740_v3, %v1572_v34  ;;  %v5188_v5 = vor.u32 %v4177_v16, %v3901_v62  ;;  %v5191_v3 = vor.u32 %v4160_v19, %v3827_v26  ;;  %6479 = vst [vmem:[#allocation117_spill] sm:$0xff] %v5197_v58 }
 0x307   :  { %v1408_v62 = vadd.f32 %v4907_v8, %v4846_v1  ;;  %v1410_v26 = vadd.f32 %v4907_v8, %v4856_v57 }
 0x308   :  { %6477 = vst [vmem:[#allocation115_spill] sm:$0xff] %v5188_v5  ;;  %v1910_v17 = vadd.f32 %v5104_v54, %v1741_v9 }
 0x309   :  { %6478 = vst [vmem:[#allocation116_spill] sm:$0xff] %v5191_v3  ;;  %v5194_v24 = vpop.f32.mrf.mxu0  ;;  %1963 = vmatmul.bf16.gmra.mxu0 %v5197_v58  ;;  %v1577_v60 = vadd.f32 %v5053_v14, %v1408_v62 }
 0x30a   :  { %v2042_v50 = vmax.f32 %v1910_v17, 0.0 }
 0x30b   :  { %v5181_v36 = vpop.f32.mrf.mxu1 }
 0x30c   :  { %v5186_v31 = vpop.f32.mrf.mxu2 }
 0x30d   :  { %v1742_v35 = vpop.f32.mrf.mxu3 }
 0x30e   :  { %v1743_v49 = vadd.f32 %v1742_v35, %v1574_v21  ;;  %v4181_v21 = vld [vmem:[#allocation2 + $0x304] sm:$0xf]  ;;  %v3917_v35 = vld [vmem:[#allocation2 + $0x310] sm:$0xf0] }
 0x310   :  { %v1912_v34 = vadd.f32 %v5119_v41, %v1743_v49  ;;  %v4164_v49 = vld [vmem:[#allocation2 + $0x274] sm:$0xf0] }
 0x311   :  { %1640 = vmatmul.bf16.gmra.mxu2 %v5188_v5  ;;  %v5209_v47 = vpop.f32.mrf.mxu0  ;;  %v4170_v5 = vld [vmem:[#allocation2 + $0x2ac] sm:$0xf] }
 0x312   :  { %v2043_v25 = vmax.f32 %v1912_v34, 0.0  ;;  %1784 = vmatmul.bf16.gmra.mxu3 %v5191_v3  ;;  %v1579_v34 = vadd.f32 %v5066_v55, %v1410_v26  ;;  %v3877_v3 = vld [vmem:[#allocation2 + $0x2b8] sm:$0xf0] }
 0x313   :  { %v5200_v16 = vpop.f32.mrf.mxu1  ;;  %v5229_v55 = vor.u32 %v4170_v5, %v3877_v3 }
 0x314   :  { %v2097_v54 = vpack.c.bf16 %v2043_v25, %v2042_v50  ;;  %v5203_v9 = vpop.f32.mrf.mxu2  ;;  %v3843_v25 = vld [vmem:[#allocation2 + $0x268] sm:$0xf] }
 0x315   :  { %v1745_v41 = vpop.f32.mrf.mxu3  ;;  %6482 = vst [vmem:[#allocation120_spill] sm:$0xff] %v5229_v55 }
 0x316   :  { %4058 = vmatmul.msk.bf16.gmra.mxu1 %vm2136_vm2, %v2097_v54  ;;  %v1746_v19 = vadd.f32 %v1745_v41, %v1577_v60  ;;  %v5220_v54 = vor.u32 %v4181_v21, %v3917_v35  ;;  %v5223_v41 = vor.u32 %v4164_v49, %v3843_v25  ;;  %v1413_v35 = vadd.f32 %v4907_v8, %v4883_v0 }
 0x317   :  { %v1415_v25 = vadd.f32 %v4907_v8, %v4895_v45 }
 0x318   :  { %6480 = vst [vmem:[#allocation118_spill] sm:$0xff] %v5220_v54  ;;  %v1915_v62 = vadd.f32 %v5132_v42, %v1746_v19  ;;  %v1582_v5 = vadd.f32 %v5083_v23, %v1413_v35 }
 0x319   :  { %6481 = vst [vmem:[#allocation119_spill] sm:$0xff] %v5223_v41  ;;  %v5226_v58 = vpop.f32.mrf.mxu0  ;;  %1968 = vmatmul.bf16.gmra.mxu0 %v5229_v55 }
 0x31a   :  { %v2044_v26 = vmax.f32 %v1915_v62, 0.0 }
 0x31b   :  { %v5213_v17 = vpop.f32.mrf.mxu1 }
 0x31c   :  { %v5218_v50 = vpop.f32.mrf.mxu2 }
 0x31d   :  { %v1747_v14 = vpop.f32.mrf.mxu3 }
 0x31e   :  { %v1748_v57 = vadd.f32 %v1747_v14, %v1579_v34  ;;  %v4185_v34 = vld [vmem:[#allocation2 + $0x324] sm:$0xf]  ;;  %v3933_v14 = vld [vmem:[#allocation2 + $0x330] sm:$0xf0] }
 0x320   :  { %v1917_v60 = vadd.f32 %v5147_v30, %v1748_v57  ;;  %v4168_v57 = vld [vmem:[#allocation2 + $0x294] sm:$0xf0] }
 0x321   :  { %1645 = vmatmul.bf16.gmra.mxu2 %v5220_v54  ;;  %v5241_v3 = vpop.f32.mrf.mxu0  ;;  %v4174_v54 = vld [vmem:[#allocation2 + $0x2cc] sm:$0xf] }
 0x322   :  { %v2045_v1 = vmax.f32 %v1917_v60, 0.0  ;;  %1789 = vmatmul.bf16.gmra.mxu3 %v5223_v41  ;;  %v1584_v60 = vadd.f32 %v5094_v28, %v1415_v25  ;;  %v3893_v41 = vld [vmem:[#allocation2 + $0x2d8] sm:$0xf0] }
 0x323   :  { %v5232_v21 = vpop.f32.mrf.mxu1  ;;  %v5261_v28 = vor.u32 %v4174_v54, %v3893_v41 }
 0x324   :  { %v2098_v42 = vpack.c.bf16 %v2045_v1, %v2044_v26  ;;  %v5235_v19 = vpop.f32.mrf.mxu2  ;;  %v3859_v1 = vld [vmem:[#allocation2 + $0x288] sm:$0xf] }
 0x325   :  { %v1750_v30 = vpop.f32.mrf.mxu3  ;;  %6485 = vst [vmem:[#allocation123_spill] sm:$0xff] %v5261_v28 }
 0x326   :  { %4059 = vmatmul.msk.bf16.gmra.mxu1 %vm2136_vm2, %v2098_v42  ;;  %v1751_v49 = vadd.f32 %v1750_v30, %v1582_v5  ;;  %v5252_v42 = vor.u32 %v4185_v34, %v3933_v14  ;;  %v5255_v30 = vor.u32 %v4168_v57, %v3859_v1  ;;  %v1418_v14 = vadd.f32 %v4907_v8, %v4916_v46 }
 0x327   :  { %v1420_v1 = vadd.f32 %v4907_v8, %v4934_v13 }
 0x328   :  { %6483 = vst [vmem:[#allocation121_spill] sm:$0xff] %v5252_v42  ;;  %v1920_v35 = vadd.f32 %v5162_v51, %v1751_v49  ;;  %v1587_v54 = vadd.f32 %v5111_v37, %v1418_v14 }
 0x329   :  { %6484 = vst [vmem:[#allocation122_spill] sm:$0xff] %v5255_v30  ;;  %v5258_v55 = vpop.f32.mrf.mxu0  ;;  %1973 = vmatmul.bf16.gmra.mxu0 %v5261_v28 }
 0x32a   :  { %v2046_v25 = vmax.f32 %v1920_v35, 0.0 }
 0x32b   :  { %v5245_v62 = vpop.f32.mrf.mxu1 }
 0x32c   :  { %v5250_v26 = vpop.f32.mrf.mxu2 }
 0x32d   :  { %v1752_v23 = vpop.f32.mrf.mxu3 }
 0x32e   :  { %v1753_v45 = vadd.f32 %v1752_v23, %v1584_v60  ;;  %v4189_v60 = vld [vmem:[#allocation2 + $0x344] sm:$0xf]  ;;  %v3949_v23 = vld [vmem:[#allocation2 + $0x350] sm:$0xf0] }
 0x330   :  { %v1922_v5 = vadd.f32 %v5177_v12, %v1753_v45  ;;  %v4172_v45 = vld [vmem:[#allocation2 + $0x2b4] sm:$0xf0] }
 0x331   :  { %1650 = vmatmul.bf16.gmra.mxu2 %v5252_v42  ;;  %v5273_v41 = vpop.f32.mrf.mxu0  ;;  %v4178_v42 = vld [vmem:[#allocation2 + $0x2ec] sm:$0xf] }
 0x332   :  { %v2047_v0 = vmax.f32 %v1922_v5, 0.0  ;;  %1794 = vmatmul.bf16.gmra.mxu3 %v5255_v30  ;;  %v1589_v5 = vadd.f32 %v5124_v38, %v1420_v1  ;;  %v3909_v30 = vld [vmem:[#allocation2 + $0x2f8] sm:$0xf0] }
 0x333   :  { %v5264_v34 = vpop.f32.mrf.mxu1  ;;  %v5293_v38 = vor.u32 %v4178_v42, %v3909_v30 }
 0x334   :  { %v2099_v51 = vpack.c.bf16 %v2047_v0, %v2046_v25  ;;  %v5267_v49 = vpop.f32.mrf.mxu2  ;;  %v3875_v0 = vld [vmem:[#allocation2 + $0x2a8] sm:$0xf] }
 0x335   :  { %v1755_v12 = vpop.f32.mrf.mxu3  ;;  %6488 = vst [vmem:[#allocation126_spill] sm:$0xff] %v5293_v38 }
 0x336   :  { %4060 = vmatmul.msk.bf16.gmra.mxu1 %vm2136_vm2, %v2099_v51  ;;  %v1756_v57 = vadd.f32 %v1755_v12, %v1587_v54  ;;  %v5284_v51 = vor.u32 %v4189_v60, %v3949_v23  ;;  %v5287_v12 = vor.u32 %v4172_v45, %v3875_v0  ;;  %v1423_v23 = vadd.f32 %v4907_v8, %v4952_v7 }
 0x337   :  { %v1425_v0 = vadd.f32 %v4907_v8, %v4970_v29 }
 0x338   :  { %6486 = vst [vmem:[#allocation124_spill] sm:$0xff] %v5284_v51  ;;  %v1925_v14 = vadd.f32 %v5194_v24, %v1756_v57  ;;  %v1592_v42 = vadd.f32 %v5141_v48, %v1423_v23 }
 0x339   :  { %6487 = vst [vmem:[#allocation125_spill] sm:$0xff] %v5287_v12  ;;  %v5290_v28 = vpop.f32.mrf.mxu0  ;;  %1978 = vmatmul.bf16.gmra.mxu0 %v5293_v38 }
 0x33a   :  { %v2048_v1 = vmax.f32 %v1925_v14, 0.0 }
 0x33b   :  { %v5277_v35 = vpop.f32.mrf.mxu1 }
 0x33c   :  { %v5282_v25 = vpop.f32.mrf.mxu2 }
 0x33d   :  { %v1757_v37 = vpop.f32.mrf.mxu3 }
 0x33e   :  { %v1758_v13 = vadd.f32 %v1757_v37, %v1589_v5  ;;  %v4193_v5 = vld [vmem:[#allocation2 + $0x364] sm:$0xf]  ;;  %v3965_v37 = vld [vmem:[#allocation2 + $0x370] sm:$0xf0] }
 0x340   :  { %v1927_v54 = vadd.f32 %v5209_v47, %v1758_v13  ;;  %v4176_v13 = vld [vmem:[#allocation2 + $0x2d4] sm:$0xf0] }
 0x341   :  { %1655 = vmatmul.bf16.gmra.mxu2 %v5284_v51  ;;  %v5305_v30 = vpop.f32.mrf.mxu0  ;;  %v3925_v51 = vld [vmem:[#allocation2 + $0x318] sm:$0xf0] }
 0x342   :  { %v2049_v46 = vmax.f32 %v1927_v54, 0.0  ;;  %1799 = vmatmul.bf16.gmra.mxu3 %v5287_v12  ;;  %v1594_v54 = vadd.f32 %v5154_v53, %v1425_v0 }
 0x343   :  { %v5296_v60 = vpop.f32.mrf.mxu1 }
 0x344   :  { %v2100_v24 = vpack.c.bf16 %v2049_v46, %v2048_v1  ;;  %v5299_v57 = vpop.f32.mrf.mxu2  ;;  %v3891_v46 = vld [vmem:[#allocation2 + $0x2c8] sm:$0xf] }
 0x345   :  { %v1760_v47 = vpop.f32.mrf.mxu3  ;;  %v5317_v38 = vor.u32 %v4176_v13, %v3891_v46  ;;  %v1430_v13 = vadd.f32 %v4907_v8, %v5005_v6 }
 0x346   :  { %4061 = vmatmul.msk.bf16.gmra.mxu1 %vm2136_vm2, %v2100_v24  ;;  %v1761_v45 = vadd.f32 %v1760_v47, %v1592_v42  ;;  %v5314_v24 = vor.u32 %v4193_v5, %v3965_v37  ;;  %v4182_v42 = vld [vmem:[#allocation2 + $0x30c] sm:$0xf] }
 0x347   :  { %6490 = vst [vmem:[#allocation128_spill] sm:$0xff] %v5317_v38  ;;  %v5323_v12 = vor.u32 %v4182_v42, %v3925_v51  ;;  %v4180_v42 = vld [vmem:[#allocation2 + $0x2f4] sm:$0xf0] }
 0x348   :  { %6489 = vst [vmem:[#allocation127_spill] sm:$0xff] %v5314_v24  ;;  %v1930_v48 = vadd.f32 %v5226_v58, %v1761_v45 }
 0x349   :  { %v5320_v47 = vpop.f32.mrf.mxu0  ;;  %6491 = vst [vmem:[#allocation129_spill] sm:$0xff] %v5323_v12  ;;  %1983 = vmatmul.bf16.gmra.mxu0 %v5323_v12 }
 0x34a   :  { %v2050_v53 = vmax.f32 %v1930_v48, 0.0  ;;  %v3981_v48 = vld [vmem:[#allocation2 + $0x390] sm:$0xf0] }
 0x34b   :  { %v5309_v14 = vpop.f32.mrf.mxu1 }
 0x34c   :  { %v5312_v1 = vpop.f32.mrf.mxu2 }
 0x34d   :  { %v1762_v7 = vpop.f32.mrf.mxu3 }
 0x34e   :  { %v1763_v23 = vadd.f32 %v1762_v7, %v1594_v54  ;;  %v4197_v7 = vld [vmem:[#allocation2 + $0x384] sm:$0xf] }
 0x350   :  { %v1932_v29 = vadd.f32 %v5241_v3, %v1763_v23  ;;  %v1428_v3 = vadd.f32 %v4907_v8, %v4989_v43  ;;  %v1599_v43 = vadd.f32 %v5186_v31, %v1430_v13 }
 0x351   :  { %1660 = vmatmul.bf16.gmra.mxu2 %v5314_v24  ;;  %v5335_v46 = vpop.f32.mrf.mxu0  ;;  %v3941_v24 = vld [vmem:[#allocation2 + $0x338] sm:$0xf0] }
 0x352   :  { %v2051_v0 = vmax.f32 %v1932_v29, 0.0  ;;  %1804 = vmatmul.bf16.gmra.mxu3 %v5317_v38  ;;  %v1597_v51 = vadd.f32 %v5171_v59, %v1428_v3  ;;  %v3907_v29 = vld [vmem:[#allocation2 + $0x2e8] sm:$0xf] }
 0x353   :  { %v5326_v5 = vpop.f32.mrf.mxu1  ;;  %v5345_v3 = vor.u32 %v4180_v42, %v3907_v29 }
 0x354   :  { %v2101_v58 = vpack.c.bf16 %v2051_v0, %v2050_v53  ;;  %v5331_v37 = vpop.f32.mrf.mxu2  ;;  %v5342_v0 = vor.u32 %v4197_v7, %v3981_v48 }
 0x355   :  { %v1765_v45 = vpop.f32.mrf.mxu3 }
 0x356   :  { %4062 = vmatmul.msk.bf16.gmra.mxu1 %vm2136_vm2, %v2101_v58  ;;  %v1766_v54 = vadd.f32 %v1765_v45, %v1597_v51  ;;  %6492 = vst [vmem:[#allocation130_spill] sm:$0xff] %v5342_v0  ;;  %v4186_v51 = vld [vmem:[#allocation2 + $0x32c] sm:$0xf] }
 0x357   :  { %v5353_v38 = vor.u32 %v4186_v51, %v3941_v24  ;;  %v1435_v24 = vadd.f32 %v4907_v8, %v5043_v22  ;;  %v4184_v51 = vld [vmem:[#allocation2 + $0x314] sm:$0xf0] }
 0x358   :  { %v1935_v58 = vadd.f32 %v5258_v55, %v1766_v54 }
 0x359   :  { %v5350_v45 = vpop.f32.mrf.mxu0  ;;  %6493 = vst [vmem:[#allocation131_spill] sm:$0xff] %v5353_v38  ;;  %1988 = vmatmul.bf16.gmra.mxu0 %v5353_v38 }
 0x35a   :  { %v2052_v31 = vmax.f32 %v1935_v58, 0.0  ;;  %v3997_v58 = vld [vmem:[#allocation2 + $0x3b0] sm:$0xf0] }
 0x35b   :  { %v5339_v23 = vpop.f32.mrf.mxu1 }
 0x35c   :  { %v5347_v12 = vpop.f32.mrf.mxu2 }
 0x35d   :  { %v1767_v53 = vpop.f32.mrf.mxu3 }
 0x35e   :  { %v1768_v59 = vadd.f32 %v1767_v53, %v1599_v43  ;;  %v4201_v53 = vld [vmem:[#allocation2 + $0x3a4] sm:$0xf] }
 0x360   :  { %v1937_v6 = vadd.f32 %v5273_v41, %v1768_v59  ;;  %v1433_v41 = vadd.f32 %v4907_v8, %v5025_v61 }
 0x361   :  { %1665 = vmatmul.bf16.gmra.mxu2 %v5342_v0  ;;  %v5363_v29 = vpop.f32.mrf.mxu0 }
 0x362   :  { %v2053_v13 = vmax.f32 %v1937_v6, 0.0  ;;  %1809 = vmatmul.bf16.gmra.mxu3 %v5345_v3  ;;  %v1602_v48 = vadd.f32 %v5203_v9, %v1433_v41  ;;  %v3923_v6 = vld [vmem:[#allocation2 + $0x308] sm:$0xf] }
 0x363   :  { %v5356_v55 = vpop.f32.mrf.mxu1  ;;  %v5373_v41 = vor.u32 %v4184_v51, %v3923_v6 }
 0x364   :  { %v2102_v54 = vpack.c.bf16 %v2053_v13, %v2052_v31  ;;  %v5367_v42 = vpop.f32.mrf.mxu2  ;;  %v1604_v31 = vadd.f32 %v5218_v50, %v1435_v24  ;;  %v5370_v13 = vor.u32 %v4201_v53, %v3997_v58 }
 0x365   :  { %v1770_v7 = vpop.f32.mrf.mxu3  ;;  %6495 = vst [vmem:[#allocation133_spill] sm:$0xff] %v5373_v41 }
 0x366   :  { %4063 = vmatmul.msk.bf16.gmra.mxu1 %vm2136_vm2, %v2102_v54  ;;  %v1771_v43 = vadd.f32 %v1770_v7, %v1602_v48  ;;  %6494 = vst [vmem:[#allocation132_spill] sm:$0xff] %v5370_v13  ;;  %v4190_v7 = vld [vmem:[#allocation2 + $0x34c] sm:$0xf]  ;;  %v3957_v48 = vld [vmem:[#allocation2 + $0x358] sm:$0xf0] }
 0x367   :  { %v5379_v38 = vor.u32 %v4190_v7, %v3957_v48  ;;  %v4188_v7 = vld [vmem:[#allocation2 + $0x334] sm:$0xf0] }
 0x368   :  { %v1940_v9 = vadd.f32 %v5290_v28, %v1771_v43 }
 0x369   :  { %v5376_v22 = vpop.f32.mrf.mxu0  ;;  %6496 = vst [vmem:[#allocation134_spill] sm:$0xff] %v5379_v38  ;;  %1993 = vmatmul.bf16.gmra.mxu0 %v5379_v38 }
 0x36a   :  { %v2054_v0 = vmax.f32 %v1940_v9, 0.0  ;;  %v4013_v9 = vld [vmem:[#allocation2 + $0x3d0] sm:$0xf0] }
 0x36b   :  { %v2274_v59 = vpop.f32.mrf.mxu1 }
 0x36c   :  { %v5383_v28 = vpop.f32.mrf.mxu2 }
 0x36d   :  { %v1772_v61 = vpop.f32.mrf.mxu3 }
 0x36e   :  { %v1773_v54 = vadd.f32 %v1772_v61, %v1604_v31 }
 0x370   :  { %v1942_v8 = vadd.f32 %v5305_v30, %v1773_v54  ;;  %v5388_v30 = vld [vmem:[%s6252_s3] ss:$0 sm:$0xff] }
 0x371   :  { %1670 = vmatmul.bf16.gmra.mxu2 %v5370_v13  ;;  %v1438_v58 = vadd.f32 %v5388_v30, %v5061_v20  ;;  %v5394_v51 = vpop.f32.mrf.mxu0  ;;  %v1440_v31 = vadd.f32 %v5388_v30, %v5080_v52  ;;  %v4194_v52 = vld [vmem:[#allocation2 + $0x36c] sm:$0xf] }
 0x372   :  { %v2055_v50 = vmax.f32 %v1942_v8, 0.0  ;;  %1814 = vmatmul.bf16.gmra.mxu3 %v5373_v41  ;;  %v3939_v8 = vld [vmem:[#allocation2 + $0x328] sm:$0xf] }
 0x373   :  { %v2277_v24 = vpop.f32.mrf.mxu1  ;;  %v1607_v6 = vadd.f32 %v5235_v19, %v1438_v58  ;;  %v1609_v48 = vadd.f32 %v5250_v26, %v1440_v31  ;;  %v5404_v13 = vor.u32 %v4188_v7, %v3939_v8  ;;  %v3973_v26 = vld [vmem:[#allocation2 + $0x378] sm:$0xf0]  ;;  %v4209_v7 = vld [vmem:[#allocation2 + $0x3e4] sm:$0xf] }
 0x374   :  { %v2103_v43 = vpack.c.bf16 %v2055_v50, %v2054_v0  ;;  %v4205_v0 = vld [vmem:[#allocation2 + $0x3c4] sm:$0xf] }
 0x375   :  { %v1775_v53 = vpop.f32.mrf.mxu3  ;;  %v5399_v20 = vor.u32 %v4205_v0, %v4013_v9  ;;  %v2406_v9 = vpack.c.bf16 %v5309_v14, %v5296_v60 }
 0x376   :  { %4064 = vmatmul.msk.bf16.gmra.mxu1 %vm2136_vm2, %v2103_v43  ;;  %v1776_v61 = vadd.f32 %v1775_v53, %v1607_v6  ;;  %v5401_v43 = vpop.f32.mrf.mxu2  ;;  %v2408_v53 = vpack.c.bf16 %v2274_v59, %v5356_v55  ;;  %v1443_v59 = vadd.f32 %v5388_v30, %v5096_v39 }
 0x378   :  { %v1945_v19 = vadd.f32 %v5320_v47, %v1776_v61  ;;  %v2407_v47 = vpack.c.bf16 %v5339_v23, %v5326_v5  ;;  %v1612_v61 = vadd.f32 %v5267_v49, %v1443_v59  ;;  %v1445_v5 = vadd.f32 %v5388_v30, %v5116_v10 }
 0x379   :  { %v5408_v41 = vpop.f32.mrf.mxu0  ;;  %v6497_v10 = vpack.c.bf16 %v5277_v35, %v5264_v34  ;;  %v6498_v34 = vpack.c.bf16 %v5245_v62, %v5232_v21  ;;  %v1450_v21 = vadd.f32 %v5388_v30, %v5151_v4 }
 0x37a   :  { %v2056_v31 = vmax.f32 %v1945_v19, 0.0  ;;  %v4192_v19 = vld [vmem:[#allocation2 + $0x354] sm:$0xf0]  ;;  %v1614_v49 = vadd.f32 %v5282_v25, %v1445_v5  ;;  %v3989_v25 = vld [vmem:[#allocation2 + $0x398] sm:$0xf0] }
 0x37b   :  { %v2279_v54 = vpop.f32.mrf.mxu1 }
 0x37c   :  { %v2409_v50 = vpack.c.bf16 %v2279_v54, %v2277_v24  ;;  %v5411_v24 = vor.u32 %v4194_v52, %v3973_v26  ;;  %v4198_v26 = vld [vmem:[#allocation2 + $0x38c] sm:$0xf] }
 0x37d   :  { %v1777_v38 = vpop.f32.mrf.mxu3 }
 0x37e   :  { %v1778_v58 = vadd.f32 %v1777_v38, %v1609_v48  ;;  %2438 = vmatpush.bf16.msra.mxu2 %v2409_v50  ;;  %1998 = vmatmul.bf16.gmra.mxu0 %v5411_v24  ;;  %v5425_v54 = vpop.f32.mrf.mxu2  ;;  %v4029_v48 = vld [vmem:[#allocation2 + $0x3f0] sm:$0xf0]  ;;  %v3955_v50 = vld [vmem:[#allocation2 + $0x348] sm:$0xf] }
 0x380   :  { %v1947_v6 = vadd.f32 %v5335_v46, %v1778_v58  ;;  %v5436_v58 = vor.u32 %v4209_v7, %v4029_v48  ;;  %v6500_v7 = vpack.c.bf16 %v5181_v36, %v5168_v27 }
 0x381   :  { %1675 = vmatmul.bf16.gmra.mxu2 %v5399_v20  ;;  %v5427_v8 = vpop.f32.mrf.mxu0 }
 0x382   :  { %v2057_v0 = vmax.f32 %v1947_v6, 0.0  ;;  %1819 = vmatmul.bf16.gmra.mxu3 %v5404_v13  ;;  %2439 = vmatpush.bf16.msra.mxu2 %v2408_v53  ;;  %v5442_v6 = vor.u32 %v4192_v19, %v3955_v50  ;;  %v4196_v50 = vld [vmem:[#allocation2 + $0x374] sm:$0xf0]  ;;  %v1619_v19 = vadd.f32 %v5312_v1, %v1450_v21 }
 0x383   :  { %v5414_v38 = vpop.f32.mrf.mxu1 }
 0x384   :  { %v2104_v46 = vpack.c.bf16 %v2057_v0, %v2056_v31 }
 0x385   :  { %v1780_v55 = vpop.f32.mrf.mxu3 }
 0x386   :  { %4065 = vmatmul.msk.bf16.gmra.mxu1 %vm2136_vm2, %v2104_v46  ;;  %2440 = vmatpush.bf16.msra.mxu2 %v2407_v47  ;;  %v1781_v23 = vadd.f32 %v1780_v55, %v1612_v61  ;;  %v5448_v47 = vor.u32 %v4198_v26, %v3989_v25  ;;  %v5450_v46 = vpop.f32.mrf.mxu2  ;;  %v1448_v61 = vadd.f32 %v5388_v30, %v5134_v11  ;;  %v3971_v11 = vld [vmem:[#allocation2 + $0x368] sm:$0xf] }
 0x388   :  { %v1950_v52 = vadd.f32 %v5350_v45, %v1781_v23  ;;  %v1617_v5 = vadd.f32 %v5299_v57, %v1448_v61  ;;  %v3987_v61 = vld [vmem:[#allocation2 + $0x388] sm:$0xf] }
 0x389   :  { %v5445_v0 = vpop.f32.mrf.mxu0 }
 0x38a   :  { %2441 = vmatpush.bf16.msra.mxu2 %v2406_v9  ;;  %v2058_v45 = vmax.f32 %v1950_v52, 0.0  ;;  %v6499_v9 = vpack.c.bf16 %v5213_v17, %v5200_v16  ;;  %v4202_v52 = vld [vmem:[#allocation2 + $0x3ac] sm:$0xf]  ;;  %v6511_v17 = vld [vmem:[#allocation45_spill] sm:$0xff] }
 0x38b   :  { %v5431_v39 = vpop.f32.mrf.mxu1 }
 0x38d   :  { %v1782_v14 = vpop.f32.mrf.mxu3 }
 0x38e   :  { %v1783_v53 = vadd.f32 %v1782_v14, %v1614_v49  ;;  %2442 = vmatpush.bf16.msra.mxu2 %v6497_v10  ;;  %2003 = vmatmul.bf16.gmra.mxu0 %v5448_v47  ;;  %v5476_v16 = vpop.f32.mrf.mxu2  ;;  %v5481_v14 = vor.u32 %v4196_v50, %v3971_v11  ;;  %v4206_v11 = vld [vmem:[#allocation2 + $0x3cc] sm:$0xf] }
 0x390   :  { %v1952_v31 = vadd.f32 %v5363_v29, %v1783_v53  ;;  %v4005_v53 = vld [vmem:[#allocation2 + $0x3b8] sm:$0xf0] }
 0x391   :  { %1680 = vmatmul.bf16.gmra.mxu2 %v5436_v58  ;;  %v5466_v23 = vpop.f32.mrf.mxu0  ;;  %v5486_v10 = vor.u32 %v4202_v52, %v4005_v53 }
 0x392   :  { %v2059_v55 = vmax.f32 %v1952_v31, 0.0  ;;  %1824 = vmatmul.bf16.gmra.mxu3 %v5442_v6  ;;  %2443 = vmatpush.bf16.msra.mxu2 %v6498_v34  ;;  %v1455_v34 = vadd.f32 %v5388_v30, %v4629_v63 }
 0x393   :  { %v5456_v35 = vpop.f32.mrf.mxu1 }
 0x394   :  { %v2105_v29 = vpack.c.bf16 %v2059_v55, %v2058_v45 }
 0x395   :  { %v1785_v59 = vpop.f32.mrf.mxu3 }
 0x396   :  { %4066 = vmatmul.msk.bf16.gmra.mxu1 %vm2136_vm2, %v2105_v29  ;;  %2444 = vmatpush.bf16.msra.mxu2 %v6499_v9  ;;  %v1786_v62 = vadd.f32 %v1785_v59, %v1617_v5  ;;  %v5495_v45 = vpop.f32.mrf.mxu2  ;;  %v4200_v9 = vld [vmem:[#allocation2 + $0x394] sm:$0xf0]  ;;  %v1624_v5 = vadd.f32 %v5347_v12, %v1455_v34 }
 0x398   :  { %v1955_v49 = vadd.f32 %v5376_v22, %v1786_v62 }
 0x399   :  { %v5484_v36 = vpop.f32.mrf.mxu0 }
 0x39a   :  { %2445 = vmatpush.bf16.msra.mxu2 %v6500_v7  ;;  %v2060_v1 = vmax.f32 %v1955_v49, 0.0 }
 0x39b   :  { %v5473_v48 = vpop.f32.mrf.mxu1 }
 0x39d   :  { %v1787_v57 = vpop.f32.mrf.mxu3 }
 0x39e   :  { %v1788_v4 = vadd.f32 %v1787_v57, %v1619_v19  ;;  %2008 = vmatmul.bf16.gmra.mxu0 %v5486_v10  ;;  %v5511_v50 = vpop.f32.mrf.mxu2  ;;  %v4021_v19 = vld [vmem:[#allocation2 + $0x3d8] sm:$0xf0] }
 0x39f   :  { %v5516_v49 = vor.u32 %v4206_v11, %v4021_v19 }
 0x3a0   :  { %v1957_v27 = vadd.f32 %v5394_v51, %v1788_v4  ;;  %v1453_v51 = vadd.f32 %v5388_v30, %v4623_v18 }
 0x3a1   :  { %2446 = vmatmul.bf16.vlgmr.msra.gmra.mxu2 %v4535_v33  ;;  %v5499_v33 = vpop.f32.mrf.mxu0 }
 0x3a2   :  { %v2061_v26 = vmax.f32 %v1957_v27, 0.0  ;;  %1829 = vmatmul.bf16.gmra.mxu3 %v5481_v14  ;;  %v1622_v55 = vadd.f32 %v5331_v37, %v1453_v51  ;;  %v5509_v37 = vor.u32 %v4200_v9, %v3987_v61  ;;  %v4204_v51 = vld [vmem:[#allocation2 + $0x3b4] sm:$0xf0] }
 0x3a3   :  { %v5490_v31 = vpop.f32.mrf.mxu1 }
 0x3a4   :  { %v2106_v22 = vpack.c.bf16 %v2061_v26, %v2060_v1 }
 0x3a5   :  { %v1790_v25 = vpop.f32.mrf.mxu3 }
 0x3a6   :  { %4067 = vmatmul.msk.bf16.gmra.mxu1 %vm2136_vm2, %v2106_v22  ;;  %v1791_v29 = vadd.f32 %v1790_v25, %v1622_v55  ;;  %v5529_v1 = vpop.f32.mrf.mxu2  ;;  %v4003_v25 = vld [vmem:[#allocation2 + $0x3a8] sm:$0xf] }
 0x3a7   :  { %v5537_v9 = vor.u32 %v4204_v51, %v4003_v25  ;;  %v4019_v25 = vld [vmem:[#allocation2 + $0x3c8] sm:$0xf]  ;;  %v4208_v51 = vld [vmem:[#allocation2 + $0x3d4] sm:$0xf0] }
 0x3a8   :  { %v1960_v62 = vadd.f32 %v5408_v41, %v1791_v29 }
 0x3a9   :  { %v5514_v57 = vpop.f32.mrf.mxu0 }
 0x3aa   :  { %v2062_v12 = vmax.f32 %v1960_v62, 0.0 }
 0x3ab   :  { %v5503_v59 = vpop.f32.mrf.mxu1 }
 0x3ac   :  { %v2412_v18 = vpack.c.bf16 %v5503_v59, %v5490_v31 }
 0x3ad   :  { %v1792_v21 = vpop.f32.mrf.mxu3 }
 0x3ae   :  { %v1793_v7 = vadd.f32 %v1792_v21, %v1624_v5  ;;  %2013 = vmatmul.bf16.gmra.mxu0 %v5516_v49  ;;  %v4037_v21 = vld [vmem:[#allocation2 + $0x3f8] sm:$0xf0] }
 0x3b0   :  { %v1962_v63 = vadd.f32 %v5427_v8, %v1793_v7  ;;  %v1458_v8 = vadd.f32 %v5388_v30, %v4640_v15  ;;  %v6501_v7 = vld [vmem:[#allocation8_spill] sm:$0xff] }
 0x3b1   :  { %2451 = vmatmul.bf16.gmra.mxu2 %v4549_v40  ;;  %v1460_v40 = vadd.f32 %v5388_v30, %v4646_v32  ;;  %v1976_v55 = vpop.f32.mrf.mxu0  ;;  %v4210_v32 = vld [vmem:[#allocation2 + $0x3ec] sm:$0xf] }
 0x3b2   :  { %v2063_v4 = vmax.f32 %v1962_v63, 0.0  ;;  %1834 = vmatmul.bf16.gmra.mxu3 %v5509_v37  ;;  %v1627_v53 = vadd.f32 %v5367_v42, %v1458_v8  ;;  %v5540_v62 = vor.u32 %v4210_v32, %v4037_v21  ;;  %v6503_v8 = vld [vmem:[#allocation29_spill] sm:$0xff] }
 0x3b3   :  { %v5520_v41 = vpop.f32.mrf.mxu1  ;;  %v1629_v34 = vadd.f32 %v5383_v28, %v1460_v40 }
 0x3b4   :  { %v2107_v52 = vpack.c.bf16 %v2063_v4, %v2062_v12 }
 0x3b5   :  { %v1795_v27 = vpop.f32.mrf.mxu3 }
 0x3b6   :  { %4068 = vmatmul.msk.bf16.gmra.mxu1 %vm2136_vm2, %v2107_v52  ;;  %v1796_v26 = vadd.f32 %v1795_v27, %v1627_v53  ;;  %v6502_v52 = vld [vmem:[#allocation27_spill] sm:$0xff]  ;;  %v1465_v53 = vadd.f32 %v5388_v30, %v6503_v8 }
 0x3b7   :  { %v6506_v8 = vld [vmem:[#allocation35_spill] sm:$0xff] }
 0x3b8   :  { %v1965_v61 = vadd.f32 %v5445_v0, %v1796_v26  ;;  %v5547_v0 = vpop.f32.mrf.mxu2 }
 0x3b9   :  { %v1979_v4 = vpop.f32.mrf.mxu0 }
 0x3ba   :  { %v2064_v11 = vmax.f32 %v1965_v61, 0.0 }
 0x3bb   :  { %v5531_v22 = vpop.f32.mrf.mxu1 }
 0x3bc   :  { %v2413_v15 = vpack.c.bf16 %v5531_v22, %v5520_v41  ;;  %v6518_v41 = vpack.c.bf16 %v5473_v48, %v5456_v35  ;;  %v6521_v35 = vld [vmem:[#allocation19_spill] sm:$0xff] }
 0x3bd   :  { %v1797_v29 = vpop.f32.mrf.mxu3 }
 0x3be   :  { %v1798_v42 = vadd.f32 %v1797_v29, %v1629_v34  ;;  %2018 = vmatmul.bf16.gmra.mxu0 %v5540_v62  ;;  %v1634_v34 = vadd.f32 %v5425_v54, %v1465_v53  ;;  %v1470_v53 = vadd.f32 %v5388_v30, %v6506_v8 }
 0x3c0   :  { %v1967_v5 = vadd.f32 %v5466_v23, %v1798_v42  ;;  %v1463_v23 = vadd.f32 %v5388_v30, %v6502_v52  ;;  %v5558_v61 = vpop.f32.mrf.mxu2  ;;  %v6505_v52 = vld [vmem:[#allocation33_spill] sm:$0xff] }
 0x3c1   :  { %2456 = vmatmul.bf16.gmra.mxu2 %v6501_v7  ;;  %v1981_v21 = vpop.f32.mrf.mxu0  ;;  %v6504_v7 = vld [vmem:[#allocation10_spill] sm:$0xff] }
 0x3c2   :  { %v2065_v63 = vmax.f32 %v1967_v5, 0.0  ;;  %1839 = vmatmul.bf16.gmra.mxu3 %v5537_v9  ;;  %v1632_v27 = vadd.f32 %v5401_v43, %v1463_v23  ;;  %v5561_v5 = vor.u32 %v4208_v51, %v4019_v25  ;;  %v1468_v23 = vadd.f32 %v5388_v30, %v6505_v52  ;;  %v4035_v51 = vld [vmem:[#allocation2 + $0x3e8] sm:$0xf] }
 0x3c3   :  { %v5544_v28 = vpop.f32.mrf.mxu1 }
 0x3c4   :  { %v2108_v19 = vpack.c.bf16 %v2065_v63, %v2064_v11 }
 0x3c5   :  { %v1800_v12 = vpop.f32.mrf.mxu3 }
 0x3c6   :  { %4069 = vmatmul.msk.bf16.gmra.mxu1 %vm2136_vm2, %v2108_v19  ;;  %v1801_v40 = vadd.f32 %v1800_v12, %v1632_v27 }
 0x3c8   :  { %v1970_v42 = vadd.f32 %v5484_v36, %v1801_v40  ;;  %v1637_v36 = vadd.f32 %v5450_v46, %v1468_v23  ;;  %v5572_v27 = vpop.f32.mrf.mxu2 }
 0x3ca   :  { %v2066_v11 = vmax.f32 %v1970_v42, 0.0 }
 0x3cb   :  { %v5555_v26 = vpop.f32.mrf.mxu1 }
 0x3cd   :  { %v1802_v29 = vpop.f32.mrf.mxu3 }
 0x3ce   :  { %v1803_v32 = vadd.f32 %v1802_v29, %v1634_v34  ;;  %v4212_v34 = vld [vmem:[#allocation2 + $0x3f4] sm:$0xf0]  ;;  %v1639_v29 = vadd.f32 %v5476_v16, %v1470_v53  ;;  %v6508_v16 = vld [vmem:[#allocation39_spill] sm:$0xff] }
 0x3cf   :  { %v1473_v53 = vadd.f32 %v5388_v30, %v6508_v16 }
 0x3d0   :  { %v1972_v43 = vadd.f32 %v5499_v33, %v1803_v32  ;;  %v1984_v33 = vpop.f32.mrf.mxu0 }
 0x3d1   :  { %2461 = vmatmul.bf16.gmra.mxu2 %v6504_v7  ;;  %v5580_v7 = vor.u32 %v4212_v34, %v4035_v51 }
 0x3d2   :  { %v2067_v63 = vmax.f32 %v1972_v43, 0.0  ;;  %1844 = vmatmul.bf16.gmra.mxu3 %v5561_v5 }
 0x3d3   :  { %v5566_v19 = vpop.f32.mrf.mxu1 }
 0x3d4   :  { %v2109_v54 = vpack.c.bf16 %v2067_v63, %v2066_v11  ;;  %v6507_v11 = vld [vmem:[#allocation12_spill] sm:$0xff]  ;;  %v5583_v63 = vpop.f32.mrf.mxu2 }
 0x3d5   :  { %v1805_v12 = vpop.f32.mrf.mxu3 }
 0x3d6   :  { %4070 = vmatmul.msk.bf16.gmra.mxu1 %vm2136_vm2, %v2109_v54  ;;  %v1806_v40 = vadd.f32 %v1805_v12, %v1637_v36 }
 0x3d8   :  { %v1975_v32 = vadd.f32 %v5514_v57, %v1806_v40  ;;  %v1986_v23 = vpop.f32.mrf.mxu0  ;;  %v1642_v57 = vadd.f32 %v5495_v45, %v1473_v53 }
 0x3da   :  { %v2068_v54 = vmax.f32 %v1975_v32, 0.0 }
 0x3db   :  { %v5576_v25 = vpop.f32.mrf.mxu1 }
 0x3dd   :  { %v1807_v42 = vpop.f32.mrf.mxu3 }
 0x3de   :  { %v1808_v43 = vadd.f32 %v1807_v42, %v1639_v29  ;;  %v5593_v42 = vpop.f32.mrf.mxu2 }
 0x3e0   :  { %v1977_v46 = vadd.f32 %v1976_v55, %v1808_v43  ;;  %v6509_v55 = vld [vmem:[#allocation41_spill] sm:$0xff]  ;;  %v1989_v43 = vpop.f32.mrf.mxu0 }
 0x3e1   :  { %2466 = vmatmul.bf16.gmra.mxu2 %v6507_v11  ;;  %v1475_v40 = vadd.f32 %v5388_v30, %v6509_v55 }
 0x3e2   :  { %v2069_v52 = vmax.f32 %v1977_v46, 0.0  ;;  %1849 = vmatmul.bf16.gmra.mxu3 %v5580_v7 }
 0x3e3   :  { %v2312_v12 = vpop.f32.mrf.mxu1  ;;  %v1644_v29 = vadd.f32 %v5511_v50, %v1475_v40 }
 0x3e4   :  { %v2110_v36 = vpack.c.bf16 %v2069_v52, %v2068_v54  ;;  %v6510_v52 = vld [vmem:[#allocation14_spill] sm:$0xff] }
 0x3e5   :  { %v1810_v8 = vpop.f32.mrf.mxu3 }
 0x3e6   :  { %4071 = vmatmul.msk.bf16.gmra.mxu1 %vm2136_vm2, %v2110_v36  ;;  %v1811_v51 = vadd.f32 %v1810_v8, %v1642_v57  ;;  %v1478_v8 = vadd.f32 %v5388_v30, %v6511_v17  ;;  %v5598_v57 = vpop.f32.mrf.mxu2 }
 0x3e8   :  { %v1980_v46 = vadd.f32 %v1979_v4, %v1811_v51  ;;  %v1991_v50 = vpop.f32.mrf.mxu0  ;;  %v1647_v55 = vadd.f32 %v5529_v1, %v1478_v8  ;;  %v6512_v4 = vld [vmem:[#allocation47_spill] sm:$0xff] }
 0x3ea   :  { %v2070_v16 = vmax.f32 %v1980_v46, 0.0 }
 0x3eb   :  { %v2314_v34 = vpop.f32.mrf.mxu1 }
 0x3ed   :  { %v1812_v32 = vpop.f32.mrf.mxu3 }
 0x3ee   :  { %v1813_v11 = vadd.f32 %v1812_v32, %v1644_v29  ;;  %v5605_v17 = vpop.f32.mrf.mxu2 }
 0x3f0   :  { %v1982_v54 = vadd.f32 %v1981_v21, %v1813_v11  ;;  %v1480_v21 = vadd.f32 %v5388_v30, %v6512_v4 }
 0x3f1   :  { %2471 = vmatmul.bf16.gmra.mxu2 %v6510_v52  ;;  %v2416_v52 = vpack.c.bf16 %v2314_v34, %v2312_v12  ;;  %v6515_v34 = vld [vmem:[#allocation53_spill] sm:$0xff] }
 0x3f2   :  { %v2071_v36 = vmax.f32 %v1982_v54, 0.0  ;;  %v1649_v29 = vadd.f32 %v5547_v0, %v1480_v21  ;;  %v2415_v0 = vpack.c.bf16 %v5576_v25, %v5566_v19  ;;  %v1485_v21 = vadd.f32 %v5388_v30, %v6515_v34  ;;  %v6522_v34 = vld [vmem:[#allocation21_spill] sm:$0xff] }
 0x3f3   :  { %v2317_v60 = vpop.f32.mrf.mxu1 }
 0x3f4   :  { %v2111_v45 = vpack.c.bf16 %v2071_v36, %v2070_v16  ;;  %v1994_v36 = vpop.f32.mrf.mxu0 }
 0x3f5   :  { %v1815_v53 = vpop.f32.mrf.mxu3 }
 0x3f6   :  { %4072 = vmatmul.msk.bf16.gmra.mxu1 %vm2136_vm2, %v2111_v45  ;;  %v1816_v40 = vadd.f32 %v1815_v53, %v1647_v55  ;;  %v6513_v45 = vld [vmem:[#allocation16_spill] sm:$0xff] }
 0x3f8   :  { %v1985_v11 = vadd.f32 %v1984_v33, %v1816_v40  ;;  %v6514_v33 = vld [vmem:[#allocation51_spill] sm:$0xff]  ;;  %v5620_v40 = vpop.f32.mrf.mxu2 }
 0x3f9   :  { %v1483_v55 = vadd.f32 %v5388_v30, %v6514_v33 }
 0x3fa   :  { %v2072_v1 = vmax.f32 %v1985_v11, 0.0 }
 0x3fb   :  { %v2319_v51 = vpop.f32.mrf.mxu1  ;;  %v1652_v12 = vadd.f32 %v5558_v61, %v1483_v55 }
 0x3fc   :  { %v2417_v32 = vpack.c.bf16 %v2319_v51, %v2317_v60  ;;  %v1996_v25 = vpop.f32.mrf.mxu0 }
 0x3fd   :  { %v1817_v46 = vpop.f32.mrf.mxu3 }
 0x3fe   :  { %v1818_v54 = vadd.f32 %v1817_v46, %v1649_v29  ;;  %2607 = vmatpush.bf16.msra.mxu3 %v2417_v32  ;;  %v1654_v29 = vadd.f32 %v5572_v27, %v1485_v21 }
 0x400   :  { %v1987_v16 = vadd.f32 %v1986_v23, %v1818_v54  ;;  %v2414_v23 = vpack.c.bf16 %v5555_v26, %v5544_v28  ;;  %v6516_v26 = vld [vmem:[#allocation18_spill] sm:$0xff] }
 0x401   :  { %2476 = vmatmul.bf16.gmra.mxu2 %v6513_v45 }
 0x402   :  { %v2073_v8 = vmax.f32 %v1987_v16, 0.0  ;;  %2608 = vmatpush.bf16.msra.mxu3 %v2416_v52  ;;  %v1668_v16 = vpop.f32.mrf.mxu2 }
 0x403   :  { %v5608_v4 = vpop.f32.mrf.mxu1 }
 0x404   :  { %v2112_v60 = vpack.c.bf16 %v2073_v8, %v2072_v1  ;;  %v6517_v8 = vld [vmem:[#allocation57_spill] sm:$0xff] }
 0x405   :  { %v1820_v53 = vpop.f32.mrf.mxu3 }
 0x406   :  { %4073 = vmatmul.msk.bf16.gmra.mxu1 %vm2136_vm2, %v2112_v60  ;;  %2609 = vmatpush.bf16.msra.mxu3 %v2415_v0  ;;  %v1821_v51 = vadd.f32 %v1820_v53, %v1652_v12  ;;  %v1488_v0 = vadd.f32 %v5388_v30, %v6517_v8  ;;  %v6525_v8 = vld [vmem:[#allocation22_spill] sm:$0xff] }
 0x408   :  { %v1990_v61 = vadd.f32 %v1989_v43, %v1821_v51  ;;  %v1999_v43 = vpop.f32.mrf.mxu0  ;;  %v1657_v22 = vadd.f32 %v5583_v63, %v1488_v0 }
 0x40a   :  { %2610 = vmatpush.bf16.msra.mxu3 %v2414_v23  ;;  %v2074_v54 = vmax.f32 %v1990_v61, 0.0  ;;  %v1671_v48 = vpop.f32.mrf.mxu2 }
 0x40b   :  { %v5622_v19 = vpop.f32.mrf.mxu1 }
 0x40c   :  { %v2418_v32 = vpack.c.bf16 %v5622_v19, %v5608_v4  ;;  %v6549_v19 = vld [vmem:[#allocation61_spill] sm:$0xff] }
 0x40d   :  { %v1822_v46 = vpop.f32.mrf.mxu3 }
 0x40e   :  { %v1823_v11 = vadd.f32 %v1822_v46, %v1654_v29  ;;  %2611 = vmatpush.bf16.msra.mxu3 %v2413_v15  ;;  %v6519_v15 = vld [vmem:[#allocation59_spill] sm:$0xff] }
 0x40f   :  { %v1490_v31 = vadd.f32 %v5388_v30, %v6519_v15 }
 0x410   :  { %v1992_v28 = vadd.f32 %v1991_v50, %v1823_v11  ;;  %v2001_v12 = vpop.f32.mrf.mxu0 }
 0x411   :  { %2481 = vmatmul.bf16.gmra.mxu2 %v6516_v26  ;;  %v1659_v60 = vadd.f32 %v5593_v42, %v1490_v31  ;;  %v6523_v42 = vld [vmem:[#allocation63_spill] sm:$0xff] }
 0x412   :  { %v2075_v52 = vmax.f32 %v1992_v28, 0.0  ;;  %2612 = vmatpush.bf16.msra.mxu3 %v2412_v18  ;;  %v6520_v18 = vpack.c.bf16 %v5431_v39, %v5414_v38  ;;  %v1493_v46 = vadd.f32 %v5388_v30, %v6523_v42  ;;  %v1673_v11 = vpop.f32.mrf.mxu2  ;;  %v6524_v28 = vld [vmem:[#allocation65_spill] sm:$0xff] }
 0x413   :  { %v5634_v27 = vpop.f32.mrf.mxu1 }
 0x414   :  { %v2113_v45 = vpack.c.bf16 %v2075_v52, %v2074_v54  ;;  %v1662_v61 = vadd.f32 %v5598_v57, %v1493_v46  ;;  %v6526_v57 = vld [vmem:[#allocation24_spill] sm:$0xff]  ;;  %v6529_v46 = vld [vmem:[#allocation25_spill] sm:$0xff] }
 0x415   :  { %v1825_v1 = vpop.f32.mrf.mxu3 }
 0x416   :  { %4074 = vmatmul.msk.bf16.gmra.mxu1 %vm2136_vm2, %v2113_v45  ;;  %2613 = vmatpush.bf16.msra.mxu3 %v6518_v41  ;;  %v1826_v59 = vadd.f32 %v1825_v1, %v1657_v22 }
 0x418   :  { %v1995_v63 = vadd.f32 %v1994_v36, %v1826_v59  ;;  %v2004_v36 = vpop.f32.mrf.mxu0 }
 0x41a   :  { %2614 = vmatpush.bf16.msra.mxu3 %v6520_v18  ;;  %v2076_v21 = vmax.f32 %v1995_v63, 0.0  ;;  %v1676_v15 = vpop.f32.mrf.mxu2 }
 0x41b   :  { %v5648_v50 = vpop.f32.mrf.mxu1 }
 0x41c   :  { %v2419_v53 = vpack.c.bf16 %v5648_v50, %v5634_v27  ;;  %v6548_v27 = vld [vmem:[#allocation72_spill] sm:$0xff] }
 0x41d   :  { %v1827_v33 = vpop.f32.mrf.mxu3  ;;  %2615 = vmatmul.bf16.vlgmr.msra.gmra.mxu3 %v6521_v35 }
 0x41e   :  { %v1828_v55 = vadd.f32 %v1827_v33, %v1659_v60 }
 0x420   :  { %v1997_v23 = vadd.f32 %v1996_v25, %v1828_v55  ;;  %v1495_v25 = vadd.f32 %v5388_v30, %v6524_v28  ;;  %v2006_v60 = vpop.f32.mrf.mxu0 }
 0x421   :  { %2486 = vmatmul.bf16.gmra.mxu2 %v6522_v34 }
 0x422   :  { %v2077_v38 = vmax.f32 %v1997_v23, 0.0  ;;  %v1664_v52 = vadd.f32 %v5605_v17, %v1495_v25  ;;  %v6527_v17 = vld [vmem:[#allocation69_spill] sm:$0xff] }
 0x423   :  { %v5655_v39 = vpop.f32.mrf.mxu1  ;;  %v1498_v63 = vadd.f32 %v5388_v30, %v6527_v17 }
 0x424   :  { %v2114_v51 = vpack.c.bf16 %v2077_v38, %v2076_v21  ;;  %v1678_v38 = vpop.f32.mrf.mxu2 }
 0x425   :  { %v1830_v29 = vpop.f32.mrf.mxu3  ;;  %v1667_v55 = vadd.f32 %v5620_v40, %v1498_v63  ;;  %v6533_v63 = vld [vmem:[#allocation30_spill] sm:$0xff] }
 0x426   :  { %4075 = vmatmul.msk.bf16.gmra.mxu1 %vm2136_vm2, %v2114_v51  ;;  %v1831_v26 = vadd.f32 %v1830_v29, %v1662_v61 }
 0x428   :  { %v2000_v0 = vadd.f32 %v1999_v43, %v1831_v26  ;;  %v6528_v43 = vld [vmem:[#allocation71_spill] sm:$0xff]  ;;  %v2009_v42 = vpop.f32.mrf.mxu0  ;;  %v6530_v26 = vld [vmem:[#allocation28_spill] sm:$0xff] }
 0x42a   :  { %v2078_v31 = vmax.f32 %v2000_v0, 0.0 }
 0x42b   :  { %v5663_v54 = vpop.f32.mrf.mxu1 }
 0x42c   :  { %v2420_v45 = vpack.c.bf16 %v5663_v54, %v5655_v39  ;;  %v6546_v39 = vld [vmem:[#allocation66_spill] sm:$0xff] }
 0x42d   :  { %v1832_v1 = vpop.f32.mrf.mxu3  ;;  %2620 = vmatmul.bf16.gmra.mxu3 %v6525_v8 }
 0x42e   :  { %v1833_v41 = vadd.f32 %v1832_v1, %v1664_v52 }
 0x430   :  { %v2002_v22 = vadd.f32 %v2001_v12, %v1833_v41  ;;  %v1500_v12 = vadd.f32 %v5388_v30, %v6528_v43 }
 0x431   :  { %2491 = vmatmul.bf16.gmra.mxu2 %v6526_v57  ;;  %v2011_v57 = vpop.f32.mrf.mxu0 }
 0x432   :  { %v2079_v59 = vmax.f32 %v2002_v22, 0.0  ;;  %v1669_v21 = vadd.f32 %v1668_v16, %v1500_v12  ;;  %v6531_v16 = vld [vmem:[#allocation75_spill] sm:$0xff]  ;;  %v1681_v22 = vpop.f32.mrf.mxu2 }
 0x433   :  { %v5670_v18 = vpop.f32.mrf.mxu1  ;;  %v1503_v41 = vadd.f32 %v5388_v30, %v6531_v16 }
 0x434   :  { %v2115_v33 = vpack.c.bf16 %v2079_v59, %v2078_v31  ;;  %v6532_v59 = vld [vmem:[#allocation77_spill] sm:$0xff] }
 0x435   :  { %v1835_v35 = vpop.f32.mrf.mxu3  ;;  %v1672_v31 = vadd.f32 %v1671_v48, %v1503_v41 }
 0x436   :  { %4076 = vmatmul.msk.bf16.gmra.mxu1 %vm2136_vm2, %v2115_v33  ;;  %v1836_v23 = vadd.f32 %v1835_v35, %v1667_v55 }
 0x438   :  { %v2005_v61 = vadd.f32 %v2004_v36, %v1836_v23  ;;  %v1505_v36 = vadd.f32 %v5388_v30, %v6532_v59 }
 0x43a   :  { %v2080_v40 = vmax.f32 %v2005_v61, 0.0  ;;  %v1674_v35 = vadd.f32 %v1673_v11, %v1505_v36  ;;  %v1683_v23 = vpop.f32.mrf.mxu2 }
 0x43b   :  { %v5678_v34 = vpop.f32.mrf.mxu1 }
 0x43c   :  { %v2421_v51 = vpack.c.bf16 %v5678_v34, %v5670_v18 }
 0x43d   :  { %v1837_v29 = vpop.f32.mrf.mxu3  ;;  %2625 = vmatmul.bf16.gmra.mxu3 %v6529_v46 }
 0x43e   :  { %v1838_v28 = vadd.f32 %v1837_v29, %v1669_v21  ;;  %v2014_v21 = vpop.f32.mrf.mxu0  ;;  %v6534_v29 = vld [vmem:[#allocation34_spill] sm:$0xff] }
 0x440   :  { %v2007_v25 = vadd.f32 %v2006_v60, %v1838_v28 }
 0x441   :  { %2496 = vmatmul.bf16.gmra.mxu2 %v6530_v26  ;;  %v6535_v26 = vld [vmem:[#allocation81_spill] sm:$0xff] }
 0x442   :  { %v2081_v52 = vmax.f32 %v2007_v25, 0.0 }
 0x443   :  { %v5684_v1 = vpop.f32.mrf.mxu1 }
 0x444   :  { %v2116_v8 = vpack.c.bf16 %v2081_v52, %v2080_v40  ;;  %v1508_v40 = vadd.f32 %v5388_v30, %v6535_v26  ;;  %v6536_v52 = vld [vmem:[#allocation82_spill] sm:$0xff] }
 0x445   :  { %v1840_v0 = vpop.f32.mrf.mxu3 }
 0x446   :  { %4077 = vmatmul.msk.bf16.gmra.mxu1 %vm2136_vm2, %v2116_v8  ;;  %v1841_v60 = vadd.f32 %v1840_v0, %v1672_v31  ;;  %v1677_v11 = vadd.f32 %v1676_v15, %v1508_v40  ;;  %v2016_v0 = vpop.f32.mrf.mxu0  ;;  %v6537_v31 = vld [vmem:[#allocation36_spill] sm:$0xff]  ;;  %v6538_v15 = vld [vmem:[#allocation86_spill] sm:$0xff] }
 0x447   :  { %v6540_v40 = vld [vmem:[#allocation42_spill] sm:$0xff] }
 0x448   :  { %v2010_v55 = vadd.f32 %v2009_v42, %v1841_v60  ;;  %v1510_v42 = vadd.f32 %v5388_v30, %v6536_v52 }
 0x44a   :  { %v2082_v46 = vmax.f32 %v2010_v55, 0.0  ;;  %v1679_v41 = vadd.f32 %v1678_v38, %v1510_v42 }
 0x44b   :  { %v2344_v33 = vpop.f32.mrf.mxu1 }
 0x44d   :  { %v1842_v17 = vpop.f32.mrf.mxu3  ;;  %2630 = vmatmul.bf16.gmra.mxu3 %v6533_v63 }
 0x44e   :  { %v1843_v43 = vadd.f32 %v1842_v17, %v1674_v35 }
 0x450   :  { %v2012_v12 = vadd.f32 %v2011_v57, %v1843_v43  ;;  %v2019_v43 = vpop.f32.mrf.mxu0 }
 0x451   :  { %2501 = vmatmul.bf16.gmra.mxu2 %v6534_v29  ;;  %v1513_v29 = vadd.f32 %v5388_v30, %v6538_v15 }
 0x452   :  { %v2083_v61 = vmax.f32 %v2012_v12, 0.0 }
 0x453   :  { %v2347_v28 = vpop.f32.mrf.mxu1 }
 0x454   :  { %v2117_v48 = vpack.c.bf16 %v2083_v61, %v2082_v46  ;;  %v1682_v46 = vadd.f32 %v1681_v22, %v1513_v29  ;;  %v6539_v61 = vld [vmem:[#allocation87_spill] sm:$0xff] }
 0x455   :  { %v1845_v25 = vpop.f32.mrf.mxu3  ;;  %v1515_v38 = vadd.f32 %v5388_v30, %v6539_v61 }
 0x456   :  { %4078 = vmatmul.msk.bf16.gmra.mxu1 %vm2136_vm2, %v2117_v48  ;;  %v1846_v8 = vadd.f32 %v1845_v25, %v1677_v11 }
 0x458   :  { %v2015_v59 = vadd.f32 %v2014_v21, %v1846_v8  ;;  %v1684_v21 = vadd.f32 %v1683_v23, %v1515_v38  ;;  %v2021_v42 = vpop.f32.mrf.mxu0 }
 0x45a   :  { %v2084_v35 = vmax.f32 %v2015_v59, 0.0 }
 0x45b   :  { %v2349_v16 = vpop.f32.mrf.mxu1 }
 0x45d   :  { %v1847_v57 = vpop.f32.mrf.mxu3  ;;  %2635 = vmatmul.bf16.gmra.mxu3 %v6537_v31 }
 0x45e   :  { %v1848_v36 = vadd.f32 %v1847_v57, %v1679_v41 }
 0x460   :  { %v2017_v60 = vadd.f32 %v2016_v0, %v1848_v36  ;;  %v6541_v36 = vld [vmem:[#allocation48_spill] sm:$0xff] }
 0x462   :  { %v2085_v17 = vmax.f32 %v2017_v60, 0.0  ;;  %v2423_v60 = vpack.c.bf16 %v2349_v16, %v2347_v28  ;;  %v6544_v28 = vld [vmem:[#allocation60_spill] sm:$0xff]  ;;  %v6547_v16 = vld [vmem:[#allocation55_spill] sm:$0xff] }
 0x463   :  { %v2352_v63 = vpop.f32.mrf.mxu1 }
 0x464   :  { %v2118_v55 = vpack.c.bf16 %v2085_v17, %v2084_v35  ;;  %v2422_v35 = vpack.c.bf16 %v2344_v33, %v5684_v1  ;;  %v6543_v33 = vld [vmem:[#allocation43_spill] sm:$0xff] }
 0x465   :  { %v1850_v12 = vpop.f32.mrf.mxu3 }
 0x466   :  { %4079 = vmatmul.msk.bf16.gmra.mxu1 %vm2136_vm2, %v2118_v55  ;;  %v1851_v48 = vadd.f32 %v1850_v12, %v1682_v46  ;;  %v6542_v55 = vld [vmem:[#allocation54_spill] sm:$0xff]  ;;  %v6551_v12 = vld [vmem:[#allocation67_spill] sm:$0xff]  ;;  %v6552_v46 = vld [vmem:[#allocation73_spill] sm:$0xff] }
 0x468   :  { %v2020_v11 = vadd.f32 %v2019_v43, %v1851_v48 }
 0x46a   :  { %v2086_v0 = vmax.f32 %v2020_v11, 0.0 }
 0x46b   :  { %v2354_v25 = vpop.f32.mrf.mxu1 }
 0x46c   :  { %v2424_v30 = vpack.c.bf16 %v2354_v25, %v2352_v63  ;;  %v6553_v25 = vld [vmem:[#allocation79_spill] sm:$0xff] }
 0x46d   :  { %v1852_v26 = vpop.f32.mrf.mxu3  ;;  %2640 = vmatmul.bf16.gmra.mxu3 %v6540_v40 }
 0x46e   :  { %v1853_v52 = vadd.f32 %v1852_v26, %v1684_v21 }
 0x470   :  { %v2022_v8 = vadd.f32 %v2021_v42, %v1853_v52  ;;  %v6554_v52 = vld [vmem:[#allocation84_spill] sm:$0xff] }
 0x472   :  { %v2087_v41 = vmax.f32 %v2022_v8, 0.0 }
 0x473   :  { %v2357_v57 = vpop.f32.mrf.mxu1 }
 0x474   :  { %v2119_v31 = vpack.c.bf16 %v2087_v41, %v2086_v0  ;;  %v6555_v41 = vld [vmem:[#allocation32_spill] sm:$0xff] }
 0x476   :  { %4080 = vmatmul.msk.bf16.gmra.mxu1 %vm2136_vm2, %v2119_v31  ;;  %v6557_v31 = vld [vmem:[#allocation38_spill] sm:$0xff] }
 0x47b   :  { %v2359_v22 = vpop.f32.mrf.mxu1 }
 0x47c   :  { %v2425_v59 = vpack.c.bf16 %v2359_v22, %v2357_v57  ;;  %v6556_v57 = vld [vmem:[#allocation89_spill] sm:$0xff]  ;;  %v6558_v22 = vld [vmem:[#allocation44_spill] sm:$0xff] }
 0x47d   :  { %2645 = vmatmul.bf16.gmra.mxu3 %v6541_v36  ;;  %v6560_v36 = vld [vmem:[#allocation50_spill] sm:$0xff] }
 0x47e   :  { %2776 = vmatpush.bf16.msra.mxu0 %v2425_v59  ;;  %v6559_v59 = vld [vmem:[#allocation94_spill] sm:$0xff] }
 0x482   :  { %2777 = vmatpush.bf16.msra.mxu0 %v2424_v30  ;;  %v6561_v30 = vld [vmem:[#allocation97_spill] sm:$0xff] }
 0x483   :  { %v2362_v23 = vpop.f32.mrf.mxu1 }
 0x486   :  { %2778 = vmatpush.bf16.msra.mxu0 %v2423_v60  ;;  %v6562_v60 = vld [vmem:[#allocation56_spill] sm:$0xff] }
 0x48a   :  { %2779 = vmatpush.bf16.msra.mxu0 %v2422_v35  ;;  %v6563_v35 = vld [vmem:[#allocation62_spill] sm:$0xff] }
 0x48b   :  { %v2364_v17 = vpop.f32.mrf.mxu1 }
 0x48c   :  { %v2426_v0 = vpack.c.bf16 %v2364_v17, %v2362_v23  ;;  %v2447_v23 = vpop.f32.mrf.mxu2  ;;  %v5746_v17 = vld [vmem:[%s6254_s5] ss:$0 sm:$0xff] }
 0x48d   :  { %2650 = vmatmul.bf16.gmra.mxu3 %v6542_v55 }
 0x48e   :  { %2780 = vmatpush.bf16.msra.mxu0 %v2421_v51  ;;  %v6545_v51 = vld [vmem:[#allocation49_spill] sm:$0xff] }
 0x492   :  { %2781 = vmatpush.bf16.msra.mxu0 %v2420_v45 }
 0x493   :  { %v2367_v43 = vpop.f32.mrf.mxu1 }
 0x496   :  { %2782 = vmatpush.bf16.msra.mxu0 %v2419_v53 }
 0x49a   :  { %2783 = vmatpush.bf16.msra.mxu0 %v2418_v32  ;;  %v6550_v32 = vld [vmem:[#allocation78_spill] sm:$0xff] }
 0x49b   :  { %v2369_v1 = vpop.f32.mrf.mxu1 }
 0x49c   :  { %v2427_v8 = vpack.c.bf16 %v2369_v1, %v2367_v43  ;;  %v2448_v43 = vadd.f32 %v5746_v17, %v2447_v23 }
 0x49d   :  { %2784 = vmatmul.bf16.vlgmr.msra.gmra.mxu0 %v6543_v33  ;;  %2655 = vmatmul.bf16.gmra.mxu3 %v6544_v28  ;;  %v2449_v28 = vpop.f32.mrf.mxu2 }
 0x4a0   :  { %v2616_v55 = vpop.f32.mrf.mxu3 }
 0x4a1   :  { %v2617_v1 = vadd.f32 %v2616_v55, %v2448_v43 }
 0x4a3   :  { %v2372_v18 = vpop.f32.mrf.mxu1 }
 0x4ab   :  { %v2374_v34 = vpop.f32.mrf.mxu1 }
 0x4ac   :  { %v2428_v42 = vpack.c.bf16 %v2374_v34, %v2372_v18  ;;  %v6564_v18 = vld [vmem:[#allocation40_spill] sm:$0xff]  ;;  %v2450_v34 = vadd.f32 %v5746_v17, %v2449_v28 }
 0x4ad   :  { %2789 = vmatmul.bf16.gmra.mxu0 %v6545_v51  ;;  %2660 = vmatmul.bf16.gmra.mxu3 %v6546_v39  ;;  %v2618_v51 = vpop.f32.mrf.mxu3  ;;  %v6565_v39 = vld [vmem:[#allocation83_spill] sm:$0xff] }
 0x4ae   :  { %2506 = vmatmul.bf16.gmra.mxu2 %v6564_v18 }
 0x4b3   :  { %v2377_v54 = vpop.f32.mrf.mxu1 }
 0x4bb   :  { %v2379_v45 = vpop.f32.mrf.mxu1 }
 0x4bc   :  { %v2429_v11 = vpack.c.bf16 %v2379_v45, %v2377_v54  ;;  %v2619_v54 = vadd.f32 %v2618_v51, %v2450_v34  ;;  %v6575_v51 = vld [vmem:[#allocation58_spill] sm:$0xff] }
 0x4bd   :  { %2794 = vmatmul.bf16.gmra.mxu0 %v6547_v16  ;;  %2665 = vmatmul.bf16.gmra.mxu3 %v6548_v27  ;;  %v2452_v27 = vpop.f32.mrf.mxu2 }
 0x4c3   :  { %v2382_v50 = vpop.f32.mrf.mxu1 }
 0x4cb   :  { %v2384_v4 = vpop.f32.mrf.mxu1 }
 0x4cc   :  { %v2430_v40 = vpack.c.bf16 %v2384_v4, %v2382_v50  ;;  %v6566_v50 = vld [vmem:[#allocation68_spill] sm:$0xff]  ;;  %v2621_v4 = vpop.f32.mrf.mxu3 }
 0x4cd   :  { %2799 = vmatmul.bf16.gmra.mxu0 %v6549_v19  ;;  %2670 = vmatmul.bf16.gmra.mxu3 %v6550_v32  ;;  %v2454_v32 = vpop.f32.mrf.mxu2 }
 0x4d3   :  { %v2387_v53 = vpop.f32.mrf.mxu1 }
 0x4db   :  { %v2389_v63 = vpop.f32.mrf.mxu1 }
 0x4dc   :  { %v2431_v26 = vpack.c.bf16 %v2389_v63, %v2387_v53  ;;  %v6567_v53 = vld [vmem:[#allocation46_spill] sm:$0xff]  ;;  %v2453_v63 = vadd.f32 %v5746_v17, %v2452_v27  ;;  %v6576_v27 = vld [vmem:[#allocation93_spill] sm:$0xff] }
 0x4dd   :  { %2804 = vmatmul.bf16.gmra.mxu0 %v6551_v12  ;;  %2675 = vmatmul.bf16.gmra.mxu3 %v6565_v39  ;;  %v2455_v12 = vadd.f32 %v5746_v17, %v2454_v32 }
 0x4de   :  { %2511 = vmatmul.bf16.gmra.mxu2 %v6567_v53 }
 0x4e3   :  { %v2392_v15 = vpop.f32.mrf.mxu1 }
 0x4eb   :  { %v2394_v29 = vpop.f32.mrf.mxu1 }
 0x4ec   :  { %v2432_v21 = vpack.c.bf16 %v2394_v29, %v2392_v15  ;;  %v2623_v15 = vpop.f32.mrf.mxu3  ;;  %v6568_v29 = vld [vmem:[#allocation88_spill] sm:$0xff] }
 0x4ed   :  { %2809 = vmatmul.bf16.gmra.mxu0 %v6552_v46  ;;  %2680 = vmatmul.bf16.gmra.mxu3 %v6568_v29  ;;  %v2622_v46 = vadd.f32 %v2621_v4, %v2453_v63 }
 0x4f3   :  { %v2397_v61 = vpop.f32.mrf.mxu1 }
 0x4fb   :  { %v2399_v38 = vpop.f32.mrf.mxu1 }
 0x4fc   :  { %v2433_v48 = vpack.c.bf16 %v2399_v38, %v2397_v61  ;;  %v2624_v61 = vadd.f32 %v2623_v15, %v2455_v12  ;;  %v6577_v12 = vld [vmem:[#allocation85_spill] sm:$0xff] }
 0x4fd   :  { %2814 = vmatmul.bf16.gmra.mxu0 %v6553_v25 }
 0x4fe   :  { %2945 = vmatpush.bf16.msra.mxu1 %v2433_v48 }
 0x502   :  { %2946 = vmatpush.bf16.msra.mxu1 %v2432_v21  ;;  %v2457_v21 = vpop.f32.mrf.mxu2 }
 0x506   :  { %2947 = vmatpush.bf16.msra.mxu1 %v2431_v26  ;;  %v6570_v26 = vld [vmem:[#allocation74_spill] sm:$0xff] }
 0x50a   :  { %2948 = vmatpush.bf16.msra.mxu1 %v2430_v40  ;;  %v2626_v40 = vpop.f32.mrf.mxu3 }
 0x50d   :  { %2819 = vmatmul.bf16.gmra.mxu0 %v6554_v52  ;;  %v2459_v52 = vpop.f32.mrf.mxu2 }
 0x50e   :  { %2949 = vmatpush.bf16.msra.mxu1 %v2429_v11 }
 0x512   :  { %2950 = vmatpush.bf16.msra.mxu1 %v2428_v42  ;;  %v6571_v42 = vld [vmem:[#allocation52_spill] sm:$0xff] }
 0x513   :  { %2516 = vmatmul.bf16.gmra.mxu2 %v6571_v42  ;;  %v6580_v42 = vld [vmem:[#allocation110_spill] sm:$0xff] }
 0x515   :  { %v2462_v55 = vpop.f32.mrf.mxu2 }
 0x516   :  { %2951 = vmatpush.bf16.msra.mxu1 %v2427_v8  ;;  %v2458_v8 = vadd.f32 %v5746_v17, %v2457_v21  ;;  %v2463_v39 = vadd.f32 %v5746_v17, %v2462_v55 }
 0x51a   :  { %2952 = vmatpush.bf16.msra.mxu1 %v2426_v0  ;;  %v2460_v0 = vadd.f32 %v5746_v17, %v2459_v52 }
 0x51d   :  { %2953 = vmatmul.bf16.vlgmr.msra.gmra.mxu1 %v6555_v41  ;;  %2824 = vmatmul.bf16.gmra.mxu0 %v6556_v57  ;;  %v2628_v41 = vpop.f32.mrf.mxu3  ;;  %v6572_v57 = vld [vmem:[#allocation91_spill] sm:$0xff]  ;;  %v2464_v34 = vpop.f32.mrf.mxu2 }
 0x51e   :  { %2685 = vmatmul.bf16.gmra.mxu3 %v6572_v57 }
 0x523   :  { %2521 = vmatmul.bf16.gmra.mxu2 %v6575_v51 }
 0x525   :  { %v2631_v43 = vpop.f32.mrf.mxu3  ;;  %v2467_v63 = vpop.f32.mrf.mxu2 }
 0x526   :  { %v2468_v21 = vadd.f32 %v5746_v17, %v2467_v63 }
 0x52d   :  { %2958 = vmatmul.bf16.gmra.mxu1 %v6557_v31  ;;  %2829 = vmatmul.bf16.gmra.mxu0 %v4926_v2  ;;  %v2785_v2 = vpop.f32.mrf.mxu0  ;;  %v2627_v31 = vadd.f32 %v2626_v40, %v2458_v8  ;;  %v6579_v40 = vld [vmem:[#allocation96_spill] sm:$0xff] }
 0x52e   :  { %v2786_v33 = vadd.f32 %v2785_v2, %v2617_v1  ;;  %v6574_v2 = vld [vmem:[#allocation80_spill] sm:$0xff] }
 0x535   :  { %v2787_v45 = vpop.f32.mrf.mxu0 }
 0x536   :  { %v2788_v16 = vadd.f32 %v2787_v45, %v2619_v54  ;;  %v2465_v54 = vadd.f32 %v5746_v17, %v2464_v34  ;;  %v2633_v45 = vpop.f32.mrf.mxu3  ;;  %2690 = vmatmul.bf16.gmra.mxu3 %v6576_v27  ;;  %v6583_v34 = vld [vmem:[#allocation99_spill] sm:$0xff] }
 0x53d   :  { %2963 = vmatmul.bf16.gmra.mxu1 %v6558_v22  ;;  %2834 = vmatmul.bf16.gmra.mxu0 %v6559_v59  ;;  %v2790_v19 = vpop.f32.mrf.mxu0  ;;  %v2629_v22 = vadd.f32 %v2628_v41, %v2460_v0 }
 0x53e   :  { %v2791_v48 = vadd.f32 %v2790_v19, %v2622_v46  ;;  %v2636_v15 = vpop.f32.mrf.mxu3 }
 0x545   :  { %v2792_v38 = vpop.f32.mrf.mxu0 }
 0x546   :  { %v2793_v25 = vadd.f32 %v2792_v38, %v2624_v61  ;;  %v2469_v38 = vpop.f32.mrf.mxu2 }
 0x54d   :  { %2968 = vmatmul.bf16.gmra.mxu1 %v6560_v36  ;;  %2839 = vmatmul.bf16.gmra.mxu0 %v6561_v30  ;;  %v2795_v11 = vpop.f32.mrf.mxu0  ;;  %v6573_v36 = vld [vmem:[#allocation105_spill] sm:$0xff] }
 0x54e   :  { %v2796_v30 = vadd.f32 %v2795_v11, %v2627_v31  ;;  %v2472_v57 = vpop.f32.mrf.mxu2  ;;  %v6581_v31 = vld [vmem:[#allocation90_spill] sm:$0xff] }
 0x555   :  { %v2797_v59 = vpop.f32.mrf.mxu0 }
 0x556   :  { %v2474_v55 = vpop.f32.mrf.mxu2 }
 0x55d   :  { %2973 = vmatmul.bf16.gmra.mxu1 %v6562_v60  ;;  %2844 = vmatmul.bf16.gmra.mxu0 %v5013_v56  ;;  %v6569_v56 = vld [vmem:[#allocation102_spill] sm:$0xff]  ;;  %v2798_v60 = vadd.f32 %v2797_v59, %v2629_v22  ;;  %v2800_v1 = vpop.f32.mrf.mxu0 }
 0x565   :  { %v2802_v4 = vpop.f32.mrf.mxu0 }
 0x56d   :  { %2978 = vmatmul.bf16.gmra.mxu1 %v6563_v35  ;;  %2849 = vmatmul.bf16.gmra.mxu0 %v6569_v56  ;;  %v2805_v29 = vpop.f32.mrf.mxu0  ;;  %v6578_v56 = vld [vmem:[#allocation64_spill] sm:$0xff] }
 0x56e   :  { %2526 = vmatmul.bf16.gmra.mxu2 %v6578_v56 }
 0x575   :  { %v2807_v52 = vpop.f32.mrf.mxu0 }
 0x57d   :  { %2983 = vmatmul.bf16.gmra.mxu1 %v6566_v50  ;;  %2854 = vmatmul.bf16.gmra.mxu0 %v6573_v36  ;;  %v2634_v50 = vadd.f32 %v2633_v45, %v2465_v54  ;;  %v2810_v59 = vpop.f32.mrf.mxu0  ;;  %v6584_v54 = vld [vmem:[#allocation113_spill] sm:$0xff] }
 0x57f   :  { %v2803_v32 = vadd.f32 %v2802_v4, %v2634_v50  ;;  %v2477_v50 = vpop.f32.mrf.mxu2  ;;  %v6585_v4 = vld [vmem:[#allocation92_spill] sm:$0xff] }
 0x58d   :  { %2988 = vmatmul.bf16.gmra.mxu1 %v6570_v26  ;;  %2859 = vmatmul.bf16.gmra.mxu0 %v5101_v44  ;;  %v2470_v44 = vadd.f32 %v5746_v17, %v2469_v38  ;;  %v2638_v26 = vpop.f32.mrf.mxu3  ;;  %v2478_v38 = vadd.f32 %v5746_v17, %v2477_v50 }
 0x58e   :  { %2695 = vmatmul.bf16.gmra.mxu3 %v6579_v40 }
 0x58f   :  { %v2639_v11 = vadd.f32 %v2638_v26, %v2470_v44  ;;  %v6588_v26 = vld [vmem:[#allocation116_spill] sm:$0xff] }
 0x591   :  { %v5785_v0 = vadd.f32 %v2807_v52, %v2639_v11  ;;  %v6589_v52 = vld [vmem:[#allocation95_spill] sm:$0xff] }
 0x595   :  { %v2641_v22 = vpop.f32.mrf.mxu3 }
 0x59a   :  { %v2954_v23 = vpop.f32.mrf.mxu1 }
 0x59b   :  { %v5765_v35 = vadd.f32 %v2954_v23, %v2786_v33  ;;  %v2632_v33 = vadd.f32 %v2631_v43, %v2463_v39  ;;  %v2473_v43 = vadd.f32 %v5746_v17, %v2472_v57  ;;  %v2812_v39 = vpop.f32.mrf.mxu0 }
 0x59d   :  { %2993 = vmatmul.bf16.gmra.mxu1 %v6574_v2  ;;  %v2801_v19 = vadd.f32 %v2800_v1, %v2632_v33  ;;  %2864 = vmatmul.bf16.gmra.mxu0 %v6580_v42  ;;  %v6582_v2 = vld [vmem:[#allocation70_spill] sm:$0xff]  ;;  %v2475_v1 = vadd.f32 %v5746_v17, %v2474_v55 }
 0x59e   :  { %2531 = vmatmul.bf16.gmra.mxu2 %v6582_v2  ;;  %v6592_v2 = vld [vmem:[#allocation119_spill] sm:$0xff] }
 0x5a2   :  { %v2956_v28 = vpop.f32.mrf.mxu1 }
 0x5a3   :  { %v5768_v18 = vadd.f32 %v2956_v28, %v2788_v16  ;;  %v2643_v28 = vpop.f32.mrf.mxu3  ;;  %2700 = vmatmul.bf16.gmra.mxu3 %v6583_v34  ;;  %v2815_v63 = vpop.f32.mrf.mxu0 }
 0x5a4   :  { %v2644_v51 = vadd.f32 %v2643_v28, %v2475_v1  ;;  %v6593_v1 = vld [vmem:[#allocation98_spill] sm:$0xff] }
 0x5a6   :  { %v5799_v27 = vadd.f32 %v2812_v39, %v2644_v51  ;;  %v6594_v39 = vld [vmem:[#allocation6_spill] sm:$0xff] }
 0x5aa   :  { %v2959_v53 = vpop.f32.mrf.mxu1 }
 0x5ab   :  { %v5775_v16 = vadd.f32 %v2959_v53, %v2791_v48  ;;  %v2637_v48 = vadd.f32 %v2636_v15, %v2468_v21  ;;  %v2646_v53 = vpop.f32.mrf.mxu3  ;;  %v6587_v21 = vld [vmem:[#allocation101_spill] sm:$0xff] }
 0x5ac   :  { %v2647_v44 = vadd.f32 %v2646_v53, %v2478_v38 }
 0x5ad   :  { %2998 = vmatmul.bf16.gmra.mxu1 %v6577_v12  ;;  %v2806_v8 = vadd.f32 %v2805_v29, %v2637_v48  ;;  %2869 = vmatmul.bf16.gmra.mxu0 %v6584_v54  ;;  %v2479_v29 = vpop.f32.mrf.mxu2 }
 0x5ae   :  { %v5814_v40 = vadd.f32 %v2815_v63, %v2647_v44 }
 0x5b2   :  { %v2961_v46 = vpop.f32.mrf.mxu1 }
 0x5b3   :  { %v5778_v61 = vadd.f32 %v2961_v46, %v2793_v25  ;;  %v6586_v46 = vld [vmem:[#allocation76_spill] sm:$0xff]  ;;  %v5808_v56 = vpop.f32.mrf.mxu3  ;;  %2705 = vmatmul.bf16.gmra.mxu3 %v6587_v21 }
 0x5b4   :  { %2536 = vmatmul.bf16.gmra.mxu2 %v6586_v46  ;;  %v6596_v46 = vld [vmem:[#allocation122_spill] sm:$0xff] }
 0x5ba   :  { %v2964_v25 = vpop.f32.mrf.mxu1 }
 0x5bb   :  { %v5787_v41 = vadd.f32 %v2964_v25, %v2796_v30  ;;  %v2642_v30 = vadd.f32 %v2641_v22, %v2473_v43  ;;  %v2651_v42 = vpop.f32.mrf.mxu3  ;;  %v6590_v22 = vld [vmem:[#allocation5_spill] sm:$0xff] }
 0x5bd   :  { %3003 = vmatmul.bf16.gmra.mxu1 %v6581_v31  ;;  %v5797_v45 = vadd.f32 %v2810_v59, %v2642_v30 }
 0x5c2   :  { %v2966_v36 = vpop.f32.mrf.mxu1 }
 0x5c3   :  { %v5790_v23 = vadd.f32 %v2966_v36, %v2798_v60  ;;  %v2653_v59 = vpop.f32.mrf.mxu3  ;;  %v6591_v36 = vld [vmem:[#allocation104_spill] sm:$0xff] }
 0x5c4   :  { %2710 = vmatmul.bf16.gmra.mxu3 %v6591_v36 }
 0x5ca   :  { %v2969_v60 = vpop.f32.mrf.mxu1 }
 0x5cb   :  { %v5801_v33 = vadd.f32 %v2969_v60, %v2801_v19  ;;  %v5811_v19 = vpop.f32.mrf.mxu0  ;;  %2874 = vmatmul.bf16.gmra.mxu0 %v6588_v26  ;;  %v2656_v28 = vpop.f32.mrf.mxu3 }
 0x5cd   :  { %3008 = vmatmul.bf16.gmra.mxu1 %v6585_v4  ;;  %v6595_v4 = vld [vmem:[#allocation107_spill] sm:$0xff] }
 0x5d2   :  { %v2971_v12 = vpop.f32.mrf.mxu1 }
 0x5d3   :  { %v5804_v15 = vadd.f32 %v2971_v12, %v2803_v32  ;;  %v2482_v32 = vpop.f32.mrf.mxu2  ;;  %v2820_v25 = vpop.f32.mrf.mxu0 }
 0x5d4   :  { %v2658_v50 = vpop.f32.mrf.mxu3  ;;  %2715 = vmatmul.bf16.gmra.mxu3 %v6595_v4  ;;  %v6600_v4 = vld [vmem:[#allocation125_spill] sm:$0xff] }
 0x5da   :  { %v2974_v48 = vpop.f32.mrf.mxu1 }
 0x5db   :  { %v5816_v11 = vadd.f32 %v2974_v48, %v2806_v8  ;;  %v2484_v31 = vpop.f32.mrf.mxu2  ;;  %2541 = vmatmul.bf16.gmra.mxu2 %v6590_v22  ;;  %v2822_v55 = vpop.f32.mrf.mxu0  ;;  %2879 = vmatmul.bf16.gmra.mxu0 %v6592_v2  ;;  %v6597_v48 = vld [vmem:[#allocation100_spill] sm:$0xff] }
 0x5dd   :  { %3013 = vmatmul.bf16.gmra.mxu1 %v6589_v52  ;;  %v2661_v52 = vpop.f32.mrf.mxu3 }
 0x5e2   :  { %v5819_v57 = vpop.f32.mrf.mxu1 }
 0x5e3   :  { %v2487_v8 = vpop.f32.mrf.mxu2  ;;  %v2825_v34 = vpop.f32.mrf.mxu0 }
 0x5e4   :  { %v2488_v54 = vadd.f32 %v5746_v17, %v2487_v8  ;;  %v6598_v8 = vld [vmem:[#allocation7_spill] sm:$0xff] }
 0x5e6   :  { %v2657_v53 = vadd.f32 %v2656_v28, %v2488_v54 }
 0x5e8   :  { %v2826_v38 = vadd.f32 %v2825_v34, %v2657_v53  ;;  %v2483_v34 = vadd.f32 %v5746_v17, %v2482_v32  ;;  %v2485_v53 = vadd.f32 %v5746_v17, %v2484_v31 }
 0x5ea   :  { %v5824_v43 = vpop.f32.mrf.mxu1 }
 0x5eb   :  { %v2489_v51 = vpop.f32.mrf.mxu2  ;;  %2546 = vmatmul.bf16.gmra.mxu2 %v6594_v39  ;;  %v2827_v12 = vpop.f32.mrf.mxu0  ;;  %2884 = vmatmul.bf16.gmra.mxu0 %v6596_v46  ;;  %v6599_v39 = vld [vmem:[#allocation109_spill] sm:$0xff] }
 0x5ec   :  { %v2490_v60 = vadd.f32 %v5746_v17, %v2489_v51  ;;  %v2663_v51 = vpop.f32.mrf.mxu3  ;;  %2720 = vmatmul.bf16.gmra.mxu3 %v6599_v39  ;;  %v2654_v39 = vadd.f32 %v2653_v59, %v2485_v53 }
 0x5ed   :  { %3018 = vmatmul.bf16.gmra.mxu1 %v6593_v1 }
 0x5ee   :  { %v2659_v63 = vadd.f32 %v2658_v50, %v2490_v60 }
 0x5f0   :  { %v5834_v21 = vadd.f32 %v2827_v12, %v2659_v63 }
 0x5f2   :  { %v5827_v30 = vpop.f32.mrf.mxu1 }
 0x5f3   :  { %v2492_v26 = vpop.f32.mrf.mxu2  ;;  %v2830_v22 = vpop.f32.mrf.mxu0 }
 0x5f4   :  { %v2493_v1 = vadd.f32 %v5746_v17, %v2492_v26  ;;  %v2480_v26 = vadd.f32 %v5746_v17, %v2479_v29  ;;  %v2666_v32 = vpop.f32.mrf.mxu3 }
 0x5f6   :  { %v2662_v54 = vadd.f32 %v2661_v52, %v2493_v1  ;;  %v2649_v52 = vadd.f32 %v5808_v56, %v2480_v26  ;;  %v6604_v26 = vld [vmem:[#allocation128_spill] sm:$0xff] }
 0x5f8   :  { %v5844_v63 = vadd.f32 %v2830_v22, %v2662_v54  ;;  %v2818_v31 = vadd.f32 %v5811_v19, %v2649_v52 }
 0x5fa   :  { %v2984_v44 = vpop.f32.mrf.mxu1 }
 0x5fb   :  { %v2494_v2 = vpop.f32.mrf.mxu2  ;;  %2551 = vmatmul.bf16.gmra.mxu2 %v6598_v8  ;;  %v2832_v50 = vpop.f32.mrf.mxu0  ;;  %2889 = vmatmul.bf16.gmra.mxu0 %v6600_v4  ;;  %v6601_v8 = vld [vmem:[#allocation103_spill] sm:$0xff]  ;;  %v2985_v56 = vadd.f32 %v2984_v44, %v5814_v40  ;;  %v2980_v40 = vadd.f32 %v5824_v43, %v5797_v45  ;;  %v3122_v45 = vmax.f32 %v5816_v11, 0.0 }
 0x5fc   :  { %v2495_v28 = vadd.f32 %v5746_v17, %v2494_v2  ;;  %v2668_v53 = vpop.f32.mrf.mxu3 }
 0x5fd   :  { %3023 = vmatmul.bf16.gmra.mxu1 %v6597_v48  ;;  %v2652_v48 = vadd.f32 %v2651_v42, %v2483_v34  ;;  %v3126_v44 = vmax.f32 %v2985_v56, 0.0 }
 0x5fe   :  { %v2664_v60 = vadd.f32 %v2663_v51, %v2495_v28  ;;  %v2823_v51 = vadd.f32 %v2822_v55, %v2654_v39 }
 0x5ff   :  { %v2821_v1 = vadd.f32 %v2820_v25, %v2652_v48 }
 0x600   :  { %v5846_v12 = vadd.f32 %v2832_v50, %v2664_v60  ;;  %v6602_v50 = vld [vmem:[#allocation9_spill] sm:$0xff] }
 0x602   :  { %v2986_v36 = vpop.f32.mrf.mxu1 }
 0x603   :  { %v2497_v2 = vpop.f32.mrf.mxu2  ;;  %v2835_v28 = vpop.f32.mrf.mxu0  ;;  %v2987_v29 = vadd.f32 %v2986_v36, %v2818_v31  ;;  %v2982_v36 = vadd.f32 %v5827_v30, %v5799_v27  ;;  %v6605_v27 = vld [vmem:[#allocation106_spill] sm:$0xff] }
 0x604   :  { %v2498_v34 = vadd.f32 %v5746_v17, %v2497_v2  ;;  %v2671_v30 = vpop.f32.mrf.mxu3 }
 0x605   :  { %v3127_v48 = vmax.f32 %v2987_v29, 0.0 }
 0x606   :  { %v2667_v55 = vadd.f32 %v2666_v32, %v2498_v34  ;;  %v3120_v34 = vmax.f32 %v5801_v33, 0.0  ;;  %v3117_v33 = vmax.f32 %v5778_v61, 0.0  ;;  %v6609_v61 = vld [vmem:[#allocation13_spill] sm:$0xff] }
 0x608   :  { %v5860_v2 = vadd.f32 %v2835_v28, %v2667_v55  ;;  %v3124_v28 = vmax.f32 %v2980_v40, 0.0 }
 0x60a   :  { %v2989_v46 = vpop.f32.mrf.mxu1 }
 0x60b   :  { %v2990_v22 = vadd.f32 %v2989_v46, %v2821_v1  ;;  %v2499_v60 = vpop.f32.mrf.mxu2  ;;  %2556 = vmatmul.bf16.gmra.mxu2 %v6602_v50  ;;  %v2837_v46 = vpop.f32.mrf.mxu0  ;;  %2894 = vmatmul.bf16.gmra.mxu0 %v6604_v26 }
 0x60c   :  { %v2500_v59 = vadd.f32 %v5746_v17, %v2499_v60  ;;  %v6606_v60 = vld [vmem:[#allocation11_spill] sm:$0xff]  ;;  %v2673_v29 = vpop.f32.mrf.mxu3 }
 0x60d   :  { %3028 = vmatmul.bf16.gmra.mxu1 %v6601_v8  ;;  %v6603_v8 = vld [vmem:[#allocation112_spill] sm:$0xff]  ;;  %v3128_v25 = vmax.f32 %v2990_v22, 0.0 }
 0x60e   :  { %2725 = vmatmul.bf16.gmra.mxu3 %v6603_v8  ;;  %v2669_v19 = vadd.f32 %v2668_v53, %v2500_v59  ;;  %v3119_v53 = vmax.f32 %v5790_v23, 0.0 }
 0x610   :  { %v5862_v39 = vadd.f32 %v2837_v46, %v2669_v19  ;;  %v6608_v46 = vld [vmem:[#allocation108_spill] sm:$0xff] }
 0x612   :  { %v2991_v4 = vpop.f32.mrf.mxu1 }
 0x613   :  { %v2992_v54 = vadd.f32 %v2991_v4, %v2823_v51  ;;  %v2502_v32 = vpop.f32.mrf.mxu2  ;;  %v2977_v51 = vadd.f32 %v5819_v57, %v5785_v0  ;;  %v3125_v4 = vmax.f32 %v2982_v36, 0.0  ;;  %v2840_v31 = vpop.f32.mrf.mxu0  ;;  %v3121_v0 = vmax.f32 %v5804_v15, 0.0 }
 0x614   :  { %v2503_v57 = vadd.f32 %v5746_v17, %v2502_v32  ;;  %v2676_v26 = vpop.f32.mrf.mxu3  ;;  %v3115_v36 = vmax.f32 %v5768_v18, 0.0  ;;  %v6610_v32 = vld [vmem:[#allocation118_spill] sm:$0xff] }
 0x615   :  { %v3129_v42 = vmax.f32 %v2992_v54, 0.0  ;;  %v3123_v22 = vmax.f32 %v2977_v51, 0.0 }
 0x616   :  { %v2672_v11 = vadd.f32 %v2671_v30, %v2503_v57  ;;  %v6613_v57 = vld [vmem:[#allocation15_spill] sm:$0xff] }
 0x617   :  { %3194 = vmatpush.msrb.mxu2 %v3129_v42  ;;  %v6607_v42 = vld [vmem:[#allocation115_spill] sm:$0xff] }
 0x618   :  { %v2841_v15 = vadd.f32 %v2840_v31, %v2672_v11 }
 0x619   :  { %3195 = vmatpush.msrb.mxu2 %v3128_v25  ;;  %v3118_v25 = vmax.f32 %v5787_v41, 0.0  ;;  %v3114_v41 = vmax.f32 %v5765_v35, 0.0 }
 0x61a   :  { %v2994_v52 = vpop.f32.mrf.mxu1 }
 0x61b   :  { %v5866_v1 = vadd.f32 %v2994_v52, %v2826_v38  ;;  %3196 = vmatpush.msrb.mxu2 %v3127_v48  ;;  %v2504_v38 = vpop.f32.mrf.mxu2  ;;  %v2842_v59 = vpop.f32.mrf.mxu0  ;;  %2899 = vmatmul.bf16.gmra.mxu0 %v5345_v3  ;;  %v3116_v3 = vmax.f32 %v5775_v16, 0.0 }
 0x61c   :  { %2561 = vmatmul.bf16.gmra.mxu2 %v6606_v60  ;;  %v2505_v50 = vadd.f32 %v5746_v17, %v2504_v38 }
 0x61d   :  { %3197 = vmatpush.msrb.mxu2 %v3126_v44  ;;  %3033 = vmatmul.bf16.gmra.mxu1 %v6605_v27  ;;  %v2678_v44 = vpop.f32.mrf.mxu3  ;;  %v6611_v27 = vld [vmem:[#allocation133_spill] sm:$0xff] }
 0x61e   :  { %2730 = vmatmul.bf16.gmra.mxu3 %v6607_v42 }
 0x61f   :  { %3198 = vmatpush.msrb.mxu2 %v3125_v4 }
 0x621   :  { %3199 = vmatpush.msrb.mxu2 %v3124_v28 }
 0x622   :  { %v2996_v54 = vpop.f32.mrf.mxu1 }
 0x623   :  { %v5873_v43 = vadd.f32 %v2996_v54, %v5834_v21  ;;  %3200 = vmatpush.msrb.mxu2 %v3123_v22  ;;  %v2674_v21 = vadd.f32 %v2673_v29, %v2505_v50  ;;  %v2507_v19 = vpop.f32.mrf.mxu2  ;;  %v2845_v23 = vpop.f32.mrf.mxu0  ;;  %v6612_v22 = vld [vmem:[#allocation111_spill] sm:$0xff] }
 0x624   :  { %v2508_v40 = vadd.f32 %v5746_v17, %v2507_v19  ;;  %v6615_v19 = vld [vmem:[#allocation114_spill] sm:$0xff] }
 0x625   :  { %3201 = vmatpush.msrb.mxu2 %v3122_v45  ;;  %v2843_v8 = vadd.f32 %v2842_v59, %v2674_v21  ;;  %v2681_v54 = vpop.f32.mrf.mxu3 }
 0x626   :  { %v2677_v18 = vadd.f32 %v2676_v26, %v2508_v40 }
 0x627   :  { %3202 = vmatpush.msrb.mxu2 %v3121_v0 }
 0x628   :  { %v2846_v35 = vadd.f32 %v2845_v23, %v2677_v18 }
 0x629   :  { %3203 = vmatpush.msrb.mxu2 %v3120_v34  ;;  %v6614_v34 = vld [vmem:[#allocation121_spill] sm:$0xff] }
 0x62a   :  { %v2999_v56 = vpop.f32.mrf.mxu1 }
 0x62b   :  { %v5885_v55 = vadd.f32 %v2999_v56, %v5844_v63  ;;  %3204 = vmatpush.msrb.mxu2 %v3119_v53  ;;  %v2509_v52 = vpop.f32.mrf.mxu2  ;;  %v2847_v4 = vpop.f32.mrf.mxu0  ;;  %2904 = vmatmul.bf16.gmra.mxu0 %v6611_v27  ;;  %v6619_v27 = vld [vmem:[#allocation20_spill] sm:$0xff] }
 0x62c   :  { %2566 = vmatmul.bf16.gmra.mxu2 %v6609_v61  ;;  %v2510_v16 = vadd.f32 %v5746_v17, %v2509_v52 }
 0x62d   :  { %3205 = vmatpush.msrb.mxu2 %v3118_v25  ;;  %3038 = vmatmul.bf16.gmra.mxu1 %v6608_v46  ;;  %v2683_v42 = vpop.f32.mrf.mxu3 }
 0x62e   :  { %2735 = vmatmul.bf16.gmra.mxu3 %v6610_v32  ;;  %v2679_v51 = vadd.f32 %v2678_v44, %v2510_v16  ;;  %v6618_v44 = vld [vmem:[#allocation117_spill] sm:$0xff] }
 0x62f   :  { %3206 = vmatpush.msrb.mxu2 %v3117_v33 }
 0x631   :  { %3207 = vmatpush.msrb.mxu2 %v3116_v3 }
 0x632   :  { %v3001_v48 = vpop.f32.mrf.mxu1 }
 0x633   :  { %v5893_v63 = vadd.f32 %v3001_v48, %v5846_v12  ;;  %3208 = vmatpush.msrb.mxu2 %v3115_v36  ;;  %v5900_v12 = vadd.f32 %v2847_v4, %v2679_v51  ;;  %v2512_v31 = vpop.f32.mrf.mxu2  ;;  %v2850_v45 = vpop.f32.mrf.mxu0  ;;  %v6616_v36 = vld [vmem:[#allocation17_spill] sm:$0xff] }
 0x634   :  { %v2513_v50 = vadd.f32 %v5746_v17, %v2512_v31  ;;  %v6620_v31 = vld [vmem:[#allocation127_spill] sm:$0xff] }
 0x635   :  { %3209 = vmatpush.msrb.mxu2 %v3114_v41  ;;  %v2686_v33 = vpop.f32.mrf.mxu3  ;;  %v6617_v41 = vld [vmem:[#allocation124_spill] sm:$0xff] }
 0x63a   :  { %v3004_v30 = vpop.f32.mrf.mxu1 }
 0x63b   :  { %v5903_v28 = vadd.f32 %v3004_v30, %v5860_v2  ;;  %v2514_v0 = vpop.f32.mrf.mxu2  ;;  %v2682_v2 = vadd.f32 %v2681_v54, %v2513_v50  ;;  %v2852_v21 = vpop.f32.mrf.mxu0  ;;  %2909 = vmatmul.bf16.gmra.mxu0 %v5404_v13  ;;  %v6621_v54 = vld [vmem:[#allocation120_spill] sm:$0xff]  ;;  %v6622_v50 = vld [vmem:[#allocation23_spill] sm:$0xff] }
 0x63c   :  { %2571 = vmatmul.bf16.gmra.mxu2 %v6613_v57  ;;  %v2515_v29 = vadd.f32 %v5746_v17, %v2514_v0 }
 0x63d   :  { %3043 = vmatmul.bf16.gmra.mxu1 %v6612_v22  ;;  %v5914_v59 = vadd.f32 %v2850_v45, %v2682_v2  ;;  %v5925_v48 = vpop.f32.mrf.mxu3  ;;  %v6623_v2 = vld [vmem:[#allocation130_spill] sm:$0xff] }
 0x63e   :  { %2740 = vmatmul.bf16.gmra.mxu3 %v6614_v34  ;;  %v2684_v11 = vadd.f32 %v2683_v42, %v2515_v29 }
 0x640   :  { %v5916_v53 = vadd.f32 %v2852_v21, %v2684_v11 }
 0x642   :  { %v3006_v38 = vpop.f32.mrf.mxu1 }
 0x643   :  { %v5907_v60 = vadd.f32 %v3006_v38, %v5862_v39  ;;  %v2517_v25 = vpop.f32.mrf.mxu2  ;;  %v2855_v46 = vpop.f32.mrf.mxu0 }
 0x644   :  { %v2518_v13 = vadd.f32 %v5746_v17, %v2517_v25 }
 0x645   :  { %v2691_v32 = vpop.f32.mrf.mxu3 }
 0x646   :  { %v2687_v52 = vadd.f32 %v2686_v33, %v2518_v13 }
 0x648   :  { %v5931_v61 = vadd.f32 %v2855_v46, %v2687_v52  ;;  %v6624_v46 = vld [vmem:[#allocation123_spill] sm:$0xff]  ;;  %v6625_v52 = vld [vmem:[#allocation26_spill] sm:$0xff] }
 0x64a   :  { %v3009_v39 = vpop.f32.mrf.mxu1 }
 0x64b   :  { %v5918_v56 = vadd.f32 %v3009_v39, %v2841_v15  ;;  %v2519_v23 = vpop.f32.mrf.mxu2  ;;  %v5928_v15 = vpop.f32.mrf.mxu0  ;;  %2914 = vmatmul.bf16.gmra.mxu0 %v5442_v6 }
 0x64c   :  { %2576 = vmatmul.bf16.gmra.mxu2 %v6616_v36 }
 0x64d   :  { %3048 = vmatmul.bf16.gmra.mxu1 %v6615_v19  ;;  %v2693_v30 = vpop.f32.mrf.mxu3 }
 0x64e   :  { %2745 = vmatmul.bf16.gmra.mxu3 %v6617_v41 }
 0x652   :  { %v3011_v26 = vpop.f32.mrf.mxu1 }
 0x653   :  { %v5921_v3 = vadd.f32 %v3011_v26, %v2843_v8  ;;  %v2522_v8 = vpop.f32.mrf.mxu2  ;;  %v2860_v18 = vpop.f32.mrf.mxu0 }
 0x655   :  { %v2696_v45 = vpop.f32.mrf.mxu3 }
 0x65a   :  { %v3014_v40 = vpop.f32.mrf.mxu1 }
 0x65b   :  { %v5933_v16 = vadd.f32 %v3014_v40, %v2846_v35  ;;  %v2524_v4 = vpop.f32.mrf.mxu2  ;;  %v2862_v22 = vpop.f32.mrf.mxu0  ;;  %2919 = vmatmul.bf16.gmra.mxu0 %v5481_v14 }
 0x65c   :  { %2581 = vmatmul.bf16.gmra.mxu2 %v6619_v27 }
 0x65d   :  { %3053 = vmatmul.bf16.gmra.mxu1 %v6618_v44  ;;  %v2698_v34 = vpop.f32.mrf.mxu3 }
 0x65e   :  { %2750 = vmatmul.bf16.gmra.mxu3 %v6620_v31  ;;  %v6626_v31 = vld [vmem:[#allocation132_spill] sm:$0xff] }
 0x662   :  { %v5936_v51 = vpop.f32.mrf.mxu1 }
 0x663   :  { %v2527_v35 = vpop.f32.mrf.mxu2  ;;  %v2865_v38 = vpop.f32.mrf.mxu0 }
 0x664   :  { %v2528_v29 = vadd.f32 %v5746_v17, %v2527_v35 }
 0x665   :  { %v2701_v26 = vpop.f32.mrf.mxu3 }
 0x666   :  { %v2697_v14 = vadd.f32 %v2696_v45, %v2528_v29 }
 0x668   :  { %v2866_v39 = vadd.f32 %v2865_v38, %v2697_v14  ;;  %v2525_v38 = vadd.f32 %v5746_v17, %v2524_v4 }
 0x66a   :  { %v5941_v6 = vpop.f32.mrf.mxu1  ;;  %v2694_v14 = vadd.f32 %v2693_v30, %v2525_v38 }
 0x66b   :  { %v2529_v57 = vpop.f32.mrf.mxu2  ;;  %v2867_v21 = vpop.f32.mrf.mxu0  ;;  %2924 = vmatmul.bf16.gmra.mxu0 %v5509_v37  ;;  %v2523_v37 = vadd.f32 %v5746_v17, %v2522_v8 }
 0x66c   :  { %2586 = vmatmul.bf16.gmra.mxu2 %v6622_v50  ;;  %v2530_v42 = vadd.f32 %v5746_v17, %v2529_v57 }
 0x66d   :  { %3058 = vmatmul.bf16.gmra.mxu1 %v6621_v54  ;;  %v2703_v27 = vpop.f32.mrf.mxu3 }
 0x66e   :  { %2755 = vmatmul.bf16.gmra.mxu3 %v6623_v2  ;;  %v2699_v11 = vadd.f32 %v2698_v34, %v2530_v42  ;;  %v2520_v42 = vadd.f32 %v5746_v17, %v2519_v23  ;;  %v2692_v34 = vadd.f32 %v2691_v32, %v2523_v37 }
 0x670   :  { %v5951_v25 = vadd.f32 %v2867_v21, %v2699_v11  ;;  %v6627_v11 = vld [vmem:[#allocation126_spill] sm:$0xff]  ;;  %v2689_v21 = vadd.f32 %v5925_v48, %v2520_v42 }
 0x672   :  { %v5944_v0 = vpop.f32.mrf.mxu1  ;;  %v2858_v4 = vadd.f32 %v5928_v15, %v2689_v21 }
 0x673   :  { %v2532_v33 = vpop.f32.mrf.mxu2  ;;  %v2870_v36 = vpop.f32.mrf.mxu0 }
 0x674   :  { %v2533_v40 = vadd.f32 %v5746_v17, %v2532_v33  ;;  %v2861_v33 = vadd.f32 %v2860_v18, %v2692_v34 }
 0x675   :  { %v2706_v8 = vpop.f32.mrf.mxu3 }
 0x676   :  { %v2702_v35 = vadd.f32 %v2701_v26, %v2533_v40  ;;  %v6628_v40 = vld [vmem:[#allocation31_spill] sm:$0xff] }
 0x678   :  { %v5961_v57 = vadd.f32 %v2870_v36, %v2702_v35 }
 0x67a   :  { %v3024_v19 = vpop.f32.mrf.mxu1 }
 0x67b   :  { %v2534_v41 = vpop.f32.mrf.mxu2  ;;  %v2872_v45 = vpop.f32.mrf.mxu0  ;;  %2929 = vmatmul.bf16.gmra.mxu0 %v5537_v9  ;;  %v2863_v9 = vadd.f32 %v2862_v22, %v2694_v14  ;;  %v3025_v48 = vadd.f32 %v3024_v19, %v5931_v61 }
 0x67c   :  { %2591 = vmatmul.bf16.gmra.mxu2 %v6625_v52  ;;  %v2535_v44 = vadd.f32 %v5746_v17, %v2534_v41 }
 0x67d   :  { %3063 = vmatmul.bf16.gmra.mxu1 %v6624_v46  ;;  %v3142_v61 = vmax.f32 %v3025_v48, 0.0  ;;  %v6632_v48 = vld [vmem:[#allocation134_spill] sm:$0xff] }
 0x67e   :  { %2760 = vmatmul.bf16.gmra.mxu3 %v6626_v31  ;;  %v2704_v54 = vadd.f32 %v2703_v27, %v2535_v44  ;;  %v2708_v27 = vpop.f32.mrf.mxu3 }
 0x680   :  { %v5963_v50 = vadd.f32 %v2872_v45, %v2704_v54 }
 0x682   :  { %v3026_v13 = vpop.f32.mrf.mxu1 }
 0x683   :  { %v2537_v2 = vpop.f32.mrf.mxu2  ;;  %v2875_v46 = vpop.f32.mrf.mxu0  ;;  %v3027_v23 = vadd.f32 %v3026_v13, %v2858_v4  ;;  %v3022_v13 = vadd.f32 %v5944_v0, %v5916_v53  ;;  %v6629_v53 = vld [vmem:[#allocation129_spill] sm:$0xff] }
 0x684   :  { %v2538_v30 = vadd.f32 %v5746_v17, %v2537_v2 }
 0x685   :  { %v3143_v37 = vmax.f32 %v3027_v23, 0.0  ;;  %v3131_v23 = vmax.f32 %v5873_v43, 0.0 }
 0x686   :  { %v2707_v22 = vadd.f32 %v2706_v8, %v2538_v30  ;;  %v2711_v0 = vpop.f32.mrf.mxu3 }
 0x688   :  { %v5977_v35 = vadd.f32 %v2875_v46, %v2707_v22 }
 0x68a   :  { %v3029_v29 = vpop.f32.mrf.mxu1 }
 0x68b   :  { %v3030_v36 = vadd.f32 %v3029_v29, %v2861_v33  ;;  %v2539_v52 = vpop.f32.mrf.mxu2  ;;  %v2877_v31 = vpop.f32.mrf.mxu0  ;;  %2934 = vmatmul.bf16.gmra.mxu0 %v5561_v5  ;;  %v3017_v5 = vadd.f32 %v5936_v51, %v5900_v12  ;;  %v3141_v29 = vmax.f32 %v3022_v13, 0.0  ;;  %v3137_v12 = vmax.f32 %v5921_v3, 0.0 }
 0x68c   :  { %2596 = vmatmul.bf16.gmra.mxu2 %v6628_v40  ;;  %v2540_v44 = vadd.f32 %v5746_v17, %v2539_v52  ;;  %v3136_v33 = vmax.f32 %v5918_v56, 0.0  ;;  %v3133_v56 = vmax.f32 %v5893_v63, 0.0  ;;  %v6631_v52 = vld [vmem:[#allocation131_spill] sm:$0xff] }
 0x68d   :  { %3068 = vmatmul.bf16.gmra.mxu1 %v6627_v11  ;;  %v3144_v18 = vmax.f32 %v3030_v36, 0.0  ;;  %v3139_v2 = vmax.f32 %v3017_v5, 0.0  ;;  %v6630_v11 = vld [vmem:[#allocation37_spill] sm:$0xff]  ;;  %v3134_v36 = vmax.f32 %v5903_v28, 0.0  ;;  %v3130_v28 = vmax.f32 %v5866_v1, 0.0 }
 0x68e   :  { %2765 = vmatmul.bf16.gmra.mxu3 %v5399_v20  ;;  %v2709_v15 = vadd.f32 %v2708_v27, %v2540_v44  ;;  %v3020_v20 = vadd.f32 %v5941_v6, %v5914_v59  ;;  %v3138_v59 = vmax.f32 %v5933_v16, 0.0  ;;  %v2713_v21 = vpop.f32.mrf.mxu3 }
 0x690   :  { %v5979_v54 = vadd.f32 %v2877_v31, %v2709_v15  ;;  %v3140_v42 = vmax.f32 %v3020_v20, 0.0 }
 0x692   :  { %v3031_v26 = vpop.f32.mrf.mxu1 }
 0x693   :  { %v3032_v41 = vadd.f32 %v3031_v26, %v2863_v9  ;;  %v2542_v38 = vpop.f32.mrf.mxu2  ;;  %v2880_v34 = vpop.f32.mrf.mxu0  ;;  %v3135_v9 = vmax.f32 %v5907_v60, 0.0 }
 0x694   :  { %v2543_v51 = vadd.f32 %v5746_v17, %v2542_v38 }
 0x695   :  { %v3145_v32 = vmax.f32 %v3032_v41, 0.0 }
 0x696   :  { %v2712_v16 = vadd.f32 %v2711_v0, %v2543_v51  ;;  %v2716_v40 = vpop.f32.mrf.mxu3 }
 0x697   :  { %3223 = vmatpush.msrb.mxu3 %v3145_v32 }
 0x698   :  { %v2881_v3 = vadd.f32 %v2880_v34, %v2712_v16 }
 0x699   :  { %3224 = vmatpush.msrb.mxu3 %v3144_v18 }
 0x69a   :  { %v3034_v45 = vpop.f32.mrf.mxu1 }
 0x69b   :  { %3225 = vmatpush.msrb.mxu3 %v3143_v37  ;;  %v5983_v19 = vadd.f32 %v3034_v45, %v2866_v39  ;;  %v2544_v39 = vpop.f32.mrf.mxu2 }
 0x69c   :  { %2601 = vmatmul.bf16.gmra.mxu2 %v6630_v11  ;;  %v2545_v8 = vadd.f32 %v5746_v17, %v2544_v39 }
 0x69d   :  { %3226 = vmatpush.msrb.mxu3 %v3142_v61  ;;  %3073 = vmatmul.bf16.gmra.mxu1 %v6629_v53 }
 0x69e   :  { %2770 = vmatmul.bf16.gmra.mxu3 %v5436_v58  ;;  %v2714_v46 = vadd.f32 %v2713_v21, %v2545_v8  ;;  %v6014_v63 = vpop.f32.mrf.mxu3 }
 0x69f   :  { %3227 = vmatpush.msrb.mxu3 %v3141_v29 }
 0x6a1   :  { %3228 = vmatpush.msrb.mxu3 %v3140_v42 }
 0x6a2   :  { %v3036_v14 = vpop.f32.mrf.mxu1 }
 0x6a3   :  { %3229 = vmatpush.msrb.mxu3 %v3139_v2  ;;  %v5990_v6 = vadd.f32 %v3036_v14, %v5951_v25  ;;  %v2882_v25 = vpop.f32.mrf.mxu0  ;;  %2939 = vmatmul.bf16.gmra.mxu0 %v5580_v7  ;;  %v2547_v58 = vpop.f32.mrf.mxu2  ;;  %v3132_v7 = vmax.f32 %v5885_v55, 0.0 }
 0x6a4   :  { %v2883_v26 = vadd.f32 %v2882_v25, %v2714_v46  ;;  %v2548_v61 = vadd.f32 %v5746_v17, %v2547_v58 }
 0x6a5   :  { %3230 = vmatpush.msrb.mxu3 %v3138_v59 }
 0x6a6   :  { %v6024_v1 = vpop.f32.mrf.mxu3  ;;  %v2717_v29 = vadd.f32 %v2716_v40, %v2548_v61 }
 0x6a7   :  { %3231 = vmatpush.msrb.mxu3 %v3137_v12 }
 0x6a9   :  { %3232 = vmatpush.msrb.mxu3 %v3136_v33 }
 0x6aa   :  { %v3039_v4 = vpop.f32.mrf.mxu1 }
 0x6ab   :  { %3233 = vmatpush.msrb.mxu3 %v3135_v9  ;;  %v6002_v41 = vadd.f32 %v3039_v4, %v5961_v57  ;;  %v2885_v60 = vpop.f32.mrf.mxu0  ;;  %v6012_v30 = vpop.f32.mrf.mxu2 }
 0x6ac   :  { %v2886_v42 = vadd.f32 %v2885_v60, %v2717_v29 }
 0x6ad   :  { %3234 = vmatpush.msrb.mxu3 %v3134_v36  ;;  %3078 = vmatmul.bf16.gmra.mxu1 %v6631_v52 }
 0x6ae   :  { %v6033_v31 = vpop.f32.mrf.mxu3 }
 0x6af   :  { %3235 = vmatpush.msrb.mxu3 %v3133_v56 }
 0x6b1   :  { %3236 = vmatpush.msrb.mxu3 %v3132_v7 }
 0x6b2   :  { %v3041_v32 = vpop.f32.mrf.mxu1 }
 0x6b3   :  { %3237 = vmatpush.msrb.mxu3 %v3131_v23  ;;  %v6010_v57 = vadd.f32 %v3041_v32, %v5963_v50  ;;  %v6016_v44 = vpop.f32.mrf.mxu0  ;;  %v6021_v43 = vpop.f32.mrf.mxu2 }
 0x6b5   :  { %3238 = vmatpush.msrb.mxu3 %v3130_v28 }
 0x6b6   :  { %v6040_v20 = vpop.f32.mrf.mxu3 }
 0x6ba   :  { %v3044_v55 = vpop.f32.mrf.mxu1 }
 0x6bb   :  { %v6019_v27 = vadd.f32 %v3044_v55, %v5977_v35  ;;  %v6026_v18 = vpop.f32.mrf.mxu0  ;;  %v6031_v15 = vpop.f32.mrf.mxu2 }
 0x6bd   :  { %3083 = vmatmul.bf16.gmra.mxu1 %v6632_v48 }
 0x6be   :  { %v2728_v0 = vpop.f32.mrf.mxu3 }
 0x6c2   :  { %v3046_v50 = vpop.f32.mrf.mxu1 }
 0x6c3   :  { %v6029_v22 = vadd.f32 %v3046_v50, %v5979_v54  ;;  %v6035_v13 = vpop.f32.mrf.mxu0  ;;  %v2557_v45 = vpop.f32.mrf.mxu2 }
 0x6ca   :  { %v3049_v37 = vpop.f32.mrf.mxu1 }
 0x6cb   :  { %v6037_v35 = vadd.f32 %v3049_v37, %v2881_v3  ;;  %v6043_v38 = vpop.f32.mrf.mxu0  ;;  %v2559_v53 = vpop.f32.mrf.mxu2 }
 0x6cd   :  { %3088 = vmatmul.bf16.gmra.mxu1 %v5411_v24  ;;  %v2731_v24 = vpop.f32.mrf.mxu3 }
 0x6d2   :  { %v3051_v54 = vpop.f32.mrf.mxu1 }
 0x6d3   :  { %v6045_v5 = vadd.f32 %v3051_v54, %v2883_v26  ;;  %v6047_v34 = vpop.f32.mrf.mxu0  ;;  %v2562_v59 = vpop.f32.mrf.mxu2 }
 0x6d5   :  { %v2733_v51 = vpop.f32.mrf.mxu3 }
 0x6da   :  { %v3054_v2 = vpop.f32.mrf.mxu1 }
 0x6db   :  { %v6049_v14 = vadd.f32 %v3054_v2, %v2886_v42  ;;  %v2900_v39 = vpop.f32.mrf.mxu0  ;;  %v2564_v12 = vpop.f32.mrf.mxu2 }
 0x6dd   :  { %3093 = vmatmul.bf16.gmra.mxu1 %v5448_v47  ;;  %v2736_v16 = vpop.f32.mrf.mxu3 }
 0x6e2   :  { %v6052_v11 = vpop.f32.mrf.mxu1 }
 0x6e3   :  { %v2902_v8 = vpop.f32.mrf.mxu0  ;;  %v2567_v33 = vpop.f32.mrf.mxu2 }
 0x6e4   :  { %v2568_v3 = vadd.f32 %v5746_v17, %v2567_v33 }
 0x6e5   :  { %v2738_v26 = vpop.f32.mrf.mxu3 }
 0x6e6   :  { %v2737_v4 = vadd.f32 %v2736_v16, %v2568_v3 }
 0x6ea   :  { %v6054_v21 = vpop.f32.mrf.mxu1 }
 0x6eb   :  { %v2905_v46 = vpop.f32.mrf.mxu0  ;;  %v2569_v9 = vpop.f32.mrf.mxu2 }
 0x6ec   :  { %v2570_v47 = vadd.f32 %v5746_v17, %v2569_v9  ;;  %v6061_v56 = vadd.f32 %v2905_v46, %v2737_v4  ;;  %v6069_v17 = vld [vmem:[%s6254_s5] ss:$0 sm:$0xff] }
 0x6ed   :  { %3098 = vmatmul.bf16.gmra.mxu1 %v5486_v10  ;;  %v2741_v10 = vpop.f32.mrf.mxu3  ;;  %v2563_v50 = vadd.f32 %v6069_v17, %v2562_v59  ;;  %v2558_v33 = vadd.f32 %v6069_v17, %v2557_v45  ;;  %v2560_v16 = vadd.f32 %v6069_v17, %v2559_v53  ;;  %v2553_v59 = vadd.f32 %v6069_v17, %v6021_v43 }
 0x6ee   :  { %v2739_v36 = vadd.f32 %v2738_v26, %v2570_v47  ;;  %v2550_v53 = vadd.f32 %v6069_v17, %v6012_v30 }
 0x6ef   :  { %v2732_v46 = vadd.f32 %v2731_v24, %v2563_v50  ;;  %v2727_v26 = vadd.f32 %v6040_v20, %v2558_v33  ;;  %v2729_v4 = vadd.f32 %v2728_v0, %v2560_v16  ;;  %v2722_v24 = vadd.f32 %v6024_v1, %v2553_v59 }
 0x6f0   :  { %v2719_v30 = vadd.f32 %v6014_v63, %v2550_v53  ;;  %v3153_v59 = vmax.f32 %v6045_v5, 0.0  ;;  %v3150_v5 = vmax.f32 %v6019_v27, 0.0 }
 0x6f1   :  { %v2896_v43 = vadd.f32 %v6043_v38, %v2727_v26  ;;  %v2891_v1 = vadd.f32 %v6026_v18, %v2722_v24  ;;  %v3152_v26 = vmax.f32 %v6037_v35, 0.0  ;;  %v3148_v35 = vmax.f32 %v6002_v41, 0.0 }
 0x6f2   :  { %v6057_v25 = vpop.f32.mrf.mxu1  ;;  %v2888_v63 = vadd.f32 %v6016_v44, %v2719_v30  ;;  %v3154_v44 = vmax.f32 %v6049_v14, 0.0  ;;  %v3151_v14 = vmax.f32 %v6029_v22, 0.0 }
 0x6f3   :  { %v2907_v58 = vpop.f32.mrf.mxu0  ;;  %v2572_v7 = vpop.f32.mrf.mxu2  ;;  %v3060_v18 = vadd.f32 %v6054_v21, %v2891_v1 }
 0x6f4   :  { %v6063_v52 = vadd.f32 %v2907_v58, %v2739_v36  ;;  %v2573_v28 = vadd.f32 %v6069_v17, %v2572_v7  ;;  %v2901_v36 = vadd.f32 %v2900_v39, %v2732_v46  ;;  %v2898_v7 = vadd.f32 %v6047_v34, %v2729_v4 }
 0x6f5   :  { %v2743_v48 = vpop.f32.mrf.mxu3  ;;  %v3156_v16 = vmax.f32 %v3060_v18, 0.0 }
 0x6f6   :  { %v2742_v37 = vadd.f32 %v2741_v10, %v2573_v28 }
 0x6fa   :  { %v3064_v40 = vpop.f32.mrf.mxu1 }
 0x6fb   :  { %v2910_v60 = vpop.f32.mrf.mxu0  ;;  %v2574_v32 = vpop.f32.mrf.mxu2  ;;  %v3065_v28 = vadd.f32 %v3064_v40, %v2896_v43  ;;  %v3146_v43 = vmax.f32 %v5983_v19, 0.0 }
 0x6fc   :  { %v2575_v55 = vadd.f32 %v6069_v17, %v2574_v32  ;;  %v6075_v29 = vadd.f32 %v2910_v60, %v2742_v37 }
 0x6fd   :  { %3103 = vmatmul.bf16.gmra.mxu1 %v5516_v49  ;;  %v2565_v49 = vadd.f32 %v6069_v17, %v2564_v12  ;;  %v2555_v12 = vadd.f32 %v6069_v17, %v6031_v15  ;;  %v2746_v47 = vpop.f32.mrf.mxu3 }
 0x6fe   :  { %v2744_v61 = vadd.f32 %v2743_v48, %v2575_v55 }
 0x6ff   :  { %v2734_v3 = vadd.f32 %v2733_v51, %v2565_v49  ;;  %v3158_v49 = vmax.f32 %v3065_v28, 0.0  ;;  %v3178_v28 = vld [vmem:[%s6257_s8] sm:$0xff] }
 0x700   :  { %3210 = vmatmul.f32.vlgmr.msrb.gmra.mxu2 %v3178_v28 }
 0x701   :  { %v2903_v45 = vadd.f32 %v2902_v8, %v2734_v3 }
 0x702   :  { %v3066_v23 = vpop.f32.mrf.mxu1 }
 0x703   :  { %v2912_v54 = vpop.f32.mrf.mxu0  ;;  %v2577_v9 = vpop.f32.mrf.mxu2  ;;  %v3067_v20 = vadd.f32 %v3066_v23, %v2898_v7 }
 0x704   :  { %v6077_v42 = vadd.f32 %v2912_v54, %v2744_v61  ;;  %v2578_v39 = vadd.f32 %v6069_v17, %v2577_v9 }
 0x705   :  { %v2748_v32 = vpop.f32.mrf.mxu3  ;;  %v3159_v50 = vmax.f32 %v3067_v20, 0.0 }
 0x706   :  { %v2747_v34 = vadd.f32 %v2746_v47, %v2578_v39 }
 0x70a   :  { %v3069_v2 = vpop.f32.mrf.mxu1 }
 0x70b   :  { %v2915_v58 = vpop.f32.mrf.mxu0  ;;  %v3070_v15 = vadd.f32 %v3069_v2, %v2901_v36  ;;  %v2579_v60 = vpop.f32.mrf.mxu2  ;;  %v3057_v2 = vadd.f32 %v6052_v11, %v2888_v63 }
 0x70c   :  { %v2580_v8 = vadd.f32 %v6069_v17, %v2579_v60  ;;  %v2916_v37 = vadd.f32 %v2915_v58, %v2747_v34 }
 0x70d   :  { %3108 = vmatmul.bf16.gmra.mxu1 %v5540_v62  ;;  %v2724_v62 = vadd.f32 %v6033_v31, %v2555_v12  ;;  %v3160_v38 = vmax.f32 %v3070_v15, 0.0  ;;  %v3155_v9 = vmax.f32 %v3057_v2, 0.0  ;;  %v3190_v2 = vld [vmem:[%s6257_s8 + $0x60] sm:$0xff] }
 0x70e   :  { %v2749_v55 = vadd.f32 %v2748_v32, %v2580_v8 }
 0x70f   :  { %v2893_v31 = vadd.f32 %v6035_v13, %v2724_v62  ;;  %v3149_v62 = vmax.f32 %v6010_v57, 0.0 }
 0x711   :  { %v3062_v23 = vadd.f32 %v6057_v25, %v2893_v31  ;;  %v2751_v25 = vpop.f32.mrf.mxu3 }
 0x712   :  { %v3071_v51 = vpop.f32.mrf.mxu1 }
 0x713   :  { %v3072_v10 = vadd.f32 %v3071_v51, %v2903_v45  ;;  %v2917_v48 = vpop.f32.mrf.mxu0  ;;  %v2582_v40 = vpop.f32.mrf.mxu2  ;;  %v3157_v33 = vmax.f32 %v3062_v23, 0.0  ;;  %v3147_v51 = vmax.f32 %v5990_v6, 0.0  ;;  %v3182_v23 = vld [vmem:[%s6257_s8 + $0x20] sm:$0xff] }
 0x714   :  { %v2918_v61 = vadd.f32 %v2917_v48, %v2749_v55  ;;  %v2583_v11 = vadd.f32 %v6069_v17, %v2582_v40  ;;  %3213 = vmatmul.f32.gmra.mxu2 %v3182_v23 }
 0x715   :  { %v3161_v0 = vmax.f32 %v3072_v10, 0.0 }
 0x716   :  { %v2752_v4 = vadd.f32 %v2751_v25, %v2583_v11 }
 0x717   :  { %3252 = vmatpush.msra.mxu2 %v3161_v0 }
 0x719   :  { %3253 = vmatpush.msra.mxu2 %v3160_v38  ;;  %v2753_v47 = vpop.f32.mrf.mxu3 }
 0x71a   :  { %v3074_v54 = vpop.f32.mrf.mxu1 }
 0x71b   :  { %v6102_v13 = vadd.f32 %v3074_v54, %v6061_v56  ;;  %3254 = vmatpush.msra.mxu2 %v3159_v50  ;;  %v2920_v46 = vpop.f32.mrf.mxu0  ;;  %v2584_v56 = vpop.f32.mrf.mxu2  ;;  %v3186_v54 = vld [vmem:[%s6257_s8 + $0x40] sm:$0xff] }
 0x71c   :  { %v2585_v12 = vadd.f32 %v6069_v17, %v2584_v56  ;;  %3216 = vmatmul.f32.gmra.mxu2 %v3186_v54 }
 0x71d   :  { %3255 = vmatpush.msra.mxu2 %v3158_v49 }
 0x71e   :  { %v2754_v36 = vadd.f32 %v2753_v47, %v2585_v12  ;;  %v3184_v12 = vld [vmem:[%s6257_s8 + $0x30] sm:$0xff] }
 0x71f   :  { %3256 = vmatpush.msra.mxu2 %v3157_v33 }
 0x721   :  { %3257 = vmatpush.msra.mxu2 %v3156_v16  ;;  %v2756_v15 = vpop.f32.mrf.mxu3 }
 0x722   :  { %v3076_v3 = vpop.f32.mrf.mxu1 }
 0x723   :  { %v6107_v21 = vadd.f32 %v3076_v3, %v6063_v52  ;;  %3258 = vmatpush.msra.mxu2 %v3155_v9  ;;  %v2922_v58 = vpop.f32.mrf.mxu0  ;;  %v2921_v52 = vadd.f32 %v2920_v46, %v2752_v4  ;;  %v2587_v27 = vpop.f32.mrf.mxu2  ;;  %v3179_v46 = vld [vmem:[%s6257_s8 + $0x8] sm:$0xff]  ;;  %v3180_v9 = vld [vmem:[%s6257_s8 + $0x10] sm:$0xff] }
 0x724   :  { %v2923_v45 = vadd.f32 %v2922_v58, %v2754_v36  ;;  %3219 = vmatmul.f32.gmra.mxu2 %v3190_v2  ;;  %3239 = vmatmul.f32.vlgmr.msrb.gmra.mxu3 %v3179_v46  ;;  %v3187_v4 = vld [vmem:[%s6257_s8 + $0x48] sm:$0xff]  ;;  %v3188_v58 = vld [vmem:[%s6257_s8 + $0x50] sm:$0xff] }
 0x725   :  { %3259 = vmatpush.msra.mxu2 %v3154_v44 }
 0x727   :  { %3260 = vmatpush.msra.mxu2 %v3153_v59  ;;  %v3183_v59 = vld [vmem:[%s6257_s8 + $0x28] sm:$0xff] }
 0x729   :  { %3261 = vmatpush.msra.mxu2 %v3152_v26  ;;  %v6134_v8 = vpop.f32.mrf.mxu3 }
 0x72a   :  { %v3079_v53 = vpop.f32.mrf.mxu1 }
 0x72b   :  { %v6116_v24 = vadd.f32 %v3079_v53, %v6075_v29  ;;  %3262 = vmatpush.msra.mxu2 %v3151_v14  ;;  %v2588_v29 = vadd.f32 %v6069_v17, %v2587_v27  ;;  %v2925_v10 = vpop.f32.mrf.mxu0  ;;  %v6130_v19 = vpop.f32.mrf.mxu2  ;;  %v3192_v27 = vld [vmem:[%s6257_s8 + $0x70] sm:$0xff] }
 0x72c   :  { %3242 = vmatmul.f32.gmra.mxu3 %v3183_v59 }
 0x72d   :  { %3263 = vmatpush.msra.mxu2 %v3150_v5  ;;  %v2757_v57 = vadd.f32 %v2756_v15, %v2588_v29 }
 0x72f   :  { %3264 = vmatpush.msra.mxu2 %v3149_v62  ;;  %v2926_v60 = vadd.f32 %v2925_v10, %v2757_v57 }
 0x731   :  { %3265 = vmatpush.msra.mxu2 %v3148_v35  ;;  %v2761_v38 = vpop.f32.mrf.mxu3 }
 0x732   :  { %v3081_v22 = vpop.f32.mrf.mxu1 }
 0x733   :  { %v6123_v7 = vadd.f32 %v3081_v22, %v6077_v42  ;;  %3266 = vmatpush.msra.mxu2 %v3147_v51  ;;  %v6136_v1 = vpop.f32.mrf.mxu0  ;;  %v2592_v32 = vpop.f32.mrf.mxu2  ;;  %v3191_v22 = vld [vmem:[%s6257_s8 + $0x68] sm:$0xff] }
 0x734   :  { %3245 = vmatmul.f32.gmra.mxu3 %v3187_v4  ;;  %v2593_v29 = vadd.f32 %v6069_v17, %v2592_v32  ;;  %v3310_v4 = vld [vmem:[%s6255_s6] sm:$0xff] }
 0x735   :  { %3267 = vmatpush.msra.mxu2 %v3146_v43 }
 0x736   :  { %3268 = vmatmul.f32.vlgmr.msra.gmra.mxu2 %v3180_v9 }
 0x73a   :  { %v3084_v41 = vpop.f32.mrf.mxu1 }
 0x73b   :  { %v6126_v20 = vadd.f32 %v3084_v41, %v2916_v37  ;;  %v6145_v48 = vpop.f32.mrf.mxu0  ;;  %v2594_v50 = vpop.f32.mrf.mxu2 }
 0x73c   :  { %3248 = vmatmul.f32.gmra.mxu3 %v3191_v22  ;;  %v2595_v15 = vadd.f32 %v6069_v17, %v2594_v50 }
 0x73e   :  { %3271 = vmatmul.f32.gmra.mxu2 %v3184_v12 }
 0x742   :  { %v3086_v6 = vpop.f32.mrf.mxu1 }
 0x743   :  { %v6128_v0 = vadd.f32 %v3086_v6, %v2918_v61  ;;  %v2763_v61 = vpop.f32.mrf.mxu3  ;;  %v2932_v63 = vpop.f32.mrf.mxu0 }
 0x744   :  { %v2597_v18 = vpop.f32.mrf.mxu2  ;;  %v2764_v28 = vadd.f32 %v2763_v61, %v2595_v15 }
 0x745   :  { %v2598_v62 = vadd.f32 %v6069_v17, %v2597_v18 }
 0x746   :  { %3274 = vmatmul.f32.gmra.mxu2 %v3188_v58 }
 0x74a   :  { %v3089_v39 = vpop.f32.mrf.mxu1 }
 0x74b   :  { %v6132_v42 = vadd.f32 %v3089_v39, %v2921_v52  ;;  %v2766_v40 = vpop.f32.mrf.mxu3  ;;  %v2935_v33 = vpop.f32.mrf.mxu0  ;;  %v2590_v39 = vadd.f32 %v6069_v17, %v6130_v19 }
 0x74c   :  { %v2599_v16 = vpop.f32.mrf.mxu2  ;;  %v2767_v10 = vadd.f32 %v2766_v40, %v2598_v62  ;;  %v2933_v40 = vadd.f32 %v2932_v63, %v2764_v28 }
 0x74d   :  { %v2600_v35 = vadd.f32 %v6069_v17, %v2599_v16  ;;  %v2759_v50 = vadd.f32 %v6134_v8, %v2590_v39 }
 0x74e   :  { %3277 = vmatmul.f32.gmra.mxu2 %v3192_v27  ;;  %v2936_v23 = vadd.f32 %v2935_v33, %v2767_v10 }
 0x752   :  { %v3091_v30 = vpop.f32.mrf.mxu1 }
 0x753   :  { %v6138_v31 = vadd.f32 %v3091_v30, %v2923_v45  ;;  %v2768_v3 = vpop.f32.mrf.mxu3  ;;  %v2937_v56 = vpop.f32.mrf.mxu0  ;;  %v2762_v30 = vadd.f32 %v2761_v38, %v2593_v29 }
 0x754   :  { %v2602_v11 = vpop.f32.mrf.mxu2 }
 0x755   :  { %v2603_v52 = vadd.f32 %v6069_v17, %v2602_v11  ;;  %v2931_v46 = vadd.f32 %v6145_v48, %v2762_v30 }
 0x75a   :  { %v3094_v34 = vpop.f32.mrf.mxu1 }
 0x75b   :  { %v6143_v55 = vadd.f32 %v3094_v34, %v2926_v60  ;;  %v2771_v47 = vpop.f32.mrf.mxu3  ;;  %v2940_v36 = vpop.f32.mrf.mxu0  ;;  %v2769_v60 = vadd.f32 %v2768_v3, %v2600_v35 }
 0x75c   :  { %v2604_v14 = vpop.f32.mrf.mxu2  ;;  %v2772_v51 = vadd.f32 %v2771_v47, %v2603_v52 }
 0x75d   :  { %v2605_v45 = vadd.f32 %v6069_v17, %v2604_v14  ;;  %v2938_v54 = vadd.f32 %v2937_v56, %v2769_v60  ;;  %v2928_v17 = vadd.f32 %v6136_v1, %v2759_v50  ;;  %v3170_v63 = vmax.f32 %v6143_v55, 0.0 }
 0x75e   :  { %v2941_v41 = vadd.f32 %v2940_v36, %v2772_v51  ;;  %v3168_v1 = vmax.f32 %v6132_v42, 0.0  ;;  %v3164_v56 = vmax.f32 %v6116_v24, 0.0  ;;  %v3163_v55 = vmax.f32 %v6107_v21, 0.0  ;;  %v3189_v24 = vld [vmem:[%s6257_s8 + $0x58] sm:$0xff] }
 0x75f   :  { %v3313_v21 = vld [vmem:[%s6255_s6 + $0x18] sm:$0xff] }
 0x760   :  { %3342 = vmatpush.msrb.mxu2 %v3313_v21 }
 0x762   :  { %v6150_v37 = vpop.f32.mrf.mxu1 }
 0x763   :  { %v2773_v5 = vpop.f32.mrf.mxu3  ;;  %v2942_v57 = vpop.f32.mrf.mxu0  ;;  %v3097_v61 = vadd.f32 %v6150_v37, %v2928_v17  ;;  %v3166_v37 = vmax.f32 %v6126_v20, 0.0  ;;  %v3312_v20 = vld [vmem:[%s6255_s6 + $0x10] sm:$0xff] }
 0x764   :  { %v2774_v43 = vadd.f32 %v2773_v5, %v2605_v45  ;;  %3343 = vmatpush.msrb.mxu2 %v3312_v20 }
 0x765   :  { %v3171_v48 = vmax.f32 %v3097_v61, 0.0 }
 0x766   :  { %v2943_v6 = vadd.f32 %v2942_v57, %v2774_v43 }
 0x76a   :  { %v6155_v49 = vpop.f32.mrf.mxu1 }
 0x76b   :  { %v3100_v19 = vadd.f32 %v6155_v49, %v2931_v46  ;;  %v3167_v49 = vmax.f32 %v6128_v0, 0.0  ;;  %v3181_v0 = vld [vmem:[%s6257_s8 + $0x18] sm:$0xff] }
 0x76d   :  { %v3172_v8 = vmax.f32 %v3100_v19, 0.0 }
 0x772   :  { %v3101_v25 = vpop.f32.mrf.mxu1 }
 0x773   :  { %v3102_v59 = vadd.f32 %v3101_v25, %v2933_v40  ;;  %v3169_v25 = vmax.f32 %v6138_v31, 0.0  ;;  %v3162_v31 = vmax.f32 %v6102_v13, 0.0  ;;  %v3193_v13 = vld [vmem:[%s6257_s8 + $0x78] sm:$0xff] }
 0x775   :  { %v3173_v33 = vmax.f32 %v3102_v59, 0.0 }
 0x77a   :  { %v3104_v44 = vpop.f32.mrf.mxu1 }
 0x77b   :  { %v3105_v9 = vadd.f32 %v3104_v44, %v2936_v23  ;;  %v3165_v44 = vmax.f32 %v6123_v7, 0.0  ;;  %v3185_v7 = vld [vmem:[%s6257_s8 + $0x38] sm:$0xff] }
 0x77d   :  { %v3174_v38 = vmax.f32 %v3105_v9, 0.0 }
 0x782   :  { %v3106_v26 = vpop.f32.mrf.mxu1 }
 0x783   :  { %v3107_v16 = vadd.f32 %v3106_v26, %v2938_v54  ;;  %v3211_v42 = vpop.f32.mrf.mxu2  ;;  %v3311_v26 = vld [vmem:[%s6255_s6 + $0x8] sm:$0xff]  ;;  %v4261_v54 = vld [vmem:[%s6256_s7] ss:$0 sm:$0xff] }
 0x784   :  { %3344 = vmatpush.msrb.mxu2 %v3311_v26 }
 0x785   :  { %v3175_v11 = vmax.f32 %v3107_v16, 0.0 }
 0x786   :  { %3345 = vmatpush.msrb.mxu2 %v3310_v4 }
 0x78a   :  { %v3109_v53 = vpop.f32.mrf.mxu1 }
 0x78b   :  { %v3110_v18 = vadd.f32 %v3109_v53, %v2941_v41 }
 0x78d   :  { %v3176_v3 = vmax.f32 %v3110_v18, 0.0 }
 0x792   :  { %v3111_v34 = vpop.f32.mrf.mxu1 }
 0x793   :  { %v3112_v2 = vadd.f32 %v3111_v34, %v2943_v6 }
 0x795   :  { %v3177_v32 = vmax.f32 %v3112_v2, 0.0 }
 0x797   :  { %3281 = vmatpush.msra.mxu3 %v3177_v32  ;;  %v3214_v12 = vpop.f32.mrf.mxu2 }
 0x799   :  { %3282 = vmatpush.msra.mxu3 %v3176_v3 }
 0x79b   :  { %3283 = vmatpush.msra.mxu3 %v3175_v11 }
 0x79d   :  { %3284 = vmatpush.msra.mxu3 %v3174_v38 }
 0x79f   :  { %3285 = vmatpush.msra.mxu3 %v3173_v33  ;;  %v3217_v36 = vpop.f32.mrf.mxu2 }
 0x7a1   :  { %3286 = vmatpush.msra.mxu3 %v3172_v8 }
 0x7a3   :  { %3287 = vmatpush.msra.mxu3 %v3171_v48 }
 0x7a5   :  { %3288 = vmatpush.msra.mxu3 %v3170_v63 }
 0x7a7   :  { %3289 = vmatpush.msra.mxu3 %v3169_v25  ;;  %v3240_v47 = vpop.f32.mrf.mxu3  ;;  %v3220_v14 = vpop.f32.mrf.mxu2 }
 0x7a8   :  { %v3241_v5 = vadd.f32 %v3240_v47, %v3211_v42 }
 0x7a9   :  { %3290 = vmatpush.msra.mxu3 %v3168_v1 }
 0x7ab   :  { %3291 = vmatpush.msra.mxu3 %v3167_v49 }
 0x7ad   :  { %3292 = vmatpush.msra.mxu3 %v3166_v37 }
 0x7af   :  { %3293 = vmatpush.msra.mxu3 %v3165_v44  ;;  %v3243_v58 = vpop.f32.mrf.mxu3 }
 0x7b0   :  { %v3244_v43 = vadd.f32 %v3243_v58, %v3214_v12 }
 0x7b1   :  { %3294 = vmatpush.msra.mxu3 %v3164_v56 }
 0x7b3   :  { %3295 = vmatpush.msra.mxu3 %v3163_v55 }
 0x7b5   :  { %3296 = vmatpush.msra.mxu3 %v3162_v31 }
 0x7b6   :  { %3297 = vmatmul.f32.vlgmr.msra.gmra.mxu3 %v3181_v0 }
 0x7b7   :  { %v3246_v52 = vpop.f32.mrf.mxu3 }
 0x7b8   :  { %v3247_v10 = vadd.f32 %v3246_v52, %v3217_v36 }
 0x7b9   :  { %v3269_v45 = vpop.f32.mrf.mxu2 }
 0x7ba   :  { %v3270_v62 = vadd.f32 %v3269_v45, %v3241_v5 }
 0x7be   :  { %3300 = vmatmul.f32.gmra.mxu3 %v3185_v7 }
 0x7bf   :  { %v3249_v53 = vpop.f32.mrf.mxu3 }
 0x7c0   :  { %v3250_v39 = vadd.f32 %v3249_v53, %v3220_v14 }
 0x7c1   :  { %v3272_v51 = vpop.f32.mrf.mxu2 }
 0x7c2   :  { %v3273_v27 = vadd.f32 %v3272_v51, %v3244_v43 }
 0x7c6   :  { %3303 = vmatmul.f32.gmra.mxu3 %v3189_v24 }
 0x7c9   :  { %v3275_v57 = vpop.f32.mrf.mxu2 }
 0x7ca   :  { %v3276_v60 = vadd.f32 %v3275_v57, %v3247_v10 }
 0x7ce   :  { %3306 = vmatmul.f32.gmra.mxu3 %v3193_v13 }
 0x7d1   :  { %v3278_v30 = vpop.f32.mrf.mxu2 }
 0x7d2   :  { %v3279_v28 = vadd.f32 %v3278_v30, %v3250_v39 }
 0x839   :  { %v3298_v35 = vpop.f32.mrf.mxu3 }
 0x83a   :  { %v3299_v22 = vadd.f32 %v3298_v35, %v3270_v62 }
 0x83c   :  { %4081 = vmatmul.msk.f32.vlgmr.msrb.gmra.mxu2 %vm2136_vm2, %v3299_v22 }
 0x841   :  { %v3301_v29 = vpop.f32.mrf.mxu3 }
 0x842   :  { %v3302_v15 = vadd.f32 %v3301_v29, %v3273_v27 }
 0x844   :  { %4082 = vmatmul.msk.f32.gmra.mxu2 %vm2136_vm2, %v3302_v15 }
 0x849   :  { %v3304_v41 = vpop.f32.mrf.mxu3 }
 0x84a   :  { %v3305_v6 = vadd.f32 %v3304_v41, %v3276_v60 }
 0x84c   :  { %4083 = vmatmul.msk.f32.gmra.mxu2 %vm2136_vm2, %v3305_v6 }
 0x851   :  { %v3307_v34 = vpop.f32.mrf.mxu3 }
 0x852   :  { %v3308_v23 = vadd.f32 %v3307_v34, %v3279_v28 }
 0x854   :  { %4084 = vmatmul.msk.f32.gmra.mxu2 %vm2136_vm2, %v3308_v23 }
 0x8bf   :  { %v3347_v18 = vpop.f32.mrf.mxu2 }
 0x8c0   :  { %v3348_v2 = vadd.f32 %v4261_v54, %v3347_v18 }
 0x8c2   :  { %3360 = vst.msk [vmem:[%s6258_s9] sm:$0xff] %vm3359_vm3, %v3348_v2 }
 0x8c7   :  { %v3350_v16 = vpop.f32.mrf.mxu2 }
 0x8c8   :  { %v3351_v32 = vadd.f32 %v4261_v54, %v3350_v16 }
 0x8ca   :  { %3361 = vst.msk [vmem:[%s6258_s9 + $0x8] sm:$0xff] %vm3359_vm3, %v3351_v32 }
 0x8cf   :  { %v3353_v50 = vpop.f32.mrf.mxu2 }
 0x8d0   :  { %v3354_v46 = vadd.f32 %v4261_v54, %v3353_v50 }
 0x8d2   :  { %3362 = vst.msk [vmem:[%s6258_s9 + $0x10] sm:$0xff] %vm3359_vm3, %v3354_v46 }
 0x8d7   :  { %v3356_v40 = vpop.f32.mrf.mxu2 }
 0x8d8   :  { %v3357_v9 = vadd.f32 %v4261_v54, %v3356_v40 }
 0x8da   :  { %3363 = vst.msk [vmem:[%s6258_s9 + $0x18] sm:$0xff] %vm3359_vm3, %v3357_v9 }
 0x8db   :  { %3368 = vsyncpa [#allocation3], 1 }

</bundles_post_ra>
